<compile_context>
chip_gen: v6e
topology: v6e:2x2x1
jax: 0.10.0
libtpu: 0.0.40
codegen_flags: <defaults>
</compile_context>

<pallas_src>
import functools

import jax
import jax.numpy as jnp
from jax import lax
from jax.experimental import pallas as pl
from jax.experimental.pallas import tpu as pltpu


# ----------------------------------------------------------------------------
# Fused MBConv kernel: one grid step = B images, layout (C, B*HW).
# ----------------------------------------------------------------------------
def _mbconv_kernel(*refs, k, W, HW, B, cmid, cout,
                   has_expand, has_se, has_skip, act_dtype):
    it = iter(refs)
    x_ref = next(it)
    if has_se:
        sel_ref, selT_ref = next(it), next(it)
    if has_expand:
        w_exp_ref = next(it)
    w_dw_ref, mask_ref, bias_ref = next(it), next(it), next(it)
    if has_se:
        w_ser_ref, b_ser_ref, w_see_ref, b_see_ref = (next(it), next(it),
                                                      next(it), next(it))
    w_prj_ref = next(it)
    o_ref = next(it)

    def sigmoid_f32(v):
        # EUP exp + approx EUP reciprocal: keeps the divide off the VPU.
        return pl.reciprocal(1.0 + jnp.exp(-v.astype(jnp.float32)), approx=True)

    def swish(v):
        return v * sigmoid_f32(v).astype(v.dtype)

    L = B * HW
    x = x_ref[...].astype(jnp.float32)                  # (Cin, L)
    bias = bias_ref[...]                                # (Cmax, ncols) f32

    # ---- expand 1x1 conv (BN scale pre-folded into weights) + bias + swish --
    col = 0
    if has_expand:
        y = jnp.dot(w_exp_ref[...], x, preferred_element_type=jnp.float32)
        y = y + bias[:cmid, 0:1]
        col = 1
        y = swish(y.astype(act_dtype))                  # (Cmid, L) act_dtype
    else:
        y = x.astype(act_dtype)

    # ---- depthwise kxk conv, stride 1, SAME zero padding --------------------
    # Spatial shifts are lane rolls (XLU, off the VPU); precomputed 0/1 masks
    # zero the out-of-image taps (this also absorbs rolls that wrap across the
    # concatenated image boundaries).  BN scale is pre-folded into wdw.
    wdw = w_dw_ref[...]                                 # (k*k, Cmid, 1) act
    tapm = mask_ref[...]                                # (k*k, 1, L)    act
    p = (k - 1) // 2
    acc = None
    t = 0
    for oh in range(-p, p + 1):
        for ow in range(-p, p + 1):
            delta = oh * W + ow
            if delta == 0:
                shifted = y                             # center tap: mask == 1 -> skip it
            else:
                shifted = pltpu.roll(y, shift=(-delta) % L, axis=1) * tapm[t]
            term = shifted * wdw[t]
            acc = term if acc is None else acc + term
            t += 1
    z = swish(acc + bias[:cmid, col:col + 1].astype(act_dtype))     # (Cmid, L)

    # ---- squeeze-and-excitation (per image, on the VMEM-resident z) ---------
    if has_se:
        # Per-image mean over each image's HW lanes via a tiny MXU contraction
        # with the 0/1 image selector; gate broadcast back the same way.
        m = jnp.dot(z, selT_ref[...],
                    preferred_element_type=jnp.float32) * (1.0 / HW)   # (Cmid, B)
        s = jnp.dot(w_ser_ref[...], m, preferred_element_type=jnp.float32)
        s = s + b_ser_ref[...]                                          # (S, B)
        s = s * sigmoid_f32(s)
        e = jnp.dot(w_see_ref[...], s, preferred_element_type=jnp.float32)
        e = e + b_see_ref[...]                                          # (Cmid, B)
        g = sigmoid_f32(e).astype(act_dtype)
        gate = jnp.dot(g, sel_ref[...])                                 # (Cmid, L)
        z = z * gate

    # ---- project 1x1 conv (BN scale pre-folded) + bias (+ identity skip) ----
    out = jnp.dot(w_prj_ref[...], z, preferred_element_type=jnp.float32)  # (Cout, L)
    out = out + bias[:cout, col + 1:col + 2]
    if has_skip:
        # TODO(synk): drop_connect (training-only stochastic depth) not implemented.
        out = out + x
    o_ref[...] = out.astype(o_ref.dtype)


# ----------------------------------------------------------------------------
# Host-side helpers
# ----------------------------------------------------------------------------
def fold_bn(bn, eps):
    scale = bn["gamma"] * lax.rsqrt(bn["var"] + eps)
    bias = bn["beta"] - bn["mean"] * scale
    return scale, bias


def _full_spec(a):
    nd = a.ndim
    return pl.BlockSpec(a.shape, lambda g, _nd=nd: (0,) * _nd)


def _act_dtype_for_device():
    # bf16 VPU/EUP exist on v6e (Trillium) and v7x; keep f32 on v5e and older.
    try:
        kind = jax.devices()[0].device_kind.lower()
    except Exception:
        return jnp.float32
    if any(tag in kind for tag in ("v6", "trillium", "v7", "7x")):
        return jnp.bfloat16
    return jnp.float32


def _vmem_limit_bytes():
    # v7x has only 64 MiB physical VMEM per core: leave headroom for the
    # double-buffered I/O blocks and compiler scratch.  64 MiB is fine on
    # v5e/v6e (128 MiB physical).
    cap_mib = 64
    try:
        kind = jax.devices()[0].device_kind.lower()
        if "7x" in kind or "v7" in kind:
            cap_mib = 44
    except Exception:
        pass
    try:
        info_cap = pltpu.get_tpu_info().vmem_capacity_bytes
        cap_mib = min(cap_mib, max(16, int(info_cap * 0.7) // (1024 * 1024)))
    except Exception:
        pass
    return cap_mib * 1024 * 1024


def _pick_images_per_step(N, cmid, hw, act_bytes, vmem_limit):
    # Keep ~6 live copies of the (Cmid, B*HW) activation well inside VMEM,
    # and keep the grid length >= 2 so both v7x TensorCores get work.
    budget = int(0.4 * vmem_limit)
    per_image = cmid * hw * (6 * act_bytes + 4 * 4)
    max_b = max(1, budget // max(per_image, 1))
    best = 1
    for b in range(1, N + 1):
        if N % b or b > max_b:
            continue
        if N >= 2 and N // b < 2:
            continue
        best = b
    return best


# ----------------------------------------------------------------------------
# Wrapper
# ----------------------------------------------------------------------------
def mbconv_forward(x_nchw, params, cfg, images_per_step=None):
    N, Cin, H, W = x_nchw.shape
    assert Cin == cfg["input_filters"]
    assert cfg["stride"] == 1, "only stride=1 supported in this kernel"
    eps = cfg["bn_eps"]
    k = cfg["kernel_size"]
    p = (k - 1) // 2
    HW = H * W

    has_expand = cfg["expand_ratio"] != 1
    has_se = cfg["se_ratio"] is not None and 0 < cfg["se_ratio"] <= 1
    Cout = cfg["output_filters"]
    has_skip = cfg["id_skip"] and cfg["stride"] == 1 and Cin == Cout
    Cmid = Cin * cfg["expand_ratio"]

    act_dtype = _act_dtype_for_device()
    act_bytes = jnp.dtype(act_dtype).itemsize
    vmem_limit = _vmem_limit_bytes()

    if images_per_step is None:
        images_per_step = _pick_images_per_step(N, Cmid, HW, act_bytes, vmem_limit)
    B = images_per_step
    assert N % B == 0, (N, B)
    L = B * HW

    # (N, Cin, H, W) -> (Cin, N*HW): lane axis = concatenated images.  Each grid
    # step consumes B*HW lanes (lane-dense, multiple of 128).
    x2 = x_nchw.reshape(N, Cin, HW).transpose(1, 0, 2).reshape(Cin, N * HW)

    # Per-image 0/1 halo masks (SAME zero padding) tiled across the B images of
    # one step; they also absorb roll wrap-around across image boundaries.
    q = jnp.arange(HW, dtype=jnp.int32)
    wq, hq = q % W, q // W
    masks = []
    for oh in range(-p, p + 1):
        for ow in range(-p, p + 1):
            masks.append((wq + ow >= 0) & (wq + ow < W)
                         & (hq + oh >= 0) & (hq + oh < H))
    tap_mask = jnp.stack(masks, 0).astype(act_dtype)            # (k*k, HW)
    tap_mask = jnp.tile(tap_mask, (1, B)).reshape(k * k, 1, L)

    # Fold BN scales into the conv weights; only biases go into the kernel.
    s1, b1 = fold_bn(params["bn1"], eps)
    s2, b2 = fold_bn(params["bn2"], eps)
    w_dw = (params["w_dw"] * s1[None, :, None]).astype(act_dtype)   # (k*k, Cmid, 1)
    w_prj = (params["w_project"] * s2[:, None]).astype(act_dtype)   # (Cout, Cmid)

    Cmax = max(Cmid, Cout)

    def pad_col(v):
        return jnp.pad(v, (0, Cmax - v.shape[0]))

    bias_cols = []
    if has_expand:
        s0, b0 = fold_bn(params["bn0"], eps)
        w_exp = params["w_expand"] * s0[:, None]                    # (Cmid, Cin) f32
        bias_cols.append(pad_col(b0))
    bias_cols += [pad_col(b1), pad_col(b2)]
    bias = jnp.stack(bias_cols, axis=1).astype(jnp.float32)         # (Cmax, 2 or 3)

    args = [x2]
    in_specs = [pl.BlockSpec((Cin, L), lambda g: (0, g))]

    def add(a):
        args.append(a)
        in_specs.append(_full_spec(a))

    if has_se:
        sel = jnp.repeat(jnp.eye(B, dtype=act_dtype), HW, axis=1)   # (B, L)
        add(sel)
        add(sel.T)                                                  # (L, B)
    if has_expand:
        add(w_exp)
    add(w_dw)
    add(tap_mask)
    add(bias)
    if has_se:
        add(params["w_se_r"])        # (S, Cmid)
        add(params["b_se_r"])        # (S, 1)
        add(params["w_se_e"])        # (Cmid, S)
        add(params["b_se_e"])        # (Cmid, 1)
    add(w_prj)

    kernel = functools.partial(
        _mbconv_kernel, k=k, W=W, HW=HW, B=B, cmid=Cmid, cout=Cout,
        has_expand=has_expand, has_se=has_se, has_skip=has_skip,
        act_dtype=act_dtype)

    out2 = pl.pallas_call(
        kernel,
        out_shape=jax.ShapeDtypeStruct((Cout, N * HW), x_nchw.dtype),
        grid=(N // B,),
        in_specs=in_specs,
        out_specs=pl.BlockSpec((Cout, L), lambda g: (0, g)),
        compiler_params=pltpu.CompilerParams(
            dimension_semantics=("parallel",),
            vmem_limit_bytes=vmem_limit),
    )(*args)
    return out2.reshape(Cout, N, HW).transpose(1, 0, 2).reshape(N, Cout, H, W)


# ----------------------------------------------------------------------------
# Pure-JAX reference (inference-mode BN), NCHW, for correctness checking.
# ----------------------------------------------------------------------------
def mbconv_reference(x_nchw, params, cfg):
    eps = cfg["bn_eps"]
    k = cfg["kernel_size"]
    N, Cin, H, W = x_nchw.shape
    Cout = cfg["output_filters"]
    hi = lax.Precision.HIGHEST

    y = x_nchw
    if cfg["expand_ratio"] != 1:
        s0, b0 = fold_bn(params["bn0"], eps)
        y = jnp.einsum("oi,nihw->nohw", params["w_expand"], y, precision=hi)
        y = y * s0[None, :, None, None] + b0[None, :, None, None]
        y = y * jax.nn.sigmoid(y)

    wdw = params["w_dw"][:, :, 0]                           # (k*k, C)
    Cmid = wdw.shape[1]
    w4 = jnp.transpose(wdw, (1, 0)).reshape(Cmid, 1, k, k)
    y = lax.conv_general_dilated(
        y, w4, window_strides=(1, 1), padding="SAME",
        dimension_numbers=("NCHW", "OIHW", "NCHW"),
        feature_group_count=Cmid, precision=hi)
    s1, b1 = fold_bn(params["bn1"], eps)
    y = y * s1[None, :, None, None] + b1[None, :, None, None]
    y = y * jax.nn.sigmoid(y)

    if cfg["se_ratio"] is not None and 0 < cfg["se_ratio"] <= 1:
        m = jnp.mean(y, axis=(2, 3))                        # (N, C)
        s = jnp.einsum("sc,nc->ns", params["w_se_r"], m, precision=hi) \
            + params["b_se_r"][:, 0][None, :]
        s = s * jax.nn.sigmoid(s)
        e = jnp.einsum("cs,ns->nc", params["w_se_e"], s, precision=hi) \
            + params["b_se_e"][:, 0][None, :]
        y = y * jax.nn.sigmoid(e)[:, :, None, None]

    s2, b2 = fold_bn(params["bn2"], eps)
    out = jnp.einsum("oc,nchw->nohw", params["w_project"], y, precision=hi)
    out = out * s2[None, :, None, None] + b2[None, :, None, None]
    if cfg["id_skip"] and cfg["stride"] == 1 and Cin == Cout:
        out = out + x_nchw
    return out


# ----------------------------------------------------------------------------
# Deterministic parameter construction (shapes mirror the PyTorch __init__,
# stored in the (C, H*W)-friendly orientation used by the kernel).
# ----------------------------------------------------------------------------
def init_params(key, cfg):
    Cin = cfg["input_filters"]
    Cmid = Cin * cfg["expand_ratio"]
    Cout = cfg["output_filters"]
    S = max(1, int(Cin * cfg["se_ratio"]))
    k = cfg["kernel_size"]

    def bn(key, c):
        kg, kb, km, kv = jax.random.split(key, 4)
        return {
            "gamma": 1.0 + 0.1 * jax.random.normal(kg, (c,), jnp.float32),
            "beta": 0.1 * jax.random.normal(kb, (c,), jnp.float32),
            "mean": 0.1 * jax.random.normal(km, (c,), jnp.float32),
            "var": 1.0 + 0.1 * jax.random.uniform(kv, (c,), jnp.float32),
        }

    keys = jax.random.split(key, 10)
    params = {
        # expand conv (PyTorch (Cmid, Cin, 1, 1)) stored squeezed: (Cmid, Cin)
        "w_expand": 0.1 * jax.random.normal(keys[0], (Cmid, Cin), jnp.float32),
        "bn0": bn(keys[1], Cmid),
        # depthwise conv (PyTorch (Cmid, 1, k, k)) stored as (k*k, Cmid, 1),
        # tap index t = kh*k + kw.
        "w_dw": 0.1 * jax.random.normal(keys[2], (k * k, Cmid, 1), jnp.float32),
        "bn1": bn(keys[3], Cmid),
        # se_reduce (PyTorch weight (S, Cmid, 1, 1), bias (S,)): (S, Cmid), (S, 1)
        "w_se_r": 0.1 * jax.random.normal(keys[4], (S, Cmid), jnp.float32),
        "b_se_r": 0.1 * jax.random.normal(keys[5], (S, 1), jnp.float32),
        # se_expand (PyTorch weight (Cmid, S, 1, 1), bias (Cmid,)): (Cmid, S), (Cmid, 1)
        "w_se_e": 0.1 * jax.random.normal(keys[6], (Cmid, S), jnp.float32),
        "b_se_e": 0.1 * jax.random.normal(keys[7], (Cmid, 1), jnp.float32),
        # project conv (PyTorch (Cout, Cmid, 1, 1)) stored squeezed: (Cout, Cmid)
        "w_project": 0.1 * jax.random.normal(keys[8], (Cout, Cmid), jnp.float32),
        "bn2": bn(keys[9], Cout),
    }
    return params


if __name__ == "__main__":
    cfg = {
        "input_filters": 8,
        "output_filters": 8,
        "expand_ratio": 6,
        "kernel_size": 3,
        "stride": 1,
        "se_ratio": 0.25,
        "id_skip": True,
        "bn_eps": 1e-3,
    }

    key = jax.random.PRNGKey(0)
    kx, kp = jax.random.split(key)
    # 4 images: the default batching picks 2 images per grid step, keeping a
    # 2-long parallel grid (both v7x TensorCores busy) with 512-lane slabs.
    x = jax.random.normal(kx, (4, cfg["input_filters"], 16, 16), jnp.float32)  # NCHW
    params = init_params(kp, cfg)

    fwd = jax.jit(lambda xx, pp: mbconv_forward(xx, pp, cfg))
    out = jax.block_until_ready(fwd(x, params))

    ref = jax.block_until_ready(mbconv_reference(x, params, cfg))

    assert out.shape == (4, cfg["output_filters"], 16, 16), out.shape
    assert bool(jnp.all(jnp.isfinite(out)))
    max_err = float(jnp.max(jnp.abs(out - ref)))
    assert max_err < 3e-2, max_err
    print("KERNEL_OK")
</pallas_src>

<mosaic_0001>
module attributes {stable_mosaic.version = 11 : i64} {
  func.func @_mbconv_kernel(%arg0: i32, %arg1: memref<8x512xf32, #tpu.memory_space<vmem>>, %arg2: memref<2x512xf32, #tpu.memory_space<vmem>>, %arg3: memref<512x2xf32, #tpu.memory_space<vmem>>, %arg4: memref<48x8xf32, #tpu.memory_space<vmem>>, %arg5: memref<9x48x1xf32, #tpu.memory_space<vmem>>, %arg6: memref<9x1x512xf32, #tpu.memory_space<vmem>>, %arg7: memref<48x3xf32, #tpu.memory_space<vmem>>, %arg8: memref<2x48xf32, #tpu.memory_space<vmem>>, %arg9: memref<2x1xf32, #tpu.memory_space<vmem>>, %arg10: memref<48x2xf32, #tpu.memory_space<vmem>>, %arg11: memref<48x1xf32, #tpu.memory_space<vmem>>, %arg12: memref<8x48xf32, #tpu.memory_space<vmem>>, %arg13: memref<8x512xf32, #tpu.memory_space<vmem>>) attributes {dimension_semantics = [#tpu.dimension_semantics<parallel>], iteration_bounds = array<i64: 2>, scalar_prefetch = 0 : i64, scratch_operands = 0 : i64, tpu.core_type = #tpu.core_type<tc>, window_params = [{transform_indices = @transform_0, window_bounds = array<i64: 8, 512>}, {pipeline_mode = #tpu.pipeline_mode<synchronous>, transform_indices = @transform_1, window_bounds = array<i64: 2, 512>}, {pipeline_mode = #tpu.pipeline_mode<synchronous>, transform_indices = @transform_2, window_bounds = array<i64: 512, 2>}, {pipeline_mode = #tpu.pipeline_mode<synchronous>, transform_indices = @transform_3, window_bounds = array<i64: 48, 8>}, {pipeline_mode = #tpu.pipeline_mode<synchronous>, transform_indices = @transform_4, window_bounds = array<i64: 9, 48, 1>}, {pipeline_mode = #tpu.pipeline_mode<synchronous>, transform_indices = @transform_5, window_bounds = array<i64: 9, 1, 512>}, {pipeline_mode = #tpu.pipeline_mode<synchronous>, transform_indices = @transform_6, window_bounds = array<i64: 48, 3>}, {pipeline_mode = #tpu.pipeline_mode<synchronous>, transform_indices = @transform_7, window_bounds = array<i64: 2, 48>}, {pipeline_mode = #tpu.pipeline_mode<synchronous>, transform_indices = @transform_8, window_bounds = array<i64: 2, 1>}, {pipeline_mode = #tpu.pipeline_mode<synchronous>, transform_indices = @transform_9, window_bounds = array<i64: 48, 2>}, {pipeline_mode = #tpu.pipeline_mode<synchronous>, transform_indices = @transform_10, window_bounds = array<i64: 48, 1>}, {pipeline_mode = #tpu.pipeline_mode<synchronous>, transform_indices = @transform_11, window_bounds = array<i64: 8, 48>}, {transform_indices = @transform_12, window_bounds = array<i64: 8, 512>}]} {
    %c0 = arith.constant 0 : index
    %c0_0 = arith.constant 0 : index
    %0 = vector.load %arg1[%c0, %c0_0] : memref<8x512xf32, #tpu.memory_space<vmem>>, vector<8x512xf32>
    %c0_1 = arith.constant 0 : index
    %c0_2 = arith.constant 0 : index
    %1 = vector.load %arg7[%c0_1, %c0_2] : memref<48x3xf32, #tpu.memory_space<vmem>>, vector<48x3xf32>
    %c0_3 = arith.constant 0 : index
    %c0_4 = arith.constant 0 : index
    %2 = vector.load %arg4[%c0_3, %c0_4] : memref<48x8xf32, #tpu.memory_space<vmem>>, vector<48x8xf32>
    %cst = arith.constant dense<0.000000e+00> : vector<48x512xf32>
    %3 = tpu.matmul %2, %0, %cst {dimension_numbers = #tpu.dot_dimension_numbers<[1], [0], [0], [1], [0, 0, 1, 1], [], []>} : vector<48x8xf32>, vector<8x512xf32>, vector<48x512xf32> -> vector<48x512xf32>
    %4 = vector.extract_strided_slice %1 {offsets = [0, 0], sizes = [48, 1], strides = [1, 1]} : vector<48x3xf32> to vector<48x1xf32>
    %5 = vector.broadcast %4 : vector<48x1xf32> to vector<48x512xf32>
    %6 = arith.addf %3, %5 : vector<48x512xf32>
    %cst_5 = arith.constant 0.000000e+00 : f32
    %7 = vector.broadcast %cst_5 : f32 to vector<48x512xf32>
    %8 = arith.subf %7, %6 : vector<48x512xf32>
    %9 = math.exp %8 : vector<48x512xf32>
    %cst_6 = arith.constant 1.000000e+00 : f32
    %10 = vector.broadcast %cst_6 : f32 to vector<48x512xf32>
    %11 = arith.addf %10, %9 : vector<48x512xf32>
    %12 = tpu.reciprocal %11 {approx = true} : vector<48x512xf32> -> vector<48x512xf32>
    %13 = arith.mulf %6, %12 : vector<48x512xf32>
    %c0_7 = arith.constant 0 : index
    %c0_8 = arith.constant 0 : index
    %c0_9 = arith.constant 0 : index
    %14 = vector.load %arg5[%c0_7, %c0_8, %c0_9] : memref<9x48x1xf32, #tpu.memory_space<vmem>>, vector<9x48x1xf32>
    %c0_10 = arith.constant 0 : index
    %c0_11 = arith.constant 0 : index
    %c0_12 = arith.constant 0 : index
    %15 = vector.load %arg6[%c0_10, %c0_11, %c0_12] : memref<9x1x512xf32, #tpu.memory_space<vmem>>, vector<9x1x512xf32>
    %c17_i32 = arith.constant 17 : i32
    %16 = tpu.dynamic_rotate %13 by %c17_i32 dim 1 : vector<48x512xf32>, i32 -> vector<48x512xf32>
    %17 = vector.extract_strided_slice %15 {offsets = [0, 0, 0], sizes = [1, 1, 512], strides = [1, 1, 1]} : vector<9x1x512xf32> to vector<1x1x512xf32>
    %18 = vector.shape_cast %17 : vector<1x1x512xf32> to vector<1x512xf32>
    %19 = vector.broadcast %18 : vector<1x512xf32> to vector<48x512xf32>
    %20 = arith.mulf %16, %19 : vector<48x512xf32>
    %21 = vector.extract_strided_slice %14 {offsets = [0, 0, 0], sizes = [1, 48, 1], strides = [1, 1, 1]} : vector<9x48x1xf32> to vector<1x48x1xf32>
    %22 = vector.shape_cast %21 : vector<1x48x1xf32> to vector<48x1xf32>
    %23 = vector.broadcast %22 : vector<48x1xf32> to vector<48x512xf32>
    %24 = arith.mulf %20, %23 : vector<48x512xf32>
    %c16_i32 = arith.constant 16 : i32
    %25 = tpu.dynamic_rotate %13 by %c16_i32 dim 1 : vector<48x512xf32>, i32 -> vector<48x512xf32>
    %26 = vector.extract_strided_slice %15 {offsets = [1, 0, 0], sizes = [1, 1, 512], strides = [1, 1, 1]} : vector<9x1x512xf32> to vector<1x1x512xf32>
    %27 = vector.shape_cast %26 : vector<1x1x512xf32> to vector<1x512xf32>
    %28 = vector.broadcast %27 : vector<1x512xf32> to vector<48x512xf32>
    %29 = arith.mulf %25, %28 : vector<48x512xf32>
    %30 = vector.extract_strided_slice %14 {offsets = [1, 0, 0], sizes = [1, 48, 1], strides = [1, 1, 1]} : vector<9x48x1xf32> to vector<1x48x1xf32>
    %31 = vector.shape_cast %30 : vector<1x48x1xf32> to vector<48x1xf32>
    %32 = vector.broadcast %31 : vector<48x1xf32> to vector<48x512xf32>
    %33 = arith.mulf %29, %32 : vector<48x512xf32>
    %34 = arith.addf %24, %33 : vector<48x512xf32>
    %c15_i32 = arith.constant 15 : i32
    %35 = tpu.dynamic_rotate %13 by %c15_i32 dim 1 : vector<48x512xf32>, i32 -> vector<48x512xf32>
    %36 = vector.extract_strided_slice %15 {offsets = [2, 0, 0], sizes = [1, 1, 512], strides = [1, 1, 1]} : vector<9x1x512xf32> to vector<1x1x512xf32>
    %37 = vector.shape_cast %36 : vector<1x1x512xf32> to vector<1x512xf32>
    %38 = vector.broadcast %37 : vector<1x512xf32> to vector<48x512xf32>
    %39 = arith.mulf %35, %38 : vector<48x512xf32>
    %40 = vector.extract_strided_slice %14 {offsets = [2, 0, 0], sizes = [1, 48, 1], strides = [1, 1, 1]} : vector<9x48x1xf32> to vector<1x48x1xf32>
    %41 = vector.shape_cast %40 : vector<1x48x1xf32> to vector<48x1xf32>
    %42 = vector.broadcast %41 : vector<48x1xf32> to vector<48x512xf32>
    %43 = arith.mulf %39, %42 : vector<48x512xf32>
    %44 = arith.addf %34, %43 : vector<48x512xf32>
    %c1_i32 = arith.constant 1 : i32
    %45 = tpu.dynamic_rotate %13 by %c1_i32 dim 1 : vector<48x512xf32>, i32 -> vector<48x512xf32>
    %46 = vector.extract_strided_slice %15 {offsets = [3, 0, 0], sizes = [1, 1, 512], strides = [1, 1, 1]} : vector<9x1x512xf32> to vector<1x1x512xf32>
    %47 = vector.shape_cast %46 : vector<1x1x512xf32> to vector<1x512xf32>
    %48 = vector.broadcast %47 : vector<1x512xf32> to vector<48x512xf32>
    %49 = arith.mulf %45, %48 : vector<48x512xf32>
    %50 = vector.extract_strided_slice %14 {offsets = [3, 0, 0], sizes = [1, 48, 1], strides = [1, 1, 1]} : vector<9x48x1xf32> to vector<1x48x1xf32>
    %51 = vector.shape_cast %50 : vector<1x48x1xf32> to vector<48x1xf32>
    %52 = vector.broadcast %51 : vector<48x1xf32> to vector<48x512xf32>
    %53 = arith.mulf %49, %52 : vector<48x512xf32>
    %54 = arith.addf %44, %53 : vector<48x512xf32>
    %55 = vector.extract_strided_slice %14 {offsets = [4, 0, 0], sizes = [1, 48, 1], strides = [1, 1, 1]} : vector<9x48x1xf32> to vector<1x48x1xf32>
    %56 = vector.shape_cast %55 : vector<1x48x1xf32> to vector<48x1xf32>
    %57 = vector.broadcast %56 : vector<48x1xf32> to vector<48x512xf32>
    %58 = arith.mulf %13, %57 : vector<48x512xf32>
    %59 = arith.addf %54, %58 : vector<48x512xf32>
    %c511_i32 = arith.constant 511 : i32
    %60 = tpu.dynamic_rotate %13 by %c511_i32 dim 1 : vector<48x512xf32>, i32 -> vector<48x512xf32>
    %61 = vector.extract_strided_slice %15 {offsets = [5, 0, 0], sizes = [1, 1, 512], strides = [1, 1, 1]} : vector<9x1x512xf32> to vector<1x1x512xf32>
    %62 = vector.shape_cast %61 : vector<1x1x512xf32> to vector<1x512xf32>
    %63 = vector.broadcast %62 : vector<1x512xf32> to vector<48x512xf32>
    %64 = arith.mulf %60, %63 : vector<48x512xf32>
    %65 = vector.extract_strided_slice %14 {offsets = [5, 0, 0], sizes = [1, 48, 1], strides = [1, 1, 1]} : vector<9x48x1xf32> to vector<1x48x1xf32>
    %66 = vector.shape_cast %65 : vector<1x48x1xf32> to vector<48x1xf32>
    %67 = vector.broadcast %66 : vector<48x1xf32> to vector<48x512xf32>
    %68 = arith.mulf %64, %67 : vector<48x512xf32>
    %69 = arith.addf %59, %68 : vector<48x512xf32>
    %c497_i32 = arith.constant 497 : i32
    %70 = tpu.dynamic_rotate %13 by %c497_i32 dim 1 : vector<48x512xf32>, i32 -> vector<48x512xf32>
    %71 = vector.extract_strided_slice %15 {offsets = [6, 0, 0], sizes = [1, 1, 512], strides = [1, 1, 1]} : vector<9x1x512xf32> to vector<1x1x512xf32>
    %72 = vector.shape_cast %71 : vector<1x1x512xf32> to vector<1x512xf32>
    %73 = vector.broadcast %72 : vector<1x512xf32> to vector<48x512xf32>
    %74 = arith.mulf %70, %73 : vector<48x512xf32>
    %75 = vector.extract_strided_slice %14 {offsets = [6, 0, 0], sizes = [1, 48, 1], strides = [1, 1, 1]} : vector<9x48x1xf32> to vector<1x48x1xf32>
    %76 = vector.shape_cast %75 : vector<1x48x1xf32> to vector<48x1xf32>
    %77 = vector.broadcast %76 : vector<48x1xf32> to vector<48x512xf32>
    %78 = arith.mulf %74, %77 : vector<48x512xf32>
    %79 = arith.addf %69, %78 : vector<48x512xf32>
    %c496_i32 = arith.constant 496 : i32
    %80 = tpu.dynamic_rotate %13 by %c496_i32 dim 1 : vector<48x512xf32>, i32 -> vector<48x512xf32>
    %81 = vector.extract_strided_slice %15 {offsets = [7, 0, 0], sizes = [1, 1, 512], strides = [1, 1, 1]} : vector<9x1x512xf32> to vector<1x1x512xf32>
    %82 = vector.shape_cast %81 : vector<1x1x512xf32> to vector<1x512xf32>
    %83 = vector.broadcast %82 : vector<1x512xf32> to vector<48x512xf32>
    %84 = arith.mulf %80, %83 : vector<48x512xf32>
    %85 = vector.extract_strided_slice %14 {offsets = [7, 0, 0], sizes = [1, 48, 1], strides = [1, 1, 1]} : vector<9x48x1xf32> to vector<1x48x1xf32>
    %86 = vector.shape_cast %85 : vector<1x48x1xf32> to vector<48x1xf32>
    %87 = vector.broadcast %86 : vector<48x1xf32> to vector<48x512xf32>
    %88 = arith.mulf %84, %87 : vector<48x512xf32>
    %89 = arith.addf %79, %88 : vector<48x512xf32>
    %c495_i32 = arith.constant 495 : i32
    %90 = tpu.dynamic_rotate %13 by %c495_i32 dim 1 : vector<48x512xf32>, i32 -> vector<48x512xf32>
    %91 = vector.extract_strided_slice %15 {offsets = [8, 0, 0], sizes = [1, 1, 512], strides = [1, 1, 1]} : vector<9x1x512xf32> to vector<1x1x512xf32>
    %92 = vector.shape_cast %91 : vector<1x1x512xf32> to vector<1x512xf32>
    %93 = vector.broadcast %92 : vector<1x512xf32> to vector<48x512xf32>
    %94 = arith.mulf %90, %93 : vector<48x512xf32>
    %95 = vector.extract_strided_slice %14 {offsets = [8, 0, 0], sizes = [1, 48, 1], strides = [1, 1, 1]} : vector<9x48x1xf32> to vector<1x48x1xf32>
    %96 = vector.shape_cast %95 : vector<1x48x1xf32> to vector<48x1xf32>
    %97 = vector.broadcast %96 : vector<48x1xf32> to vector<48x512xf32>
    %98 = arith.mulf %94, %97 : vector<48x512xf32>
    %99 = arith.addf %89, %98 : vector<48x512xf32>
    %100 = vector.extract_strided_slice %1 {offsets = [0, 1], sizes = [48, 1], strides = [1, 1]} : vector<48x3xf32> to vector<48x1xf32>
    %101 = vector.broadcast %100 : vector<48x1xf32> to vector<48x512xf32>
    %102 = arith.addf %99, %101 : vector<48x512xf32>
    %cst_13 = arith.constant 0.000000e+00 : f32
    %103 = vector.broadcast %cst_13 : f32 to vector<48x512xf32>
    %104 = arith.subf %103, %102 : vector<48x512xf32>
    %105 = math.exp %104 : vector<48x512xf32>
    %cst_14 = arith.constant 1.000000e+00 : f32
    %106 = vector.broadcast %cst_14 : f32 to vector<48x512xf32>
    %107 = arith.addf %106, %105 : vector<48x512xf32>
    %108 = tpu.reciprocal %107 {approx = true} : vector<48x512xf32> -> vector<48x512xf32>
    %109 = arith.mulf %102, %108 : vector<48x512xf32>
    %c0_15 = arith.constant 0 : index
    %c0_16 = arith.constant 0 : index
    %110 = vector.load %arg3[%c0_15, %c0_16] : memref<512x2xf32, #tpu.memory_space<vmem>>, vector<512x2xf32>
    %cst_17 = arith.constant dense<0.000000e+00> : vector<48x2xf32>
    %111 = tpu.matmul %109, %110, %cst_17 {dimension_numbers = #tpu.dot_dimension_numbers<[1], [0], [0], [1], [0, 0, 1, 1], [], []>} : vector<48x512xf32>, vector<512x2xf32>, vector<48x2xf32> -> vector<48x2xf32>
    %cst_18 = arith.constant 3.906250e-03 : f32
    %112 = vector.broadcast %cst_18 : f32 to vector<48x2xf32>
    %113 = arith.mulf %111, %112 : vector<48x2xf32>
    %c0_19 = arith.constant 0 : index
    %c0_20 = arith.constant 0 : index
    %114 = vector.load %arg8[%c0_19, %c0_20] : memref<2x48xf32, #tpu.memory_space<vmem>>, vector<2x48xf32>
    %cst_21 = arith.constant dense<0.000000e+00> : vector<2x2xf32>
    %115 = tpu.matmul %114, %113, %cst_21 {dimension_numbers = #tpu.dot_dimension_numbers<[1], [0], [0], [1], [0, 0, 1, 1], [], []>} : vector<2x48xf32>, vector<48x2xf32>, vector<2x2xf32> -> vector<2x2xf32>
    %c0_22 = arith.constant 0 : index
    %c0_23 = arith.constant 0 : index
    %116 = vector.load %arg9[%c0_22, %c0_23] : memref<2x1xf32, #tpu.memory_space<vmem>>, vector<2x1xf32>
    %117 = vector.broadcast %116 : vector<2x1xf32> to vector<2x2xf32>
    %118 = arith.addf %115, %117 : vector<2x2xf32>
    %cst_24 = arith.constant 0.000000e+00 : f32
    %119 = vector.broadcast %cst_24 : f32 to vector<2x2xf32>
    %120 = arith.subf %119, %118 : vector<2x2xf32>
    %121 = math.exp %120 : vector<2x2xf32>
    %cst_25 = arith.constant 1.000000e+00 : f32
    %122 = vector.broadcast %cst_25 : f32 to vector<2x2xf32>
    %123 = arith.addf %122, %121 : vector<2x2xf32>
    %124 = tpu.reciprocal %123 {approx = true} : vector<2x2xf32> -> vector<2x2xf32>
    %125 = arith.mulf %118, %124 : vector<2x2xf32>
    %c0_26 = arith.constant 0 : index
    %c0_27 = arith.constant 0 : index
    %126 = vector.load %arg10[%c0_26, %c0_27] : memref<48x2xf32, #tpu.memory_space<vmem>>, vector<48x2xf32>
    %cst_28 = arith.constant dense<0.000000e+00> : vector<48x2xf32>
    %127 = tpu.matmul %126, %125, %cst_28 {dimension_numbers = #tpu.dot_dimension_numbers<[1], [0], [0], [1], [0, 0, 1, 1], [], []>} : vector<48x2xf32>, vector<2x2xf32>, vector<48x2xf32> -> vector<48x2xf32>
    %c0_29 = arith.constant 0 : index
    %c0_30 = arith.constant 0 : index
    %128 = vector.load %arg11[%c0_29, %c0_30] : memref<48x1xf32, #tpu.memory_space<vmem>>, vector<48x1xf32>
    %129 = vector.broadcast %128 : vector<48x1xf32> to vector<48x2xf32>
    %130 = arith.addf %127, %129 : vector<48x2xf32>
    %cst_31 = arith.constant 0.000000e+00 : f32
    %131 = vector.broadcast %cst_31 : f32 to vector<48x2xf32>
    %132 = arith.subf %131, %130 : vector<48x2xf32>
    %133 = math.exp %132 : vector<48x2xf32>
    %cst_32 = arith.constant 1.000000e+00 : f32
    %134 = vector.broadcast %cst_32 : f32 to vector<48x2xf32>
    %135 = arith.addf %134, %133 : vector<48x2xf32>
    %136 = tpu.reciprocal %135 {approx = true} : vector<48x2xf32> -> vector<48x2xf32>
    %c0_33 = arith.constant 0 : index
    %c0_34 = arith.constant 0 : index
    %137 = vector.load %arg2[%c0_33, %c0_34] : memref<2x512xf32, #tpu.memory_space<vmem>>, vector<2x512xf32>
    %cst_35 = arith.constant dense<0.000000e+00> : vector<48x512xf32>
    %138 = tpu.matmul %136, %137, %cst_35 {dimension_numbers = #tpu.dot_dimension_numbers<[1], [0], [0], [1], [0, 0, 1, 1], [], []>} : vector<48x2xf32>, vector<2x512xf32>, vector<48x512xf32> -> vector<48x512xf32>
    %139 = arith.mulf %109, %138 : vector<48x512xf32>
    %c0_36 = arith.constant 0 : index
    %c0_37 = arith.constant 0 : index
    %140 = vector.load %arg12[%c0_36, %c0_37] : memref<8x48xf32, #tpu.memory_space<vmem>>, vector<8x48xf32>
    %cst_38 = arith.constant dense<0.000000e+00> : vector<8x512xf32>
    %141 = tpu.matmul %140, %139, %cst_38 {dimension_numbers = #tpu.dot_dimension_numbers<[1], [0], [0], [1], [0, 0, 1, 1], [], []>} : vector<8x48xf32>, vector<48x512xf32>, vector<8x512xf32> -> vector<8x512xf32>
    %142 = vector.extract_strided_slice %1 {offsets = [0, 2], sizes = [8, 1], strides = [1, 1]} : vector<48x3xf32> to vector<8x1xf32>
    %143 = vector.broadcast %142 : vector<8x1xf32> to vector<8x512xf32>
    %144 = arith.addf %141, %143 : vector<8x512xf32>
    %145 = arith.addf %144, %0 : vector<8x512xf32>
    %c0_39 = arith.constant 0 : index
    %c0_40 = arith.constant 0 : index
    %146 = vector.load %arg13[%c0_39, %c0_40] : memref<8x512xf32, #tpu.memory_space<vmem>>, vector<8x512xf32>
    tpu.vector_store %arg13[%c0_39, %c0_40], %145 {strides = array<i32>} : memref<8x512xf32, #tpu.memory_space<vmem>>, vector<8x512xf32>,
    return
  }
  func.func @transform_0(%arg0: i32) -> (i32, i32) {
    %c0_i32 = arith.constant 0 : i32
    %c0_i32_0 = arith.constant 0 : i32
    return %c0_i32, %arg0 : i32, i32
  }
  func.func @transform_1(%arg0: i32) -> (i32, i32) {
    %c0_i32 = arith.constant 0 : i32
    %c0_i32_0 = arith.constant 0 : i32
    %c0_i32_1 = arith.constant 0 : i32
    return %c0_i32, %c0_i32_0 : i32, i32
  }
  func.func @transform_2(%arg0: i32) -> (i32, i32) {
    %c0_i32 = arith.constant 0 : i32
    %c0_i32_0 = arith.constant 0 : i32
    %c0_i32_1 = arith.constant 0 : i32
    return %c0_i32, %c0_i32_0 : i32, i32
  }
  func.func @transform_3(%arg0: i32) -> (i32, i32) {
    %c0_i32 = arith.constant 0 : i32
    %c0_i32_0 = arith.constant 0 : i32
    %c0_i32_1 = arith.constant 0 : i32
    return %c0_i32, %c0_i32_0 : i32, i32
  }
  func.func @transform_4(%arg0: i32) -> (i32, i32, i32) {
    %c0_i32 = arith.constant 0 : i32
    %c0_i32_0 = arith.constant 0 : i32
    %c0_i32_1 = arith.constant 0 : i32
    %c0_i32_2 = arith.constant 0 : i32
    return %c0_i32, %c0_i32_0, %c0_i32_1 : i32, i32, i32
  }
  func.func @transform_5(%arg0: i32) -> (i32, i32, i32) {
    %c0_i32 = arith.constant 0 : i32
    %c0_i32_0 = arith.constant 0 : i32
    %c0_i32_1 = arith.constant 0 : i32
    %c0_i32_2 = arith.constant 0 : i32
    return %c0_i32, %c0_i32_0, %c0_i32_1 : i32, i32, i32
  }
  func.func @transform_6(%arg0: i32) -> (i32, i32) {
    %c0_i32 = arith.constant 0 : i32
    %c0_i32_0 = arith.constant 0 : i32
    %c0_i32_1 = arith.constant 0 : i32
    return %c0_i32, %c0_i32_0 : i32, i32
  }
  func.func @transform_7(%arg0: i32) -> (i32, i32) {
    %c0_i32 = arith.constant 0 : i32
    %c0_i32_0 = arith.constant 0 : i32
    %c0_i32_1 = arith.constant 0 : i32
    return %c0_i32, %c0_i32_0 : i32, i32
  }
  func.func @transform_8(%arg0: i32) -> (i32, i32) {
    %c0_i32 = arith.constant 0 : i32
    %c0_i32_0 = arith.constant 0 : i32
    %c0_i32_1 = arith.constant 0 : i32
    return %c0_i32, %c0_i32_0 : i32, i32
  }
  func.func @transform_9(%arg0: i32) -> (i32, i32) {
    %c0_i32 = arith.constant 0 : i32
    %c0_i32_0 = arith.constant 0 : i32
    %c0_i32_1 = arith.constant 0 : i32
    return %c0_i32, %c0_i32_0 : i32, i32
  }
  func.func @transform_10(%arg0: i32) -> (i32, i32) {
    %c0_i32 = arith.constant 0 : i32
    %c0_i32_0 = arith.constant 0 : i32
    %c0_i32_1 = arith.constant 0 : i32
    return %c0_i32, %c0_i32_0 : i32, i32
  }
  func.func @transform_11(%arg0: i32) -> (i32, i32) {
    %c0_i32 = arith.constant 0 : i32
    %c0_i32_0 = arith.constant 0 : i32
    %c0_i32_1 = arith.constant 0 : i32
    return %c0_i32, %c0_i32_0 : i32, i32
  }
  func.func @transform_12(%arg0: i32) -> (i32, i32) {
    %c0_i32 = arith.constant 0 : i32
    %c0_i32_0 = arith.constant 0 : i32
    return %c0_i32, %arg0 : i32, i32
  }
}

</mosaic_0001>

<bundles_post_ra>
// kernel: _lambda_.1
= control target key start
LH: loop header
LB: loop body
LE: loop exit
PB: predicated region body
PF: predicated region fallthrough
CT: control target
= control target key end

     0   :  { %s4272_s21 = smov 0   ;;  %s7395_s0 = inlined_call_operand.vmem [shape: f32[8,1024], index: 0, kind: input, shape index: {}]   ;;  %s7396_s1 = inlined_call_operand.vmem [shape: f32[2,512], index: 1, kind: input, shape index: {}]   ;;  %s7397_s2 = inlined_call_operand.vmem [shape: f32[512,2], index: 2, kind: input, shape index: {}]   ;;  %s7398_s3 = inlined_call_operand.vmem [shape: f32[48,8], index: 3, kind: input, shape index: {}]   ;;  %s7399_s4 = inlined_call_operand.vmem [shape: f32[9,48,1], index: 4, kind: input, shape index: {}]   ;;  %s7400_s5 = inlined_call_operand.vmem [shape: f32[9,1,512], index: 5, kind: input, shape index: {}]   ;;  %s7401_s6 = inlined_call_operand.vmem [shape: f32[48,3], index: 6, kind: input, shape index: {}]   ;;  %s7402_s7 = inlined_call_operand.vmem [shape: f32[2,48], index: 7, kind: input, shape index: {}]   ;;  %s7403_s8 = inlined_call_operand.vmem [shape: f32[2,1], index: 8, kind: input, shape index: {}]   ;;  %s7404_s9 = inlined_call_operand.vmem [shape: f32[48,2], index: 9, kind: input, shape index: {}]   ;;  %s7405_s10 = inlined_call_operand.vmem [shape: f32[48,1], index: 10, kind: input, shape index: {}]   ;;  %s7406_s11 = inlined_call_operand.vmem [shape: f32[8,48], index: 11, kind: input, shape index: {}]   ;;  %s7407_s12 = inlined_call_operand.vmem [shape: f32[8,1024], index: 12, kind: output, shape index: {}]  }
   0x1 LB: > { %s3728_s22 = sadd.s32 4294967295, %s4191_s21   ;;  %p3732_p0 = scmp.ge.s32.totalorder %s4191_s21, 1  ;;  %s4191_s21 = sphi %s4272_s21, %s22_s21  }
   0x2   : > { %p363_p1 = scmp.lt.s32.totalorder %s4191_s21, 3 }
   0x4   : > { %p364_p2 = pnand %p3732_p0, %p363_p1 }
   0x6   : > { %367 = sbr.rel (%p364_p2) target bundleno = 1978 (0x7ba), region = 68 }
   0xb   : > { %s3733_s23 = sshll.u32 %s3728_s22, 2  ;;  %v421_v0 = vld [vmem:[%s7401_s6] sm:$0xff]  ;;  %v7408_v1 = vmov 0.0   ;;  %v7410_v2 = vmov 0   ;;  %v422_v3 = vld [vmem:[%s7401_s6 + $0x8] sm:$0xff]  ;;  %vm463_vm0 = vcmask 64512  }
   0xc   : > { %p406_p3 = scmp.lt.s32.totalorder %s3733_s23, 7  ;;  %546 = vmatprep.mubr.f32.mxu0 %v7408_v1  ;;  %647 = vmatprep.mubr.f32.mxu1 %v7408_v1  ;;  %v427_v4 = vld [vmem:[%s7398_s3] sm:$0xff]  ;;  %v423_v10 = vld [vmem:[%s7401_s6 + $0x10] sm:$0xff]  ;;  %v428_v11 = vld [vmem:[%s7398_s3 + $0x8] sm:$0xff]  ;;  %s7477_s26 = smov 15   ;;  %vm4204_vm9 = vmmov 0  }
   0xd   : > { %3941 = vset.pattern.permute.xlu0 %v7410_v2  ;;  %3942 = vset.pattern.permute.xlu1 %v7410_v2  ;;  %v425_v9 = vld [vmem:[%s7401_s6 + $0x20] sm:$0xff]  ;;  %v424_v13 = vld [vmem:[%s7401_s6 + $0x18] sm:$0xff]  ;;  %v429_v14 = vld [vmem:[%s7398_s3 + $0x10] sm:$0xff]  ;;  %s4196_s27 = smov 17   ;;  %s4197_s29 = smov 1   ;;  %vm2973_vm10 = vcmask 392192  }
   0xe   : > { %s8100_s23 = smov (!%p406_p3, %s3733_s23), 7  ;;  %435 = vperm.xlu0 %3941, %v421_v0   ;;  %445 = vperm.xlu1 %3942, %v423_v10   ;;  %v828_v12 = vld [vmem:[%s7399_s4] sm:$0xff]  ;;  %v426_v16 = vld [vmem:[%s7401_s6 + $0x28] sm:$0xff]  ;;  %v430_v17 = vld [vmem:[%s7398_s3 + $0x18] sm:$0xff]  ;;  %s4198_s30 = smov 16   ;;  %vm3095_vm11 = vcmask 15360  }
   0xf   : > { %s7476_s28 = sshll.u32 %s8100_s23, 3  ;;  %v840_v15 = vld [vmem:[%s7399_s4 + $0x60] sm:$0xff]  ;;  %v835_v18 = vld [vmem:[%s7399_s4 + $0x38] sm:$0xff]  ;;  %v834_v19 = vld [vmem:[%s7399_s4 + $0x30] sm:$0xff]  ;;  %s4199_s14 = smov 113   ;;  %vm3114_vm12 = vcmask 1041408  }
  0x10   : > { %s4298_s13 = scalar_lea.vmem %s7395_s0, %s7476_s28  ;;  %v431_v20 = vld [vmem:[%s7398_s3 + $0x20] sm:$0xff]  ;;  %v841_v21 = vld [vmem:[%s7399_s4 + $0x68] sm:$0xff]  ;;  %v830_v24 = vld [vmem:[%s7399_s4 + $0x10] sm:$0xff]  ;;  %s4200_s15 = smov 127  }
  0x11   : > { %v418_v5 = vld [vmem:[%s4298_s13 + $0x8] sm:$0xff]  ;;  %v420_v6 = vld [vmem:[%s4298_s13 + $0x18] sm:$0xff]  ;;  %v417_v7 = vld [vmem:[%s4298_s13] sm:$0xff]  ;;  %s4201_s16 = smov 112   ;;  %s4202_s17 = smov 111  }
  0x12   : > { %440 = vperm.xlu0 %3941, %v422_v3   ;;  %512 = vmatprep.subr.mxu0 %v418_v5  ;;  %v419_v8 = vld [vmem:[%s4298_s13 + $0x10] sm:$0xff]  ;;  %v829_v22 = vld [vmem:[%s7399_s4 + $0x8] sm:$0xff]  ;;  %v847_v26 = vld [vmem:[%s7399_s4 + $0x98] sm:$0xff]  ;;  %s7797_s18 = smov 15  }
  0x13   : > { %613 = vmatprep.subr.mxu1 %v420_v6  ;;  %513 = vmatpush1.msra.mxu0 %v417_v7  ;;  %v432_v23 = vld [vmem:[%s7398_s3 + $0x28] sm:$0xff]  ;;  %v846_v25 = vld [vmem:[%s7399_s4 + $0x90] sm:$0xff]  ;;  %v852_v27 = vld [vmem:[%s7399_s4 + $0xc0] sm:$0xff] }
  0x14   : > { %614 = vmatpush1.msra.mxu1 %v419_v8  ;;  %3737 = vmatmul.mubr.msk.f32.vlgmr.msra.gmra.mxu0 %vm463_vm0, %v427_v4  ;;  %v842_v28 = vld [vmem:[%s7399_s4 + $0x70] sm:$0xff]  ;;  %v836_v29 = vld [vmem:[%s7399_s4 + $0x40] sm:$0xff]  ;;  %v837_v32 = vld [vmem:[%s7399_s4 + $0x48] sm:$0xff] }
  0x15   : > { %3743 = vmatmul.mubr.msk.f32.vlgmr.msra.gmra.mxu1 %vm463_vm0, %v427_v4  ;;  %552 = vmatprep.mubr.f32.mxu0 %v7408_v1  ;;  %v864_v30 = vld [vmem:[%s7399_s4 + $0x120] sm:$0xff]  ;;  %v858_v31 = vld [vmem:[%s7399_s4 + $0xf0] sm:$0xff]  ;;  %v853_v33 = vld [vmem:[%s7399_s4 + $0xc8] sm:$0xff] }
  0x16   : > { %653 = vmatprep.mubr.f32.mxu1 %v7408_v1  ;;  %455 = vperm.xlu0 %3941, %v425_v9   ;;  %v859_v34 = vld [vmem:[%s7399_s4 + $0xf8] sm:$0xff]  ;;  %v848_v37 = vld [vmem:[%s7399_s4 + $0xa0] sm:$0xff]  ;;  %v865_v38 = vld [vmem:[%s7399_s4 + $0x128] sm:$0xff] }
  0x17   : > { %450 = vperm.xlu1 %3942, %v424_v13   ;;  %v831_v35 = vld [vmem:[%s7399_s4 + $0x18] sm:$0xff]  ;;  %v870_v39 = vld [vmem:[%s7399_s4 + $0x150] sm:$0xff]  ;;  %v832_v40 = vld [vmem:[%s7399_s4 + $0x20] sm:$0xff] }
  0x18   : > { %3738 = vmatmul.mubr.msk.f32.gmra.mxu0 %vm463_vm0, %v428_v11  ;;  %v843_v36 = vld [vmem:[%s7399_s4 + $0x78] sm:$0xff]  ;;  %v854_v41 = vld [vmem:[%s7399_s4 + $0xd0] sm:$0xff]  ;;  %v849_v42 = vld [vmem:[%s7399_s4 + $0xa8] sm:$0xff] }
  0x19   : > { %3744 = vmatmul.mubr.msk.f32.gmra.mxu1 %vm463_vm0, %v428_v11  ;;  %558 = vmatprep.mubr.f32.mxu0 %v7408_v1  ;;  %v876_v43 = vld [vmem:[%s7399_s4 + $0x180] sm:$0xff]  ;;  %v871_v44 = vld [vmem:[%s7399_s4 + $0x158] sm:$0xff]  ;;  %v838_v45 = vld [vmem:[%s7399_s4 + $0x50] sm:$0xff] }
  0x1a   : > { %659 = vmatprep.mubr.f32.mxu1 %v7408_v1  ;;  %1012 = vperm.xlu0 %3941, %v828_v12   ;;  %v860_v46 = vld [vmem:[%s7399_s4 + $0x100] sm:$0xff] }
  0x1b   : > { %460 = vperm.xlu1 %3942, %v426_v16   ;;  %v844_v47 = vld [vmem:[%s7399_s4 + $0x80] sm:$0xff] }
  0x1c   : > { %3739 = vmatmul.mubr.msk.f32.gmra.mxu0 %vm463_vm0, %v429_v14 }
  0x1d   : > { %3745 = vmatmul.mubr.msk.f32.gmra.mxu1 %vm463_vm0, %v429_v14  ;;  %564 = vmatprep.mubr.f32.mxu0 %v7408_v1 }
  0x1e   : > { %665 = vmatprep.mubr.f32.mxu1 %v7408_v1  ;;  %1380 = vperm.xlu0 %3941, %v840_v15  }
  0x1f   : > { %1184 = vperm.xlu1 %3942, %v834_v19  }
  0x20   : > { %3740 = vmatmul.mubr.msk.f32.gmra.mxu0 %vm463_vm0, %v430_v17 }
  0x21   : > { %3746 = vmatmul.mubr.msk.f32.gmra.mxu1 %vm463_vm0, %v430_v17  ;;  %570 = vmatprep.mubr.f32.mxu0 %v7408_v1 }
  0x22   : > { %671 = vmatprep.mubr.f32.mxu1 %v7408_v1  ;;  %1189 = vperm.xlu0 %3941, %v835_v18  }
  0x23   : > { %1017 = vperm.xlu1 %3942, %v829_v22  }
  0x24   : > { %3741 = vmatmul.mubr.msk.f32.gmra.mxu0 %vm463_vm0, %v431_v20 }
  0x25   : > { %3747 = vmatmul.mubr.msk.f32.gmra.mxu1 %vm463_vm0, %v431_v20  ;;  %576 = vmatprep.mubr.f32.mxu0 %v7408_v1 }
  0x26   : > { %677 = vmatprep.mubr.f32.mxu1 %v7408_v1  ;;  %1385 = vperm.xlu0 %3941, %v841_v21  }
  0x27   : > { %1576 = vperm.xlu1 %3942, %v846_v25  }
  0x28   : > { %3742 = vmatmul.mubr.msk.f32.gmra.mxu0 %vm463_vm0, %v432_v23 }
  0x29   : > { %3748 = vmatmul.mubr.msk.f32.gmra.mxu1 %vm463_vm0, %v432_v23 }
  0x2a   : > { %1022 = vperm.xlu0 %3941, %v830_v24  }
  0x2b   : > { %1654 = vperm.xlu1 %3942, %v852_v27  }
  0x2e   : > { %1581 = vperm.xlu0 %3941, %v847_v26  }
  0x2f   : > { %1194 = vperm.xlu1 %3942, %v836_v29  }
  0x32   : > { %1390 = vperm.xlu0 %3941, %v842_v28  }
  0x33   : > { %1850 = vperm.xlu1 %3942, %v858_v31  }
  0x36   : > { %2046 = vperm.xlu0 %3941, %v864_v30  }
  0x37   : > { %1659 = vperm.xlu1 %3942, %v853_v33  }
  0x3a   : > { %1199 = vperm.xlu0 %3941, %v837_v32  }
  0x3b   : > { %1027 = vperm.xlu1 %3942, %v831_v35  }
  0x3e   : > { %1855 = vperm.xlu0 %3941, %v859_v34  }
  0x3f   : > { %1586 = vperm.xlu1 %3942, %v848_v37  }
  0x42   : > { %1395 = vperm.xlu0 %3941, %v843_v36  }
  0x43   : > { %2242 = vperm.xlu1 %3942, %v870_v39  }
  0x46   : > { %2051 = vperm.xlu0 %3941, %v865_v38  }
  0x47   : > { %1664 = vperm.xlu1 %3942, %v854_v41  }
  0x4a   : > { %1032 = vperm.xlu0 %3941, %v832_v40  }
  0x4b   : > { %2438 = vperm.xlu1 %3942, %v876_v43  }
  0x4e   : > { %1591 = vperm.xlu0 %3941, %v849_v42  }
  0x4f   : > { %1204 = vperm.xlu1 %3942, %v838_v45  }
  0x52   : > { %2247 = vperm.xlu0 %3941, %v871_v44  }
  0x53   : > { %1860 = vperm.xlu1 %3942, %v860_v46  }
  0x57   : > { %1400 = vperm.xlu1 %3942, %v844_v47  }
  0x89   : > { %v436_v48 = vpop.permute.xlu0 %435  ;;  %v4465_v15 = vpop.permute.xlu1 %445 }
  0x8d   : > { %v441_v17 = vpop.permute.xlu0 %440 }
  0x91   : > { %v4482_v24 = vpop.permute.xlu0 %455 }
  0x92   : > { %v4473_v20 = vpop.permute.xlu1 %450 }
  0x95   : > { %v4499_v33 = vpop.permute.xlu0 %1012 }
  0x96   : > { %v4493_v31 = vpop.permute.xlu1 %460 }
  0x99   : > { %v4514_v41 = vpop.permute.xlu0 %1380 }
  0x9a   : > { %v4507_v38 = vpop.permute.xlu1 %1184 }
  0x9d   : > { %v4526_v44 = vpop.permute.xlu0 %1189 }
  0x9e   : > { %v4520_v43 = vpop.permute.xlu1 %1017  ;;  %7645 = vst [vmem:[#allocation3_spill] sm:$0xff] %v4526_v44 }
  0x9f   : > { %7644 = vst [vmem:[#allocation2_spill] sm:$0xff] %v4520_v43 }
  0xa2   : > { %v4528_v46 = vpop.permute.xlu1 %1576 }
  0xd4   : > { %v548_v49 = vpop.f32.mrf.mxu0 }
  0xd5   : > { %v649_v50 = vpop.f32.mrf.mxu1  ;;  %v549_v51 = vadd.f32 %v548_v49, %v436_v48  ;;  %v4534_v49 = vpop.permute.xlu0 %1385 }
  0xd6   : > { %v650_v52 = vadd.f32 %v649_v50, %v436_v48  ;;  %v550_v57 = vpop.f32.mrf.mxu0  ;;  %7646 = vst [vmem:[#allocation4_spill] sm:$0xff] %v4534_v49 }
  0xd7   : > { %v684_v53 = vsub.f32 0.0, %v549_v51  ;;  %v551_v58 = vadd.f32 %v550_v57, %v436_v48  ;;  %v651_v59 = vpop.f32.mrf.mxu1 }
  0xd8   : > { %v686_v54 = vsub.f32 0.0, %v650_v52  ;;  %v4446_v61 = vadd.f32 %v651_v59, %v436_v48  ;;  %v554_v16 = vpop.f32.mrf.mxu0 }
  0xd9   : > { %v708_v55 = vmul.f32 1.442695, %v684_v53  ;;  %v685_v60 = vsub.f32 0.0, %v551_v58  ;;  %v4471_v18 = vadd.f32 %v554_v16, %v441_v17  ;;  %v655_v19 = vpop.f32.mrf.mxu1  ;;  %v4546_v53 = vpop.permute.xlu0 %1022 }
  0xda   : > { %v712_v56 = vmul.f32 1.442695, %v686_v54  ;;  %v687_v4 = vsub.f32 0.0, %v4446_v61  ;;  %v4480_v22 = vadd.f32 %v655_v19, %v441_v17  ;;  %v556_v25 = vpop.f32.mrf.mxu0  ;;  %7647 = vst [vmem:[#allocation5_spill] sm:$0xff] %v4546_v53 }
  0xdb   : > { %3954 = vpow2.f32 %v708_v55  ;;  %v710_v63 = vmul.f32 1.442695, %v685_v60  ;;  %v688_v21 = vsub.f32 0.0, %v4471_v18  ;;  %v4491_v29 = vadd.f32 %v556_v25, %v441_v17  ;;  %v657_v30 = vpop.f32.mrf.mxu1 }
  0xdc   : > { %3956 = vpow2.f32 %v712_v56  ;;  %v714_v6 = vmul.f32 1.442695, %v687_v4  ;;  %v690_v28 = vsub.f32 0.0, %v4480_v22  ;;  %v4501_v34 = vadd.f32 %v657_v30, %v441_v17 }
  0xdd   : > { %v716_v27 = vmul.f32 1.442695, %v688_v21  ;;  %v689_v37 = vsub.f32 0.0, %v4491_v29 }
  0xde   : > { %v720_v36 = vmul.f32 1.442695, %v690_v28  ;;  %v691_v40 = vsub.f32 0.0, %v4501_v34 }
  0xdf   : > { %v718_v39 = vmul.f32 1.442695, %v689_v37 }
  0xe0   : > { %v722_v42 = vmul.f32 1.442695, %v691_v40 }
  0xe8   : > { %v3955_v62 = vpop.eup %3954 }
  0xe9   : > { %v3957_v0 = vpop.eup %3956  ;;  %v756_v3 = vadd.f32 1.0, %v3955_v62  ;;  %v560_v62 = vpop.f32.mrf.mxu0 }
  0xea   : > { %v758_v5 = vadd.f32 1.0, %v3957_v0  ;;  %v4572_v0 = vadd.f32 %v560_v62, %v4465_v15 }
  0xeb   : > { %3958 = vrcp.f32 %v756_v3  ;;  %v562_v25 = vpop.f32.mrf.mxu0 }
  0xec   : > { %3960 = vpow2.f32 %v710_v63 }
  0xed   : > { %3962 = vrcp.f32 %v758_v5  ;;  %v661_v5 = vpop.f32.mrf.mxu1 }
  0xee   : > { %3964 = vpow2.f32 %v714_v6 }
  0xf8   : > { %v3959_v7 = vpop.eup %3958 }
  0xf9   : > { %v3961_v8 = vpop.eup %3960  ;;  %v4449_v9 = vmul.f32 %v3959_v7, %v549_v51  ;;  %v4540_v51 = vpop.permute.xlu1 %1654  ;;  %v692_v7 = vsub.f32 0.0, %v4572_v0 }
  0xfa   : > { %v3963_v10 = vpop.eup %3962  ;;  %v757_v12 = vadd.f32 1.0, %v3961_v8  ;;  %v4585_v8 = vadd.f32 %v661_v5, %v4465_v15 }
  0xfb   : > { %1260 = vrot.lane.b32.xlu1 %v4449_v9, %s7477_s26  ;;  %890 = vrot.lane.b32.xlu0 %v4449_v9, %s4196_s27  ;;  %v4455_v11 = vmul.f32 %v3963_v10, %v650_v52  ;;  %v3965_v13 = vpop.eup %3964  ;;  %v724_v16 = vmul.f32 1.442695, %v692_v7 }
  0xfc   : > { %3966 = vrcp.f32 %v757_v12  ;;  %v759_v14 = vadd.f32 1.0, %v3965_v13  ;;  %v694_v17 = vsub.f32 0.0, %v4585_v8 }
  0xfd   : > { %v4548_v56 = vpop.permute.xlu1 %1194 }
  0xfe   : > { %3968 = vrcp.f32 %v759_v14  ;;  %7648 = vst [vmem:[#allocation6_spill] sm:$0xff] %v4548_v56 }
  0xff   : > { %1284 = vrot.lane.b32.xlu1 %v4455_v11, %s7477_s26  ;;  %914 = vrot.lane.b32.xlu0 %v4455_v11, %s4196_s27  ;;  %3970 = vpow2.f32 %v716_v27  ;;  %v4615_v27 = vadd.f32 %v562_v25, %v4465_v15 }
 0x100   : > { %3972 = vpow2.f32 %v720_v36 }
 0x101   : > { %3974 = vpow2.f32 %v718_v39  ;;  %v4560_v59 = vpop.permute.xlu1 %1850 }
 0x102   : > { %3976 = vpow2.f32 %v722_v42  ;;  %7650 = vst [vmem:[#allocation8_spill] sm:$0xff] %v4560_v59 }
 0x103   : > { %1456 = vrot.lane.b32.xlu1 %v4449_v9, %s4197_s29  ;;  %1064 = vrot.lane.b32.xlu0 %v4449_v9, %s4198_s30 }
 0x105   : > { %v4574_v4 = vpop.permute.xlu1 %1659 }
 0x107   : > { %1480 = vrot.lane.b32.xlu1 %v4455_v11, %s4197_s29  ;;  %1088 = vrot.lane.b32.xlu0 %v4455_v11, %s4198_s30 }
 0x109   : > { %v3967_v23 = vpop.eup %3966  ;;  %v4589_v13 = vpop.permute.xlu1 %1027 }
 0x10a   : > { %v4488_v26 = vmul.f32 %v3967_v23, %v551_v58  ;;  %v4554_v58 = vpop.permute.xlu0 %1581  ;;  %7653 = vst [vmem:[#allocation11_spill] sm:$0xff] %v4589_v13 }
 0x10b   : > { %1926 = vrot.lane.b32.xlu1 %v4449_v9, %s4199_s14  ;;  %1730 = vrot.lane.b32.xlu0 %v4449_v9, %s4200_s15  ;;  %v3969_v32 = vpop.eup %3968  ;;  %7649 = vst [vmem:[#allocation7_spill] sm:$0xff] %v4554_v58 }
 0x10c   : > { %v4504_v35 = vmul.f32 %v3969_v32, %v4446_v61  ;;  %v3971_v45 = vpop.eup %3970 }
 0x10d   : > { %v760_v47 = vadd.f32 1.0, %v3971_v45  ;;  %v3973_v48 = vpop.eup %3972  ;;  %v4608_v23 = vpop.permute.xlu1 %1586 }
 0x10e   : > { %v762_v50 = vadd.f32 1.0, %v3973_v48  ;;  %v3975_v52 = vpop.eup %3974  ;;  %v4566_v61 = vpop.permute.xlu0 %1390  ;;  %7655 = vst [vmem:[#allocation13_spill] sm:$0xff] %v4608_v23 }
 0x10f   : > { %1950 = vrot.lane.b32.xlu1 %v4455_v11, %s4199_s14  ;;  %1754 = vrot.lane.b32.xlu0 %v4455_v11, %s4200_s15  ;;  %3978 = vrcp.f32 %v760_v47  ;;  %v761_v54 = vadd.f32 1.0, %v3975_v52  ;;  %v3977_v55 = vpop.eup %3976  ;;  %7651 = vst [vmem:[#allocation9_spill] sm:$0xff] %v4566_v61  ;;  %v566_v45 = vpop.f32.mrf.mxu0 }
 0x110   : > { %3980 = vrcp.f32 %v762_v50  ;;  %v763_v57 = vadd.f32 1.0, %v3977_v55  ;;  %v4651_v55 = vadd.f32 %v566_v45, %v4473_v20 }
 0x111   : > { %3982 = vrcp.f32 %v761_v54  ;;  %v4619_v30 = vpop.permute.xlu1 %2242 }
 0x112   : > { %3984 = vrcp.f32 %v763_v57  ;;  %v4587_v12 = vpop.permute.xlu0 %2046  ;;  %7657 = vst [vmem:[#allocation15_spill] sm:$0xff] %v4619_v30  ;;  %v568_v57 = vpop.f32.mrf.mxu0  ;;  %v696_v7 = vsub.f32 0.0, %v4651_v55 }
 0x113   : > { %2122 = vrot.lane.b32.xlu1 %v4449_v9, %s4201_s16  ;;  %1272 = vrot.lane.b32.xlu0 %v4488_v26, %s7477_s26  ;;  %7652 = vst [vmem:[#allocation10_spill] sm:$0xff] %v4587_v12  ;;  %3986 = vpow2.f32 %v724_v16  ;;  %v4654_v62 = vadd.f32 %v568_v57, %v4473_v20 }
 0x114   : > { %v732_v25 = vmul.f32 1.442695, %v696_v7 }
 0x115   : > { %v4636_v40 = vpop.permute.xlu1 %1664 }
 0x116   : > { %v4603_v19 = vpop.permute.xlu0 %1199  ;;  %7659 = vst [vmem:[#allocation17_spill] sm:$0xff] %v4636_v40 }
 0x117   : > { %2146 = vrot.lane.b32.xlu1 %v4455_v11, %s4201_s16  ;;  %1296 = vrot.lane.b32.xlu0 %v4504_v35, %s7477_s26  ;;  %7654 = vst [vmem:[#allocation12_spill] sm:$0xff] %v4603_v19 }
 0x119   : > { %v4644_v54 = vpop.permute.xlu1 %2438 }
 0x11a   : > { %v4617_v28 = vpop.permute.xlu0 %1855  ;;  %7661 = vst [vmem:[#allocation19_spill] sm:$0xff] %v4644_v54 }
 0x11b   : > { %2318 = vrot.lane.b32.xlu1 %v4449_v9, %s4202_s17  ;;  %1468 = vrot.lane.b32.xlu0 %v4488_v26, %s4197_s29  ;;  %7656 = vst [vmem:[#allocation14_spill] sm:$0xff] %v4617_v28 }
 0x11c   : > { %v3979_v60 = vpop.eup %3978 }
 0x11d   : > { %v4569_v63 = vmul.f32 %v3979_v60, %v4471_v18  ;;  %v3981_v3 = vpop.eup %3980 }
 0x11e   : > { %v4581_v6 = vmul.f32 %v3981_v3, %v4480_v22  ;;  %v3983_v10 = vpop.eup %3982  ;;  %v728_v22 = vmul.f32 1.442695, %v694_v17  ;;  %v4633_v36 = vpop.permute.xlu0 %1395  ;;  %v697_v17 = vsub.f32 0.0, %v4654_v62 }
 0x11f   : > { %2342 = vrot.lane.b32.xlu1 %v4455_v11, %s4202_s17  ;;  %1492 = vrot.lane.b32.xlu0 %v4504_v35, %s4197_s29  ;;  %v4596_v14 = vmul.f32 %v3983_v10, %v4491_v29  ;;  %v3985_v18 = vpop.eup %3984  ;;  %v663_v29 = vpop.f32.mrf.mxu1  ;;  %7658 = vst [vmem:[#allocation16_spill] sm:$0xff] %v4633_v36 }
 0x120   : > { %v4606_v21 = vmul.f32 %v3985_v18, %v4501_v34  ;;  %3988 = vpow2.f32 %v728_v22  ;;  %v4626_v32 = vadd.f32 %v663_v29, %v4465_v15  ;;  %v693_v34 = vsub.f32 0.0, %v4615_v27  ;;  %v3987_v42 = vpop.eup %3986  ;;  %v4670_v18 = vpop.permute.xlu1 %1204 }
 0x121   : > { %v764_v47 = vadd.f32 1.0, %v3987_v42  ;;  %v667_v52 = vpop.f32.mrf.mxu1  ;;  %7663 = vst [vmem:[#allocation21_spill] sm:$0xff] %v4670_v18 }
 0x122   : > { %v695_v37 = vsub.f32 0.0, %v4626_v32  ;;  %v726_v39 = vmul.f32 1.442695, %v693_v34  ;;  %v4642_v50 = vpop.permute.xlu0 %2051  ;;  %v4657_v3 = vadd.f32 %v667_v52, %v4473_v20 }
 0x123   : > { %902 = vrot.lane.b32.xlu1 %v4488_v26, %s4196_s27  ;;  %1938 = vrot.lane.b32.xlu0 %v4488_v26, %s4199_s14  ;;  %7660 = vst [vmem:[#allocation18_spill] sm:$0xff] %v4642_v50  ;;  %v669_v5 = vpop.f32.mrf.mxu1 }
 0x124   : > { %v730_v15 = vmul.f32 1.442695, %v695_v37  ;;  %3990 = vpow2.f32 %v726_v39  ;;  %v4665_v10 = vadd.f32 %v669_v5, %v4473_v20  ;;  %v698_v22 = vsub.f32 0.0, %v4657_v3  ;;  %v4680_v42 = vpop.permute.xlu1 %1860 }
 0x125   : > { %v734_v20 = vmul.f32 1.442695, %v697_v17  ;;  %7665 = vst [vmem:[#allocation23_spill] sm:$0xff] %v4680_v42 }
 0x126   : > { %3992 = vpow2.f32 %v730_v15  ;;  %v4667_v16 = vpop.permute.xlu0 %1032  ;;  %v699_v29 = vsub.f32 0.0, %v4665_v10  ;;  %v736_v39 = vmul.f32 1.442695, %v698_v22 }
 0x127   : > { %926 = vrot.lane.b32.xlu1 %v4504_v35, %s4196_s27  ;;  %1962 = vrot.lane.b32.xlu0 %v4504_v35, %s4199_s14  ;;  %3994 = vrcp.f32 %v764_v47  ;;  %7662 = vst [vmem:[#allocation20_spill] sm:$0xff] %v4667_v16 }
 0x128   : > { %v738_v15 = vmul.f32 1.442695, %v699_v29  ;;  %v4695_v5 = vpop.permute.xlu1 %1400 }
 0x129   : > { %7668 = vst [vmem:[#allocation26_spill] sm:$0xff] %v4695_v5 }
 0x12a   : > { %v4678_v37 = vpop.permute.xlu0 %1591 }
 0x12b   : > { %1076 = vrot.lane.b32.xlu1 %v4488_v26, %s4198_s30  ;;  %2134 = vrot.lane.b32.xlu0 %v4488_v26, %s4201_s16  ;;  %7664 = vst [vmem:[#allocation22_spill] sm:$0xff] %v4678_v37 }
 0x12d   : > { %v3989_v48 = vpop.eup %3988 }
 0x12e   : > { %v766_v60 = vadd.f32 1.0, %v3989_v48  ;;  %v4690_v52 = vpop.permute.xlu0 %2247 }
 0x12f   : > { %1100 = vrot.lane.b32.xlu1 %v4504_v35, %s4198_s30  ;;  %2158 = vrot.lane.b32.xlu0 %v4504_v35, %s4201_s16  ;;  %7666 = vst [vmem:[#allocation24_spill] sm:$0xff] %v4690_v52 }
 0x130   : > { %3996 = vrcp.f32 %v766_v60 }
 0x131   : > { %v3991_v34 = vpop.eup %3990  ;;  %3998 = vpow2.f32 %v732_v25 }
 0x132   : > { %v765_v47 = vadd.f32 1.0, %v3991_v34  ;;  %4000 = vpow2.f32 %v734_v20 }
 0x133   : > { %1742 = vrot.lane.b32.xlu1 %v4488_v26, %s4200_s15  ;;  %2330 = vrot.lane.b32.xlu0 %v4488_v26, %s4202_s17  ;;  %v3993_v45 = vpop.eup %3992  ;;  %4002 = vpow2.f32 %v736_v39 }
 0x134   : > { %v3995_v48 = vpop.eup %3994  ;;  %4004 = vpow2.f32 %v738_v15  ;;  %v767_v60 = vadd.f32 1.0, %v3993_v45 }
 0x135   : > { %v4693_v57 = vmul.f32 %v3995_v48, %v4572_v0  ;;  %4006 = vrcp.f32 %v765_v47  ;;  %v572_v0 = vpop.f32.mrf.mxu0 }
 0x136   : > { %4008 = vrcp.f32 %v767_v60 }
 0x137   : > { %1766 = vrot.lane.b32.xlu1 %v4504_v35, %s4200_s15  ;;  %2354 = vrot.lane.b32.xlu0 %v4504_v35, %s4202_s17  ;;  %7667 = vst [vmem:[#allocation25_spill] sm:$0xff] %v4693_v57  ;;  %v574_v15 = vpop.f32.mrf.mxu0 }
 0x138   : > { %v4728_v52 = vadd.f32 %v574_v15, %v4482_v24 }
 0x13a   : > { %v701_v19 = vsub.f32 0.0, %v4728_v52 }
 0x13b   : > { %1458 = vrot.lane.b32.xlu1 %v4569_v63, %s4197_s29  ;;  %892 = vrot.lane.b32.xlu0 %v4569_v63, %s4196_s27 }
 0x13d   : > { %v3997_v7 = vpop.eup %3996 }
 0x13e   : > { %v4702_v17 = vmul.f32 %v3997_v7, %v4585_v8  ;;  %v3999_v29 = vpop.eup %3998  ;;  %v673_v8 = vpop.f32.mrf.mxu1  ;;  %v4721_v7 = vadd.f32 %v572_v0, %v4482_v24 }
 0x13f   : > { %1482 = vrot.lane.b32.xlu1 %v4581_v6, %s4197_s29  ;;  %916 = vrot.lane.b32.xlu0 %v4581_v6, %s4196_s27  ;;  %v4001_v39 = vpop.eup %4000  ;;  %v768_v47 = vadd.f32 1.0, %v3999_v29  ;;  %v4735_v0 = vadd.f32 %v673_v8, %v4482_v24 }
 0x140   : > { %7669 = vst [vmem:[#allocation27_spill] sm:$0xff] %v4702_v17  ;;  %v4003_v45 = vpop.eup %4002  ;;  %v769_v60 = vadd.f32 1.0, %v4001_v39  ;;  %v675_v37 = vpop.f32.mrf.mxu1  ;;  %v700_v15 = vsub.f32 0.0, %v4721_v7 }
 0x141   : > { %v4005_v48 = vpop.eup %4004  ;;  %4010 = vrcp.f32 %v768_v47  ;;  %v770_v29 = vadd.f32 1.0, %v4003_v45  ;;  %v4747_v47 = vadd.f32 %v675_v37, %v4482_v24  ;;  %v702_v8 = vsub.f32 0.0, %v4735_v0 }
 0x142   : > { %v4007_v42 = vpop.eup %4006  ;;  %4012 = vrcp.f32 %v769_v60  ;;  %v771_v5 = vadd.f32 1.0, %v4005_v48  ;;  %v742_v24 = vmul.f32 1.442695, %v701_v19 }
 0x143   : > { %904 = vrot.lane.b32.xlu1 %v4596_v14, %s4196_s27  ;;  %1066 = vrot.lane.b32.xlu0 %v4569_v63, %s4198_s30  ;;  %v4738_v39 = vmul.f32 %v4007_v42, %v4615_v27  ;;  %v4009_v36 = vpop.eup %4008  ;;  %4014 = vrcp.f32 %v770_v29  ;;  %v740_v42 = vmul.f32 1.442695, %v700_v15  ;;  %v703_v37 = vsub.f32 0.0, %v4747_v47 }
 0x144   : > { %v4754_v27 = vmul.f32 %v4009_v36, %v4626_v32  ;;  %4016 = vrcp.f32 %v771_v5  ;;  %v744_v32 = vmul.f32 1.442695, %v702_v8 }
 0x145   : > { %7670 = vst [vmem:[#allocation28_spill] sm:$0xff] %v4738_v39  ;;  %4018 = vpow2.f32 %v740_v42  ;;  %v746_v60 = vmul.f32 1.442695, %v703_v37 }
 0x146   : > { %4020 = vpow2.f32 %v742_v24 }
 0x147   : > { %928 = vrot.lane.b32.xlu1 %v4606_v21, %s4196_s27  ;;  %1090 = vrot.lane.b32.xlu0 %v4581_v6, %s4198_s30  ;;  %4022 = vpow2.f32 %v744_v32 }
 0x148   : > { %4024 = vpow2.f32 %v746_v60 }
 0x14b   : > { %1078 = vrot.lane.b32.xlu1 %v4596_v14, %s4198_s30  ;;  %1262 = vrot.lane.b32.xlu0 %v4569_v63, %s7477_s26 }
 0x14e   : > { %v4011_v19 = vpop.eup %4010 }
 0x14f   : > { %1102 = vrot.lane.b32.xlu1 %v4606_v21, %s4198_s30  ;;  %1286 = vrot.lane.b32.xlu0 %v4581_v6, %s7477_s26  ;;  %v4013_v42 = vpop.eup %4012  ;;  %v4783_v24 = vmul.f32 %v4011_v19, %v4651_v55 }
 0x150   : > { %v4015_v8 = vpop.eup %4014  ;;  %v4786_v37 = vmul.f32 %v4013_v42, %v4654_v62 }
 0x151   : > { %7674 = vst [vmem:[#allocation32_spill] sm:$0xff] %v4783_v24  ;;  %v4017_v23 = vpop.eup %4016  ;;  %v4797_v60 = vmul.f32 %v4015_v8, %v4657_v3 }
 0x152   : > { %7675 = vst [vmem:[#allocation33_spill] sm:$0xff] %v4786_v37  ;;  %v4800_v55 = vmul.f32 %v4017_v23, %v4665_v10  ;;  %v4019_v42 = vpop.eup %4018 }
 0x153   : > { %1274 = vrot.lane.b32.xlu1 %v4596_v14, %s7477_s26  ;;  %1732 = vrot.lane.b32.xlu0 %v4569_v63, %s4200_s15  ;;  %7677 = vst [vmem:[#allocation35_spill] sm:$0xff] %v4797_v60  ;;  %v4021_v61 = vpop.eup %4020  ;;  %v772_v56 = vadd.f32 1.0, %v4019_v42 }
 0x154   : > { %7678 = vst [vmem:[#allocation36_spill] sm:$0xff] %v4800_v55  ;;  %v4023_v8 = vpop.eup %4022  ;;  %v773_v23 = vadd.f32 1.0, %v4021_v61 }
 0x155   : > { %v4025_v10 = vpop.eup %4024  ;;  %4026 = vrcp.f32 %v772_v56  ;;  %v774_v50 = vadd.f32 1.0, %v4023_v8 }
 0x156   : > { %4028 = vrcp.f32 %v773_v23  ;;  %v775_v42 = vadd.f32 1.0, %v4025_v10 }
 0x157   : > { %1298 = vrot.lane.b32.xlu1 %v4606_v21, %s7477_s26  ;;  %1756 = vrot.lane.b32.xlu0 %v4581_v6, %s4200_s15  ;;  %4030 = vrcp.f32 %v774_v50 }
 0x158   : > { %4032 = vrcp.f32 %v775_v42 }
 0x15b   : > { %1744 = vrot.lane.b32.xlu1 %v4596_v14, %s4200_s15  ;;  %1928 = vrot.lane.b32.xlu0 %v4569_v63, %s4199_s14 }
 0x15f   : > { %1768 = vrot.lane.b32.xlu1 %v4606_v21, %s4200_s15  ;;  %1952 = vrot.lane.b32.xlu0 %v4581_v6, %s4199_s14 }
 0x162   : > { %v4027_v10 = vpop.eup %4026 }
 0x163   : > { %1940 = vrot.lane.b32.xlu1 %v4596_v14, %s4199_s14  ;;  %1470 = vrot.lane.b32.xlu0 %v4596_v14, %s4197_s29  ;;  %v4029_v42 = vpop.eup %4028  ;;  %v4851_v43 = vmul.f32 %v4027_v10, %v4721_v7 }
 0x164   : > { %v4031_v30 = vpop.eup %4030 }
 0x165   : > { %7685 = vst [vmem:[#allocation43_spill] sm:$0xff] %v4851_v43 }
 0x167   : > { %1964 = vrot.lane.b32.xlu1 %v4606_v21, %s4199_s14  ;;  %1494 = vrot.lane.b32.xlu0 %v4606_v21, %s4197_s29 }
 0x16b   : > { %1264 = vrot.lane.b32.xlu1 %v4693_v57, %s7477_s26  ;;  %894 = vrot.lane.b32.xlu0 %v4693_v57, %s4196_s27 }
 0x16d   : > { %v4704_v22 = vpop.permute.xlu1 %1260  ;;  %v4706_v25 = vpop.permute.xlu0 %890 }
 0x16f   : > { %1288 = vrot.lane.b32.xlu1 %v4702_v17, %s7477_s26  ;;  %918 = vrot.lane.b32.xlu0 %v4702_v17, %s4196_s27 }
 0x171   : > { %v4712_v20 = vpop.permute.xlu1 %1284  ;;  %v4714_v34 = vpop.permute.xlu0 %914 }
 0x173   : > { %1460 = vrot.lane.b32.xlu1 %v4693_v57, %s4197_s29  ;;  %1068 = vrot.lane.b32.xlu0 %v4693_v57, %s4198_s30 }
 0x175   : > { %v4723_v1 = vpop.permute.xlu1 %1456  ;;  %v4725_v2 = vpop.permute.xlu0 %1064 }
 0x177   : > { %1484 = vrot.lane.b32.xlu1 %v4702_v17, %s4197_s29  ;;  %1092 = vrot.lane.b32.xlu0 %v4702_v17, %s4198_s30 }
 0x179   : > { %v4741_v18 = vpop.permute.xlu1 %1480  ;;  %v4743_v16 = vpop.permute.xlu0 %1088 }
 0x17b   : > { %906 = vrot.lane.b32.xlu1 %v4738_v39, %s4196_s27  ;;  %1276 = vrot.lane.b32.xlu0 %v4738_v39, %s7477_s26 }
 0x17d   : > { %v4757_v45 = vpop.permute.xlu1 %1926  ;;  %v4759_v48 = vpop.permute.xlu0 %1730 }
 0x17e   : > { %7671 = vst [vmem:[#allocation29_spill] sm:$0xff] %v4757_v45  ;;  %7672 = vst [vmem:[#allocation30_spill] sm:$0xff] %v4759_v48  ;;  %v2769_v45 = vld [vmem:[%s7397_s2 + $0x1f8] sm:$0xff] }
 0x17f   : > { %930 = vrot.lane.b32.xlu1 %v4754_v27, %s4196_s27  ;;  %1300 = vrot.lane.b32.xlu0 %v4754_v27, %s7477_s26 }
 0x180   : > { %3827 = vmatprep.subr.mxu1 %v2769_v45  ;;  %v2768_v45 = vld [vmem:[%s7397_s2 + $0x1f0] sm:$0xff] }
 0x181   : > { %v4766_v36 = vpop.permute.xlu1 %1950  ;;  %v4768_v5 = vpop.permute.xlu0 %1754 }
 0x183   : > { %1080 = vrot.lane.b32.xlu1 %v4738_v39, %s4198_s30  ;;  %1472 = vrot.lane.b32.xlu0 %v4738_v39, %s4197_s29 }
 0x185   : > { %v4774_v29 = vpop.permute.xlu1 %2122  ;;  %v4776_v15 = vpop.permute.xlu0 %1272 }
 0x186   : > { %7673 = vst [vmem:[#allocation31_spill] sm:$0xff] %v4774_v29 }
 0x187   : > { %1104 = vrot.lane.b32.xlu1 %v4754_v27, %s4198_s30  ;;  %1496 = vrot.lane.b32.xlu0 %v4754_v27, %s4197_s29 }
 0x189   : > { %v4788_v32 = vpop.permute.xlu1 %2146  ;;  %v4790_v13 = vpop.permute.xlu0 %1296 }
 0x18a   : > { %7676 = vst [vmem:[#allocation34_spill] sm:$0xff] %v4788_v32 }
 0x18b   : > { %908 = vrot.lane.b32.xlu1 %v4786_v37, %s4196_s27  ;;  %896 = vrot.lane.b32.xlu0 %v4783_v24, %s4196_s27 }
 0x18d   : > { %v4802_v19 = vpop.permute.xlu1 %2318  ;;  %v4804_v62 = vpop.permute.xlu0 %1468 }
 0x18e   : > { %7679 = vst [vmem:[#allocation37_spill] sm:$0xff] %v4802_v19  ;;  %v4033_v19 = vpop.eup %4032 }
 0x18f   : > { %932 = vrot.lane.b32.xlu1 %v4800_v55, %s4196_s27  ;;  %920 = vrot.lane.b32.xlu0 %v4797_v60, %s4196_s27 }
 0x191   : > { %v4810_v53 = vpop.permute.xlu1 %2342  ;;  %v4812_v3 = vpop.permute.xlu0 %1492 }
 0x192   : > { %7680 = vst [vmem:[#allocation38_spill] sm:$0xff] %v4810_v53  ;;  %v4858_v53 = vmul.f32 %v4029_v42, %v4728_v52 }
 0x193   : > { %1082 = vrot.lane.b32.xlu1 %v4786_v37, %s4198_s30  ;;  %1070 = vrot.lane.b32.xlu0 %v4783_v24, %s4198_s30 }
 0x194   : > { %7687 = vst [vmem:[#allocation45_spill] sm:$0xff] %v4858_v53 }
 0x195   : > { %v4818_v28 = vpop.permute.xlu1 %902  ;;  %v4820_v58 = vpop.permute.xlu0 %1938 }
 0x196   : > { %7681 = vst [vmem:[#allocation39_spill] sm:$0xff] %v4820_v58 }
 0x197   : > { %1106 = vrot.lane.b32.xlu1 %v4800_v55, %s4198_s30  ;;  %1094 = vrot.lane.b32.xlu0 %v4797_v60, %s4198_s30 }
 0x199   : > { %v4826_v61 = vpop.permute.xlu1 %926  ;;  %v4828_v49 = vpop.permute.xlu0 %1962 }
 0x19a   : > { %7682 = vst [vmem:[#allocation40_spill] sm:$0xff] %v4828_v49 }
 0x19b   : > { %1278 = vrot.lane.b32.xlu1 %v4786_v37, %s7477_s26  ;;  %1266 = vrot.lane.b32.xlu0 %v4783_v24, %s7477_s26 }
 0x19d   : > { %v4834_v56 = vpop.permute.xlu1 %1076  ;;  %v4836_v8 = vpop.permute.xlu0 %2134 }
 0x19e   : > { %7683 = vst [vmem:[#allocation41_spill] sm:$0xff] %v4836_v8 }
 0x19f   : > { %1302 = vrot.lane.b32.xlu1 %v4800_v55, %s7477_s26  ;;  %1290 = vrot.lane.b32.xlu0 %v4797_v60, %s7477_s26 }
 0x1a1   : > { %v4842_v50 = vpop.permute.xlu1 %1100  ;;  %v4844_v23 = vpop.permute.xlu0 %2158 }
 0x1a2   : > { %7684 = vst [vmem:[#allocation42_spill] sm:$0xff] %v4844_v23  ;;  %v4865_v23 = vmul.f32 %v4031_v30, %v4735_v0 }
 0x1a3   : > { %1474 = vrot.lane.b32.xlu1 %v4786_v37, %s4197_s29  ;;  %1462 = vrot.lane.b32.xlu0 %v4783_v24, %s4197_s29 }
 0x1a4   : > { %7688 = vst [vmem:[#allocation46_spill] sm:$0xff] %v4865_v23 }
 0x1a5   : > { %v4853_v44 = vpop.permute.xlu1 %1742  ;;  %v4855_v54 = vpop.permute.xlu0 %2330 }
 0x1a6   : > { %7686 = vst [vmem:[#allocation44_spill] sm:$0xff] %v4855_v54  ;;  %v4872_v54 = vmul.f32 %v4033_v19, %v4747_v47 }
 0x1a7   : > { %898 = vrot.lane.b32.xlu1 %v4851_v43, %s4196_s27  ;;  %910 = vrot.lane.b32.xlu0 %v4858_v53, %s4196_s27 }
 0x1a8   : > { %7691 = vst [vmem:[#allocation49_spill] sm:$0xff] %v4872_v54 }
 0x1a9   : > { %v4867_v7 = vpop.permute.xlu1 %1766  ;;  %v4869_v10 = vpop.permute.xlu0 %2354 }
 0x1aa   : > { %7689 = vst [vmem:[#allocation47_spill] sm:$0xff] %v4867_v7  ;;  %7690 = vst [vmem:[#allocation48_spill] sm:$0xff] %v4869_v10 }
 0x1ab   : > { %922 = vrot.lane.b32.xlu1 %v4865_v23, %s4196_s27  ;;  %934 = vrot.lane.b32.xlu0 %v4872_v54, %s4196_s27 }
 0x1ad   : > { %v4878_v52 = vpop.permute.xlu1 %1458  ;;  %v4880_v42 = vpop.permute.xlu0 %892 }
 0x1ae   : > { %7692 = vst [vmem:[#allocation50_spill] sm:$0xff] %v4878_v52  ;;  %7693 = vst [vmem:[#allocation51_spill] sm:$0xff] %v4880_v42 }
 0x1af   : > { %1072 = vrot.lane.b32.xlu1 %v4851_v43, %s4198_s30  ;;  %1084 = vrot.lane.b32.xlu0 %v4858_v53, %s4198_s30 }
 0x1b1   : > { %v4886_v30 = vpop.permute.xlu1 %1482  ;;  %v4888_v0 = vpop.permute.xlu0 %916 }
 0x1b2   : > { %7694 = vst [vmem:[#allocation52_spill] sm:$0xff] %v4886_v30  ;;  %7695 = vst [vmem:[#allocation53_spill] sm:$0xff] %v4888_v0  ;;  %v855_v0 = vld [vmem:[%s7399_s4 + $0xd8] sm:$0xff] }
 0x1b3   : > { %1096 = vrot.lane.b32.xlu1 %v4865_v23, %s4198_s30  ;;  %1108 = vrot.lane.b32.xlu0 %v4872_v54, %s4198_s30 }
 0x1b5   : > { %v4894_v47 = vpop.permute.xlu1 %904  ;;  %v4896_v19 = vpop.permute.xlu0 %1066 }
 0x1b6   : > { %7696 = vst [vmem:[#allocation54_spill] sm:$0xff] %v4894_v47  ;;  %7697 = vst [vmem:[#allocation55_spill] sm:$0xff] %v4896_v19  ;;  %v578_v19 = vpop.f32.mrf.mxu0 }
 0x1b7   : > { %1498 = vrot.lane.b32.xlu1 %v4800_v55, %s4197_s29  ;;  %1486 = vrot.lane.b32.xlu0 %v4797_v60, %s4197_s29 }
 0x1b9   : > { %v4902_v52 = vpop.permute.xlu1 %928  ;;  %v4904_v30 = vpop.permute.xlu0 %1090 }
 0x1ba   : > { %7698 = vst [vmem:[#allocation56_spill] sm:$0xff] %v4902_v52  ;;  %7699 = vst [vmem:[#allocation57_spill] sm:$0xff] %v4904_v30  ;;  %v866_v52 = vld [vmem:[%s7399_s4 + $0x130] sm:$0xff] }
 0x1bb   : > { %1734 = vrot.lane.b32.xlu1 %v4693_v57, %s4200_s15  ;;  %1669 = vperm.xlu0 %3941, %v855_v0   ;;  %v4927_v0 = vadd.f32 %v578_v19, %v4493_v31 }
 0x1bd   : > { %v4911_v42 = vpop.permute.xlu1 %1078  ;;  %v4913_v47 = vpop.permute.xlu0 %1262 }
 0x1be   : > { %7700 = vst [vmem:[#allocation58_spill] sm:$0xff] %v4911_v42  ;;  %7701 = vst [vmem:[#allocation59_spill] sm:$0xff] %v4913_v47  ;;  %v679_v42 = vpop.f32.mrf.mxu1  ;;  %v580_v47 = vpop.f32.mrf.mxu0 }
 0x1bf   : > { %1758 = vrot.lane.b32.xlu1 %v4702_v17, %s4200_s15  ;;  %1746 = vrot.lane.b32.xlu0 %v4738_v39, %s4200_s15  ;;  %v4932_v32 = vadd.f32 %v679_v42, %v4493_v31 }
 0x1c0   : > { %v681_v19 = vpop.f32.mrf.mxu1 }
 0x1c1   : > { %v4922_v30 = vpop.permute.xlu1 %1102  ;;  %v4924_v10 = vpop.permute.xlu0 %1286  ;;  %v706_v42 = vsub.f32 0.0, %v4932_v32  ;;  %v4954_v59 = vadd.f32 %v681_v19, %v4493_v31  ;;  %v4174_v19 = vld [vmem:[%s7401_s6] sm:$0xff] }
 0x1c2   : > { %7702 = vst [vmem:[#allocation60_spill] sm:$0xff] %v4922_v30  ;;  %7703 = vst [vmem:[#allocation61_spill] sm:$0xff] %v4924_v10  ;;  %v704_v30 = vsub.f32 0.0, %v4927_v0  ;;  %v4940_v10 = vadd.f32 %v580_v47, %v4493_v31 }
 0x1c3   : > { %2056 = vperm.xlu1 %3942, %v866_v52   ;;  %1770 = vrot.lane.b32.xlu0 %v4754_v27, %s4200_s15  ;;  %v7458_v52 = vmov 1   ;;  %v752_v48 = vmul.f32 1.442695, %v706_v42  ;;  %v707_v31 = vsub.f32 0.0, %v4954_v59 }
 0x1c4   : > { %v748_v12 = vmul.f32 1.442695, %v704_v30  ;;  %v705_v47 = vsub.f32 0.0, %v4940_v10  ;;  %v877_v30 = vld [vmem:[%s7399_s4 + $0x188] sm:$0xff] }
 0x1c5   : > { %v4934_v29 = vpop.permute.xlu1 %1274  ;;  %v4936_v8 = vpop.permute.xlu0 %1732 }
 0x1c6   : > { %7704 = vst [vmem:[#allocation62_spill] sm:$0xff] %v4934_v29  ;;  %7705 = vst [vmem:[#allocation63_spill] sm:$0xff] %v4936_v8  ;;  %4034 = vpow2.f32 %v748_v12  ;;  %v839_v12 = vld [vmem:[%s7399_s4 + $0x58] sm:$0xff] }
 0x1c7   : > { %2136 = vrot.lane.b32.xlu1 %v4596_v14, %s4201_s16  ;;  %2124 = vrot.lane.b32.xlu0 %v4569_v63, %s4201_s16  ;;  %4036 = vpow2.f32 %v752_v48 }
 0x1c8   : > { %3943 = vset.pattern.permute.xlu1 %v7458_v52 }
 0x1c9   : > { %v4948_v29 = vpop.permute.xlu1 %1298  ;;  %v4950_v8 = vpop.permute.xlu0 %1756 }
 0x1ca   : > { %7706 = vst [vmem:[#allocation64_spill] sm:$0xff] %v4948_v29  ;;  %7707 = vst [vmem:[#allocation65_spill] sm:$0xff] %v4950_v8  ;;  %v750_v8 = vmul.f32 1.442695, %v705_v47  ;;  %v754_v47 = vmul.f32 1.442695, %v707_v31 }
 0x1cb   : > { %2160 = vrot.lane.b32.xlu1 %v4606_v21, %s4201_s16  ;;  %2148 = vrot.lane.b32.xlu0 %v4581_v6, %s4201_s16  ;;  %v7712_v29 = vmov 0  }
 0x1cc   : > { %4038 = vpow2.f32 %v750_v8 }
 0x1cd   : > { %v4960_v52 = vpop.permute.xlu1 %1744  ;;  %v4962_v7 = vpop.permute.xlu0 %1928  ;;  %4040 = vpow2.f32 %v754_v47  ;;  %v861_v47 = vld [vmem:[%s7399_s4 + $0x108] sm:$0xff] }
 0x1ce   : > { %7708 = vst [vmem:[#allocation66_spill] sm:$0xff] %v4960_v52  ;;  %7709 = vst [vmem:[#allocation67_spill] sm:$0xff] %v4962_v7  ;;  %v833_v7 = vld [vmem:[%s7399_s4 + $0x28] sm:$0xff] }
 0x1cf   : > { %2515 = vperm.xlu1 %3943, %v4174_v19   ;;  %2443 = vperm.xlu0 %3941, %v877_v30  }
 0x1d1   : > { %v4971_v42 = vpop.permute.xlu1 %1768  ;;  %v4973_v52 = vpop.permute.xlu0 %1952 }
 0x1d2   : > { %7710 = vst [vmem:[#allocation68_spill] sm:$0xff] %v4971_v42  ;;  %7711 = vst [vmem:[#allocation69_spill] sm:$0xff] %v4973_v52 }
 0x1d3   : > { %3944 = vset.pattern.permute.xlu1 %v7712_v29  ;;  %1037 = vperm.xlu0 %3941, %v833_v7   ;;  %v4035_v8 = vpop.eup %4034 }
 0x1d4   : > { %1209 = vperm.xlu1 %3944, %v839_v12   ;;  %v850_v12 = vld [vmem:[%s7399_s4 + $0xb0] sm:$0xff] }
 0x1d5   : > { %v4982_v30 = vpop.permute.xlu1 %1940  ;;  %v4984_v48 = vpop.permute.xlu0 %1470 }
 0x1d6   : > { %7713 = vst [vmem:[#allocation70_spill] sm:$0xff] %v4982_v30  ;;  %7714 = vst [vmem:[#allocation71_spill] sm:$0xff] %v4984_v48  ;;  %v776_v30 = vadd.f32 1.0, %v4035_v8 }
 0x1d7   : > { %1268 = vrot.lane.b32.xlu0 %v4851_v43, %s7477_s26 }
 0x1d8   : > { %1280 = vrot.lane.b32.xlu1 %v4858_v53, %s7477_s26  ;;  %4042 = vrcp.f32 %v776_v30  ;;  %v2753_v30 = vld [vmem:[%s7397_s2 + $0x178] sm:$0xff] }
 0x1d9   : > { %v4990_v19 = vpop.permute.xlu1 %1964  ;;  %v4992_v52 = vpop.permute.xlu0 %1494  ;;  %3828 = vmatpush3.msra.mxu1 %v2753_v30  ;;  %v2719_v30 = vld [vmem:[%s7397_s2 + $0x68] sm:$0xff] }
 0x1da   : > { %7715 = vst [vmem:[#allocation72_spill] sm:$0xff] %v4990_v19  ;;  %7716 = vst [vmem:[#allocation73_spill] sm:$0xff] %v4992_v52  ;;  %v4037_v19 = vpop.eup %4036  ;;  %3829 = vmatprep.subr.mxu1 %v2768_v45 }
 0x1db   : > { %1292 = vrot.lane.b32.xlu0 %v4865_v23, %s7477_s26  ;;  %v4039_v42 = vpop.eup %4038  ;;  %v778_v52 = vadd.f32 1.0, %v4037_v19  ;;  %v2721_v19 = vld [vmem:[%s7397_s2 + $0x78] sm:$0xff] }
 0x1dc   : > { %1304 = vrot.lane.b32.xlu1 %v4872_v54, %s7477_s26  ;;  %v4041_v58 = vpop.eup %4040 }
 0x1dd   : > { %v4998_v7 = vpop.permute.xlu1 %1264  ;;  %v5000_v31 = vpop.permute.xlu0 %894  ;;  %4044 = vrcp.f32 %v778_v52  ;;  %v2735_v52 = vld [vmem:[%s7397_s2 + $0xe8] sm:$0xff] }
 0x1de   : > { %7717 = vst [vmem:[#allocation74_spill] sm:$0xff] %v4998_v7  ;;  %7718 = vst [vmem:[#allocation75_spill] sm:$0xff] %v5000_v31  ;;  %v777_v7 = vadd.f32 1.0, %v4039_v42  ;;  %v2737_v31 = vld [vmem:[%s7397_s2 + $0xf8] sm:$0xff]  ;;  %v2736_v42 = vld [vmem:[%s7397_s2 + $0xf0] sm:$0xff] }
 0x1df   : > { %1596 = vperm.xlu0 %3941, %v850_v12   ;;  %3777 = vmatprep.subr.mxu0 %v2737_v31  ;;  %v2720_v12 = vld [vmem:[%s7397_s2 + $0x70] sm:$0xff] }
 0x1e0   : > { %1865 = vperm.xlu1 %3944, %v861_v47   ;;  %3778 = vmatpush3.msra.mxu0 %v2721_v19  ;;  %v2752_v47 = vld [vmem:[%s7397_s2 + $0x170] sm:$0xff]  ;;  %4046 = vrcp.f32 %v777_v7  ;;  %v2767_v19 = vld [vmem:[%s7397_s2 + $0x1e8] sm:$0xff]  ;;  %v2734_v7 = vld [vmem:[%s7397_s2 + $0xe0] sm:$0xff] }
 0x1e1   : > { %v5008_v48 = vpop.permute.xlu1 %1288  ;;  %v5010_v49 = vpop.permute.xlu0 %918  ;;  %3779 = vmatprep.subr.mxu0 %v2736_v42  ;;  %3830 = vmatpush3.msra.mxu1 %v2752_v47  ;;  %v2766_v42 = vld [vmem:[%s7397_s2 + $0x1e0] sm:$0xff] }
 0x1e2   : > { %7719 = vst [vmem:[#allocation76_spill] sm:$0xff] %v5008_v48  ;;  %7720 = vst [vmem:[#allocation77_spill] sm:$0xff] %v5010_v49  ;;  %v779_v48 = vadd.f32 1.0, %v4041_v58  ;;  %3780 = vmatpush3.msra.mxu0 %v2720_v12  ;;  %v2751_v58 = vld [vmem:[%s7397_s2 + $0x168] sm:$0xff]  ;;  %v872_v47 = vld [vmem:[%s7399_s4 + $0x160] sm:$0xff]  ;;  %3831 = vmatprep.subr.mxu1 %v2767_v19 }
 0x1e3   : > { %1930 = vrot.lane.b32.xlu0 %v4693_v57, %s4199_s14  ;;  %3781 = vmatprep.subr.mxu0 %v2735_v52  ;;  %v2709_v49 = vld [vmem:[%s7397_s2 + $0x18] sm:$0xff] }
 0x1e4   : > { %1942 = vrot.lane.b32.xlu1 %v4738_v39, %s4199_s14  ;;  %4048 = vrcp.f32 %v779_v48  ;;  %3782 = vmatpush3.msra.mxu0 %v2719_v30  ;;  %v2765_v48 = vld [vmem:[%s7397_s2 + $0x1d8] sm:$0xff] }
 0x1e5   : > { %v5034_v8 = vpop.permute.xlu1 %1460  ;;  %v5036_v31 = vpop.permute.xlu0 %1068  ;;  %3832 = vmatpush3.msra.mxu1 %v2751_v58  ;;  %3783 = vmatprep.subr.mxu0 %v2734_v7  ;;  %v2717_v30 = vld [vmem:[%s7397_s2 + $0x58] sm:$0xff] }
 0x1e6   : > { %7721 = vst [vmem:[#allocation78_spill] sm:$0xff] %v5034_v8  ;;  %7722 = vst [vmem:[#allocation79_spill] sm:$0xff] %v5036_v31  ;;  %v2718_v8 = vld [vmem:[%s7397_s2 + $0x60] sm:$0xff]  ;;  %3833 = vmatprep.subr.mxu1 %v2766_v42  ;;  %v4043_v58 = vpop.eup %4042  ;;  %v2749_v7 = vld [vmem:[%s7397_s2 + $0x158] sm:$0xff] }
 0x1e7   : > { %1954 = vrot.lane.b32.xlu0 %v4702_v17, %s4199_s14  ;;  %v2750_v31 = vld [vmem:[%s7397_s2 + $0x160] sm:$0xff]  ;;  %3784 = vmatpush3.msra.mxu0 %v2718_v8  ;;  %v2732_v8 = vld [vmem:[%s7397_s2 + $0xd0] sm:$0xff] }
 0x1e8   : > { %1966 = vrot.lane.b32.xlu1 %v4754_v27, %s4199_s14  ;;  %3834 = vmatpush3.msra.mxu1 %v2750_v31 }
 0x1e9   : > { %v5066_v45 = vpop.permute.xlu1 %1484  ;;  %v5068_v12 = vpop.permute.xlu0 %1092  ;;  %3835 = vmatprep.subr.mxu1 %v2765_v48  ;;  %v2764_v48 = vld [vmem:[%s7397_s2 + $0x1d0] sm:$0xff] }
 0x1ea   : > { %7723 = vst [vmem:[#allocation80_spill] sm:$0xff] %v5066_v45  ;;  %7724 = vst [vmem:[#allocation81_spill] sm:$0xff] %v5068_v12  ;;  %v2733_v45 = vld [vmem:[%s7397_s2 + $0xd8] sm:$0xff]  ;;  %3836 = vmatpush3.msra.mxu1 %v2749_v7  ;;  %v2716_v12 = vld [vmem:[%s7397_s2 + $0x50] sm:$0xff] }
 0x1eb   : > { %2252 = vperm.xlu0 %3941, %v872_v47   ;;  %3785 = vmatprep.subr.mxu0 %v2733_v45  ;;  %v4045_v45 = vpop.eup %4044  ;;  %v5109_v47 = vmul.f32 %v4043_v58, %v4927_v0  ;;  %v2748_v0 = vld [vmem:[%s7397_s2 + $0x150] sm:$0xff] }
 0x1ec   : > { %2320 = vrot.lane.b32.xlu1 %v4569_v63, %s4202_s17  ;;  %3786 = vmatpush3.msra.mxu0 %v2717_v30  ;;  %v5129_v7 = vmul.f32 %v4045_v45, %v4932_v32  ;;  %v2715_v32 = vld [vmem:[%s7397_s2 + $0x48] sm:$0xff] }
 0x1ed   : > { %v5087_v52 = vpop.permute.xlu1 %906  ;;  %v5089_v19 = vpop.permute.xlu0 %1276  ;;  %7729 = vst [vmem:[#allocation86_spill] sm:$0xff] %v5109_v47  ;;  %3787 = vmatprep.subr.mxu0 %v2732_v8  ;;  %3837 = vmatprep.subr.mxu1 %v2764_v48  ;;  %v2747_v45 = vld [vmem:[%s7397_s2 + $0x148] sm:$0xff]  ;;  %v2730_v48 = vld [vmem:[%s7397_s2 + $0xc0] sm:$0xff] }
 0x1ee   : > { %7725 = vst [vmem:[#allocation82_spill] sm:$0xff] %v5087_v52  ;;  %7726 = vst [vmem:[#allocation83_spill] sm:$0xff] %v5089_v19  ;;  %v4047_v19 = vpop.eup %4046  ;;  %3788 = vmatpush3.msra.mxu0 %v2716_v12  ;;  %3838 = vmatpush3.msra.mxu1 %v2748_v0  ;;  %v2762_v0 = vld [vmem:[%s7397_s2 + $0x1c0] sm:$0xff]  ;;  %v2741_v52 = vld [vmem:[%s7397_s2 + $0x118] sm:$0xff] }
 0x1ef   : > { %2332 = vrot.lane.b32.xlu0 %v4596_v14, %s4202_s17  ;;  %7732 = vst [vmem:[#allocation89_spill] sm:$0xff] %v5129_v7  ;;  %v5132_v8 = vmul.f32 %v4047_v19, %v4940_v10 }
 0x1f0   : > { %2344 = vrot.lane.b32.xlu1 %v4581_v6, %s4202_s17 }
 0x1f1   : > { %v5104_v31 = vpop.permute.xlu1 %930  ;;  %v5106_v42 = vpop.permute.xlu0 %1300  ;;  %7733 = vst [vmem:[#allocation90_spill] sm:$0xff] %v5132_v8 }
 0x1f2   : > { %7727 = vst [vmem:[#allocation84_spill] sm:$0xff] %v5104_v31  ;;  %7728 = vst [vmem:[#allocation85_spill] sm:$0xff] %v5106_v42  ;;  %v2731_v42 = vld [vmem:[%s7397_s2 + $0xc8] sm:$0xff]  ;;  %v4049_v31 = vpop.eup %4048 }
 0x1f3   : > { %2356 = vrot.lane.b32.xlu0 %v4606_v21, %s4202_s17  ;;  %3789 = vmatprep.subr.mxu0 %v2731_v42  ;;  %v5152_v19 = vmul.f32 %v4049_v31, %v4954_v59  ;;  %v2714_v59 = vld [vmem:[%s7397_s2 + $0x40] sm:$0xff] }
 0x1f4   : > { %900 = vrot.lane.b32.xlu1 %v5109_v47, %s4196_s27  ;;  %3790 = vmatpush3.msra.mxu0 %v2715_v32  ;;  %v2729_v32 = vld [vmem:[%s7397_s2 + $0xb8] sm:$0xff] }
 0x1f5   : > { %v5124_v30 = vpop.permute.xlu1 %1080  ;;  %v5126_v58 = vpop.permute.xlu0 %1472  ;;  %7736 = vst [vmem:[#allocation93_spill] sm:$0xff] %v5152_v19  ;;  %3791 = vmatprep.subr.mxu0 %v2730_v48 }
 0x1f6   : > { %7730 = vst [vmem:[#allocation87_spill] sm:$0xff] %v5124_v30  ;;  %7731 = vst [vmem:[#allocation88_spill] sm:$0xff] %v5126_v58  ;;  %v2763_v30 = vld [vmem:[%s7397_s2 + $0x1c8] sm:$0xff]  ;;  %3792 = vmatpush3.msra.mxu0 %v2714_v59 }
 0x1f7   : > { %912 = vrot.lane.b32.xlu0 %v5132_v8, %s4196_s27  ;;  %3839 = vmatprep.subr.mxu1 %v2763_v30  ;;  %v2746_v30 = vld [vmem:[%s7397_s2 + $0x140] sm:$0xff]  ;;  %v845_v59 = vld [vmem:[%s7399_s4 + $0x88] sm:$0xff] }
 0x1f8   : > { %924 = vrot.lane.b32.xlu1 %v5129_v7, %s4196_s27  ;;  %3840 = vmatpush3.msra.mxu1 %v2747_v45  ;;  %v2761_v45 = vld [vmem:[%s7397_s2 + $0x1b8] sm:$0xff]  ;;  %v2759_v58 = vld [vmem:[%s7397_s2 + $0x1a8] sm:$0xff] }
 0x1f9   : > { %v5147_v10 = vpop.permute.xlu1 %1104  ;;  %v5149_v12 = vpop.permute.xlu0 %1496  ;;  %3841 = vmatprep.subr.mxu1 %v2762_v0  ;;  %3793 = vmatprep.subr.mxu0 %v2729_v32  ;;  %v2712_v32 = vld [vmem:[%s7397_s2 + $0x30] sm:$0xff] }
 0x1fa   : > { %7734 = vst [vmem:[#allocation91_spill] sm:$0xff] %v5147_v10  ;;  %7735 = vst [vmem:[#allocation92_spill] sm:$0xff] %v5149_v12  ;;  %3842 = vmatpush3.msra.mxu1 %v2746_v30  ;;  %v2760_v30 = vld [vmem:[%s7397_s2 + $0x1b0] sm:$0xff]  ;;  %v2710_v10 = vld [vmem:[%s7397_s2 + $0x20] sm:$0xff] }
 0x1fb   : > { %936 = vrot.lane.b32.xlu0 %v5152_v19, %s4196_s27  ;;  %3843 = vmatprep.subr.mxu1 %v2761_v45  ;;  %v2744_v12 = vld [vmem:[%s7397_s2 + $0x130] sm:$0xff]  ;;  %s8098_s27 = sshll.u32 %s8100_s23, 3 }
 0x1fc   : > { %1074 = vrot.lane.b32.xlu1 %v5109_v47, %s4198_s30  ;;  %s415_s28 = scalar_lea.vmem %s7407_s12, %s8098_s27 }
 0x1fd   : > { %v5170_v31 = vpop.permute.xlu1 %908  ;;  %v5172_v42 = vpop.permute.xlu0 %896 }
 0x1fe   : > { %7737 = vst [vmem:[#allocation94_spill] sm:$0xff] %v5170_v31  ;;  %7738 = vst [vmem:[#allocation95_spill] sm:$0xff] %v5172_v42  ;;  %v2713_v42 = vld [vmem:[%s7397_s2 + $0x38] sm:$0xff] }
 0x1ff   : > { %1086 = vrot.lane.b32.xlu0 %v5132_v8, %s4198_s30  ;;  %v2745_v31 = vld [vmem:[%s7397_s2 + $0x138] sm:$0xff]  ;;  %3794 = vmatpush3.msra.mxu0 %v2713_v42  ;;  %v2711_v42 = vld [vmem:[%s7397_s2 + $0x28] sm:$0xff] }
 0x200   : > { %1098 = vrot.lane.b32.xlu1 %v5129_v7, %s4198_s30  ;;  %3844 = vmatpush3.msra.mxu1 %v2745_v31  ;;  %v2743_v31 = vld [vmem:[%s7397_s2 + $0x128] sm:$0xff] }
 0x201   : > { %v5187_v48 = vpop.permute.xlu1 %932  ;;  %v5189_v0 = vpop.permute.xlu0 %920  ;;  %3845 = vmatprep.subr.mxu1 %v2760_v30 }
 0x202   : > { %7739 = vst [vmem:[#allocation96_spill] sm:$0xff] %v5187_v48  ;;  %7740 = vst [vmem:[#allocation97_spill] sm:$0xff] %v5189_v0  ;;  %v2728_v48 = vld [vmem:[%s7397_s2 + $0xb0] sm:$0xff]  ;;  %3846 = vmatpush3.msra.mxu1 %v2744_v12  ;;  %v2742_v12 = vld [vmem:[%s7397_s2 + $0x120] sm:$0xff] }
 0x203   : > { %1110 = vrot.lane.b32.xlu0 %v5152_v19, %s4198_s30  ;;  %3795 = vmatprep.subr.mxu0 %v2728_v48  ;;  %v938_v48 = vlaneseq }
 0x204   : > { %1405 = vperm.xlu1 %3944, %v845_v59   ;;  %v2727_v59 = vld [vmem:[%s7397_s2 + $0xa8] sm:$0xff]  ;;  %3796 = vmatpush3.msra.mxu0 %v2712_v32 }
 0x205   : > { %v5211_v45 = vpop.permute.xlu1 %1082  ;;  %v5213_v0 = vpop.permute.xlu0 %1070  ;;  %3797 = vmatprep.subr.mxu0 %v2727_v59  ;;  %3847 = vmatprep.subr.mxu1 %v2759_v58  ;;  %v2725_v58 = vld [vmem:[%s7397_s2 + $0x98] sm:$0xff] }
 0x206   : > { %7741 = vst [vmem:[#allocation98_spill] sm:$0xff] %v5211_v45  ;;  %7742 = vst [vmem:[#allocation99_spill] sm:$0xff] %v5213_v0  ;;  %3798 = vmatpush3.msra.mxu0 %v2711_v42  ;;  %v2726_v0 = vld [vmem:[%s7397_s2 + $0xa0] sm:$0xff]  ;;  %3848 = vmatpush3.msra.mxu1 %v2743_v31  ;;  %v2757_v59 = vld [vmem:[%s7397_s2 + $0x198] sm:$0xff]  ;;  %v5260_v42 = vshrl.u32 %v938_v48, 7 }
 0x207   : > { %1464 = vrot.lane.b32.xlu0 %v4851_v43, %s4197_s29  ;;  %v2758_v45 = vld [vmem:[%s7397_s2 + $0x1a0] sm:$0xff]  ;;  %3799 = vmatprep.subr.mxu0 %v2726_v0  ;;  %v2756_v0 = vld [vmem:[%s7397_s2 + $0x190] sm:$0xff] }
 0x208   : > { %1476 = vrot.lane.b32.xlu1 %v4858_v53, %s4197_s29  ;;  %7745 = vst [vmem:[#allocation102_spill] sm:$0xff] %v5260_v42  ;;  %3849 = vmatprep.subr.mxu1 %v2758_v45  ;;  %v2740_v45 = vld [vmem:[%s7397_s2 + $0x110] sm:$0xff] }
 0x209   : > { %v5234_v30 = vpop.permute.xlu1 %1106  ;;  %v5236_v32 = vpop.permute.xlu0 %1094  ;;  %3800 = vmatpush3.msra.mxu0 %v2710_v10  ;;  %3850 = vmatpush3.msra.mxu1 %v2742_v12  ;;  %v2708_v10 = vld [vmem:[%s7397_s2 + $0x10] sm:$0xff]  ;;  %v5291_v12 = vmul.f32 %v4540_v51, %v4449_v9  ;;  %v5311_v9 = vmul.f32 %v4540_v51, %v4504_v35  ;;  %v5329_v35 = vmul.f32 %v4574_v4, %v4569_v63  ;;  %v2707_v63 = vld [vmem:[%s7397_s2 + $0x8] sm:$0xff] }
 0x20a   : > { %7743 = vst [vmem:[#allocation100_spill] sm:$0xff] %v5234_v30  ;;  %7744 = vst [vmem:[#allocation101_spill] sm:$0xff] %v5236_v32  ;;  %v856_v32 = vld [vmem:[%s7399_s4 + $0xe0] sm:$0xff]  ;;  %3801 = vmatprep.subr.mxu0 %v2725_v58  ;;  %3851 = vmatprep.subr.mxu1 %v2757_v59  ;;  %v5294_v58 = vsub.s32 1, %v5260_v42 }
 0x20b   : > { %1488 = vrot.lane.b32.xlu0 %v4865_v23, %s4197_s29  ;;  %7748 = vst [vmem:[#allocation105_spill] sm:$0xff] %v5291_v12  ;;  %3802 = vmatpush3.msra.mxu0 %v2709_v49  ;;  %7752 = vst [vmem:[#allocation109_spill] sm:$0xff] %v5311_v9  ;;  %v884_v23 = vld [vmem:[%s7400_s5 + $0x8] sm:$0xf]  ;;  %v886_v12 = vld [vmem:[%s7400_s5 + $0x14] sm:$0xf] }
 0x20c   : > { %1500 = vrot.lane.b32.xlu1 %v4872_v54, %s4197_s29  ;;  %3852 = vmatpush3.msra.mxu1 %v2741_v52  ;;  %v5307_v54 = vmul.f32 %v4540_v51, %v4455_v11  ;;  %v2723_v11 = vld [vmem:[%s7397_s2 + $0x88] sm:$0xff]  ;;  %7754 = vst [vmem:[#allocation111_spill] sm:$0xff] %v5329_v35  ;;  %v5337_v52 = vmul.f32 %v4574_v4, %v4581_v6 }
 0x20d   : > { %v5262_v31 = vpop.permute.xlu1 %1278  ;;  %v5267_v30 = vpop.permute.xlu0 %1266  ;;  %3853 = vmatprep.subr.mxu1 %v2756_v0  ;;  %v885_v0 = vld [vmem:[%s7400_s5 + $0xc] sm:$0xf]  ;;  %v5353_v6 = vmul.f32 %v4574_v4, %v4606_v21  ;;  %v2754_v21 = vld [vmem:[%s7397_s2 + $0x180] sm:$0xff] }
 0x20e   : > { %7746 = vst [vmem:[#allocation103_spill] sm:$0xff] %v5262_v31  ;;  %7747 = vst [vmem:[#allocation104_spill] sm:$0xff] %v5267_v30  ;;  %v2724_v31 = vld [vmem:[%s7397_s2 + $0x90] sm:$0xff]  ;;  %v5303_v30 = vmul.f32 %v4540_v51, %v4488_v26  ;;  %v2755_v26 = vld [vmem:[%s7397_s2 + $0x188] sm:$0xff]  ;;  %v5333_v51 = vmul.f32 %v4574_v4, %v4596_v14  ;;  %3854 = vmatpush3.msra.mxu1 %v2740_v45  ;;  %v5363_v45 = vand.u32 127, %v938_v48 }
 0x20f   : > { %1674 = vperm.xlu0 %3941, %v856_v32   ;;  %v5297_v32 = vsub.s32 2, %v5260_v42  ;;  %7751 = vst [vmem:[#allocation108_spill] sm:$0xff] %v5307_v54  ;;  %3803 = vmatprep.subr.mxu0 %v2724_v31  ;;  %7756 = vst [vmem:[#allocation113_spill] sm:$0xff] %v5337_v52  ;;  %v5340_v31 = vsub.s32 3, %v5260_v42  ;;  %v2739_v14 = vld [vmem:[%s7397_s2 + $0x108] sm:$0xff]  ;;  %v2722_v4 = vld [vmem:[%s7397_s2 + $0x80] sm:$0xff]  ;;  %v5380_v48 = vrot.slane %v884_v23, %v5294_v58 }
 0x210   : > { %1736 = vrot.lane.b32.xlu1 %v4783_v24, %s4200_s15  ;;  %7750 = vst [vmem:[#allocation107_spill] sm:$0xff] %v5303_v30  ;;  %7755 = vst [vmem:[#allocation112_spill] sm:$0xff] %v5333_v51  ;;  %3804 = vmatpush3.msra.mxu0 %v2708_v10  ;;  %v5361_v10 = vmul.f32 %v4636_v40, %v4702_v17  ;;  %vm1112_vm1 = vcmp.lt.s32.totalorder %v5363_v45, 16  ;;  %v5401_v51 = vrot.slane %v885_v0, %v5294_v58  ;;  %v888_v54 = vld [vmem:[%s7400_s5 + $0x1c] sm:$0xf]  ;;  %v7777_v24 = vmov 0.0  }
 0x211   : > { %v5299_v59 = vpop.permute.xlu1 %1302  ;;  %v5319_v49 = vpop.permute.xlu0 %1290  ;;  %7757 = vst [vmem:[#allocation114_spill] sm:$0xff] %v5353_v6  ;;  %7761 = vst [vmem:[#allocation118_spill] sm:$0xff] %v5380_v48  ;;  %v883_v6 = vld [vmem:[%s7400_s5 + $0x4] sm:$0xf]  ;;  %3805 = vmatprep.subr.mxu0 %v2723_v11  ;;  %3855 = vmatprep.subr.mxu1 %v2755_v26  ;;  %v5404_v53 = vrot.slane %v885_v0, %v5297_v32  ;;  %vm940_vm2 = vcmp.lt.s32.totalorder %v5363_v45, 17  ;;  %vm1308_vm3 = vcmp.lt.s32.totalorder %v5363_v45, 15 }
 0x212   : > { %7749 = vst [vmem:[#allocation106_spill] sm:$0xff] %v5299_v59  ;;  %v5317_v59 = vsub.s32 0, %v5260_v42  ;;  %7753 = vst [vmem:[#allocation110_spill] sm:$0xff] %v5319_v49  ;;  %v5357_v42 = vmul.f32 %v4636_v40, %v4693_v57  ;;  %v5383_v49 = vrot.slane %v884_v23, %v5297_v32  ;;  %3806 = vmatpush3.msra.mxu0 %v2707_v63  ;;  %3856 = vmatpush3.msra.mxu1 %v2739_v14  ;;  %v2706_v11 = vld [vmem:[%s7397_s2] sm:$0xff]  ;;  %v887_v63 = vld [vmem:[%s7400_s5 + $0x18] sm:$0xf] }
 0x213   : > { %7759 = vst [vmem:[#allocation116_spill] sm:$0xff] %v5361_v10  ;;  %1748 = vrot.lane.b32.xlu0 %v4786_v37, %s4200_s15  ;;  %v882_v10 = vld [vmem:[%s7400_s5] sm:$0xf]  ;;  %3807 = vmatprep.subr.mxu0 %v2722_v4  ;;  %v5464_v37 = vrot.slane %v887_v63, %v5340_v31  ;;  %vm1504_vm4 = vcmp.lt.s32.totalorder %v5363_v45, 1  ;;  %vm1778_vm5 = vcmp.lt.s32.totalorder %v5363_v45, 127  ;;  %vm1974_vm6 = vcmp.lt.s32.totalorder %v5363_v45, 113 }
 0x214   : > { %7758 = vst [vmem:[#allocation115_spill] sm:$0xff] %v5357_v42  ;;  %1760 = vrot.lane.b32.xlu1 %v4797_v60, %s4200_s15  ;;  %v5377_v42 = vmul.f32 %v4636_v40, %v4738_v39  ;;  %7762 = vst [vmem:[#allocation119_spill] sm:$0xff] %v5383_v49  ;;  %v5398_v52 = vrot.slane %v884_v23, %v5317_v59  ;;  %v2738_v26 = vld [vmem:[%s7397_s2 + $0x100] sm:$0xff]  ;;  %v5418_v40 = vrot.slane %v885_v0, %v5317_v59 }
 0x215   : > { %v5391_v35 = vpop.permute.xlu1 %1474  ;;  %v5406_v43 = vpop.permute.xlu0 %1462  ;;  %v5421_v60 = vrot.slane %v885_v0, %v5340_v31  ;;  %3857 = vmatprep.subr.mxu1 %v2754_v21  ;;  %v5428_v14 = vrot.slane %v882_v10, %v5294_v58  ;;  %v5440_v0 = vrot.slane %v882_v10, %v5317_v59  ;;  %v5443_v4 = vrot.slane %v882_v10, %v5340_v31 }
 0x216   : > { %7760 = vst [vmem:[#allocation117_spill] sm:$0xff] %v5377_v42  ;;  %7763 = vst [vmem:[#allocation120_spill] sm:$0xff] %v5391_v35  ;;  %v867_v42 = vld [vmem:[%s7399_s4 + $0x138] sm:$0xff]  ;;  %v5415_v35 = vrot.slane %v884_v23, %v5340_v31  ;;  %v5431_v23 = vrot.slane %v882_v10, %v5297_v32  ;;  %v1125_v21 = vsel %vm1112_vm1, %v4725_v2, %v4834_v56  ;;  %3808 = vmatpush3.msra.mxu0 %v2706_v11 }
 0x217   : > { %7764 = vst [vmem:[#allocation121_spill] sm:$0xff] %v5398_v52  ;;  %7765 = vst [vmem:[#allocation122_spill] sm:$0xff] %v5406_v43  ;;  %v5434_v43 = vrot.slane %v883_v6, %v5294_v58  ;;  %1772 = vrot.lane.b32.xlu0 %v4800_v55, %s4200_s15  ;;  %3858 = vmatpush3.msra.mxu1 %v2738_v26  ;;  %v5458_v55 = vrot.slane %v887_v63, %v5294_v58  ;;  %vm2170_vm7 = vcmp.lt.s32.totalorder %v5363_v45, 112 }
 0x218   : > { %7766 = vst [vmem:[#allocation123_spill] sm:$0xff] %v5415_v35  ;;  %7767 = vst [vmem:[#allocation124_spill] sm:$0xff] %v5418_v40  ;;  %2061 = vperm.xlu1 %3944, %v867_v42   ;;  %v5455_v42 = vrot.slane %v887_v63, %v5317_v59  ;;  %v5461_v10 = vrot.slane %v887_v63, %v5297_v32  ;;  %3891 = vmatprep.subr.mxu0 %v7777_v24  ;;  %vm2366_vm8 = vcmp.lt.s32.totalorder %v5363_v45, 111 }
 0x219   : > { %7768 = vst [vmem:[#allocation125_spill] sm:$0xff] %v5421_v60  ;;  %7769 = vst [vmem:[#allocation126_spill] sm:$0xff] %v5428_v14  ;;  %v5452_v9 = vpop.permute.xlu1 %898  ;;  %v953_v11 = vsel %vm940_vm2, %v4706_v25, %v4818_v28  ;;  %v5475_v26 = vrot.slane %v883_v6, %v5297_v32  ;;  %v5481_v63 = vrot.slane %v883_v6, %v5340_v31  ;;  %v5488_v24 = vpop.permute.xlu0 %910 }
 0x21a   : > { %7770 = vst [vmem:[#allocation127_spill] sm:$0xff] %v5431_v23  ;;  %7771 = vst [vmem:[#allocation128_spill] sm:$0xff] %v5434_v43  ;;  %v5493_v30 = vrot.slane %v888_v54, %v5317_v59 }
 0x21b   : > { %7772 = vst [vmem:[#allocation129_spill] sm:$0xff] %v5452_v9  ;;  %7773 = vst [vmem:[#allocation130_spill] sm:$0xff] %v5455_v42  ;;  %v5478_v9 = vrot.slane %v883_v6, %v5317_v59  ;;  %v5496_v42 = vrot.slane %v888_v54, %v5294_v58  ;;  %2126 = vrot.lane.b32.xlu0 %v4693_v57, %s4201_s16  ;;  %v5503_v6 = vrot.slane %v888_v54, %v5297_v32 }
 0x21c   : > { %7774 = vst [vmem:[#allocation131_spill] sm:$0xff] %v5458_v55  ;;  %7775 = vst [vmem:[#allocation132_spill] sm:$0xff] %v5461_v10  ;;  %v1159_v10 = vmul.f32 %v5434_v43, %v1125_v21  ;;  %2138 = vrot.lane.b32.xlu1 %v4738_v39, %s4201_s16  ;;  %v5509_v21 = vrot.slane %v886_v12, %v5317_v59  ;;  %v5512_v43 = vrot.slane %v886_v12, %v5294_v58 }
 0x21d   : > { %7776 = vst [vmem:[#allocation133_spill] sm:$0xff] %v5464_v37  ;;  %7778 = vst [vmem:[#allocation134_spill] sm:$0xff] %v5475_v26  ;;  %v5486_v37 = vld [vmem:[%s7400_s5 + $0x20] sm:$0xf]  ;;  %v1321_v39 = vsel %vm1308_vm3, %v4704_v22, %v4776_v15  ;;  %v987_v57 = vmul.f32 %v5428_v14, %v953_v11  ;;  %v5539_v11 = vrot.slane %v886_v12, %v5297_v32 }
 0x21e   : > { %7779 = vst [vmem:[#allocation135_spill] sm:$0xff] %v5488_v24  ;;  %7780 = vst [vmem:[#allocation136_spill] sm:$0xff] %v5493_v30  ;;  %v5506_v24 = vrot.slane %v888_v54, %v5340_v31  ;;  %v5514_v30 = vpop.permute.xlu1 %922  ;;  %v1131_v54 = vsel %vm1112_vm1, %v4842_v50, %v4725_v2  ;;  %v5542_v14 = vrot.slane %v886_v12, %v5340_v31 }
 0x21f   : > { %7781 = vst [vmem:[#allocation137_spill] sm:$0xff] %v5496_v42  ;;  %7782 = vst [vmem:[#allocation138_spill] sm:$0xff] %v5503_v6  ;;  %v7787_v42 = vmov 1   ;;  %v1119_v2 = vsel %vm1112_vm1, %v4834_v56, %v4743_v16  ;;  %2150 = vrot.lane.b32.xlu0 %v4702_v17, %s4201_s16  ;;  %v1315_v12 = vsel %vm1308_vm3, %v4776_v15, %v4712_v20  ;;  %v1355_v56 = vmul.f32 %v5380_v48, %v1321_v39 }
 0x220   : > { %7783 = vst [vmem:[#allocation139_spill] sm:$0xff] %v5506_v24  ;;  %7784 = vst [vmem:[#allocation140_spill] sm:$0xff] %v5509_v21  ;;  %3945 = vset.pattern.permute.xlu1 %v7787_v42  ;;  %v5528_v24 = vrot.slane %v5486_v37, %v5317_v59  ;;  %v959_v42 = vsel %vm940_vm2, %v4826_v61, %v4706_v25  ;;  %v1213_v59 = vmul.f32 %v4507_v38, %v1159_v10 }
 0x221   : > { %7785 = vst [vmem:[#allocation141_spill] sm:$0xff] %v5512_v43  ;;  %7786 = vst [vmem:[#allocation142_spill] sm:$0xff] %v5514_v30  ;;  %v5536_v30 = vrot.slane %v5486_v37, %v5294_v58  ;;  %v1113_v25 = vsel %vm1112_vm1, %v4743_v16, %v4842_v50  ;;  %2162 = vrot.lane.b32.xlu1 %v4754_v27, %s4201_s16  ;;  %v1158_v58 = vmul.f32 %v5478_v9, %v1131_v54  ;;  %v5568_v16 = vpop.permute.xlu0 %934  ;;  %v878_v50 = vld [vmem:[%s7399_s4 + $0x190] sm:$0xff] }
 0x222   : > { %7788 = vst [vmem:[#allocation143_spill] sm:$0xff] %v5528_v24  ;;  %7790 = vst [vmem:[#allocation145_spill] sm:$0xff] %v5539_v11  ;;  %v5566_v10 = vrot.slane %v5486_v37, %v5297_v32  ;;  %v1327_v17 = vsel %vm1308_vm3, %v4790_v13, %v4704_v22  ;;  %v947_v39 = vsel %vm940_vm2, %v4818_v28, %v4714_v34  ;;  %v5586_v54 = vpop.permute.xlu1 %1072 }
 0x223   : > { %7789 = vst [vmem:[#allocation144_spill] sm:$0xff] %v5536_v30  ;;  %7791 = vst [vmem:[#allocation146_spill] sm:$0xff] %v5542_v14  ;;  %v1041_v15 = vmul.f32 %v4499_v33, %v987_v57  ;;  %v941_v32 = vsel %vm940_vm2, %v4714_v34, %v4826_v61  ;;  %v986_v22 = vmul.f32 %v5440_v0, %v959_v42  ;;  %2448 = vperm.xlu0 %3941, %v878_v50  }
 0x224   : > { %7792 = vst [vmem:[#allocation147_spill] sm:$0xff] %v5566_v10  ;;  %7793 = vst [vmem:[#allocation148_spill] sm:$0xff] %v5568_v16  ;;  %v1517_v16 = vsel %vm1504_vm4, %v4723_v1, %v4804_v62  ;;  %v1160_v48 = vmul.f32 %v5475_v26, %v1119_v2  ;;  %v1161_v28 = vmul.f32 %v5481_v63, %v1113_v25 }
 0x225   : > { %7794 = vst [vmem:[#allocation149_spill] sm:$0xff] %v5586_v54  ;;  %v1356_v57 = vmul.f32 %v5383_v49, %v1315_v12  ;;  %v1309_v34 = vsel %vm1308_vm3, %v4712_v20, %v4790_v13  ;;  %v1237_v61 = vadd.f32 %v1213_v59, %v1041_v15  ;;  %v4175_v54 = vld [vmem:[%s7401_s6 + $0x8] sm:$0xff]  ;;  %v1511_v42 = vsel %vm1504_vm4, %v4804_v62, %v4741_v18  ;;  %v5625_v15 = vpop.permute.xlu0 %1084 }
 0x226   : > { %2519 = vperm.xlu1 %3945, %v4175_v54   ;;  %v988_v2 = vmul.f32 %v5431_v23, %v947_v39  ;;  %v989_v25 = vmul.f32 %v5443_v4, %v941_v32  ;;  %v1212_v12 = vmul.f32 %v4507_v38, %v1158_v58  ;;  %v1409_v13 = vmul.f32 %v4514_v41, %v1355_v56  ;;  %v5630_v32 = vpop.permute.xlu1 %1096 }
 0x227   : > { %v1354_v20 = vmul.f32 %v5398_v52, %v1327_v17  ;;  %v1551_v59 = vmul.f32 %v5401_v51, %v1517_v16  ;;  %v1505_v50 = vsel %vm1504_vm4, %v4741_v18, %v4812_v3  ;;  %v1523_v62 = vsel %vm1504_vm4, %v4812_v3, %v4723_v1  ;;  %7795 = vst [vmem:[#allocation150_spill] sm:$0xff] %v5625_v15  ;;  %v7818_v15 = vld [vmem:[#allocation44_spill] sm:$0xff] }
 0x228   : > { %v1040_v39 = vmul.f32 %v4499_v33, %v986_v22  ;;  %v1214_v58 = vmul.f32 %v4507_v38, %v1160_v48  ;;  %v1215_v56 = vmul.f32 %v4507_v38, %v1161_v28  ;;  %v1357_v17 = vmul.f32 %v5415_v35, %v1309_v34  ;;  %7796 = vst [vmem:[#allocation151_spill] sm:$0xff] %v5630_v32  ;;  %v7798_v34 = vld [vmem:[#allocation39_spill] sm:$0xff] }
 0x229   : > { %v1552_v16 = vmul.f32 %v5404_v53, %v1511_v42  ;;  %v1433_v18 = vadd.f32 %v1409_v13, %v1237_v61  ;;  %1270 = vrot.lane.b32.xlu0 %v5109_v47, %s7797_s18  ;;  %v1042_v1 = vmul.f32 %v4499_v33, %v988_v2  ;;  %v1043_v38 = vmul.f32 %v4499_v33, %v989_v25  ;;  %v7799_v42 = vld [vmem:[#allocation29_spill] sm:$0xff] }
 0x22a   : > { %1282 = vrot.lane.b32.xlu1 %v5132_v8, %s7797_s18  ;;  %v1236_v3 = vadd.f32 %v1212_v12, %v1040_v39  ;;  %v1785_v48 = vsel %vm1778_vm5, %v4853_v44, %v4768_v5  ;;  %v1605_v54 = vmul.f32 %v4528_v46, %v1551_v59  ;;  %v1550_v22 = vmul.f32 %v5418_v40, %v1523_v62 }
 0x22b   : > { %3946 = vset.pattern.permute.xlu1 %v7712_v29  ;;  %v1553_v28 = vmul.f32 %v5421_v60, %v1505_v50  ;;  %v1981_v61 = vsel %vm1974_vm6, %v7798_v34, %v4766_v36  ;;  %v1408_v33 = vmul.f32 %v4514_v41, %v1354_v20  ;;  %v1987_v2 = vsel %vm1974_vm6, %v7799_v42, %v7798_v34 }
 0x22c   : > { %v1238_v25 = vadd.f32 %v1214_v58, %v1042_v1  ;;  %v1239_v12 = vadd.f32 %v1215_v56, %v1043_v38  ;;  %v1410_v13 = vmul.f32 %v4514_v41, %v1356_v57  ;;  %v1629_v59 = vadd.f32 %v1605_v54, %v1433_v18  ;;  %v5667_v56 = vpop.permute.xlu0 %1108  ;;  %v7802_v18 = vld [vmem:[#allocation130_spill] sm:$0xff]  ;;  %v5681_v1 = vpop.permute.xlu1 %1498  ;;  %v862_v38 = vld [vmem:[%s7399_s4 + $0x110] sm:$0xff]  ;;  %v7805_v54 = vld [vmem:[#allocation47_spill] sm:$0xff] }
 0x22d   : > { %v1825_v62 = vmul.f32 %v5512_v43, %v1785_v48  ;;  %v5660_v50 = vrot.slane %v5486_v37, %v5340_v31  ;;  %1294 = vrot.lane.b32.xlu0 %v5129_v7, %s7797_s18  ;;  %v1411_v20 = vmul.f32 %v4514_v41, %v1357_v17  ;;  %v1606_v39 = vmul.f32 %v4528_v46, %v1552_v16  ;;  %v851_v37 = vld [vmem:[%s7399_s4 + $0xb8] sm:$0xff]  ;;  %v7803_v17 = vld [vmem:[#allocation40_spill] sm:$0xff] }
 0x22e   : > { %v2021_v34 = vmul.f32 %v5458_v55, %v1981_v61  ;;  %v1432_v58 = vadd.f32 %v1408_v33, %v1236_v3  ;;  %7801 = vst [vmem:[#allocation29_spill] sm:$0xff] %v5667_v56  ;;  %1306 = vrot.lane.b32.xlu1 %v5152_v19, %s7797_s18  ;;  %v1604_v31 = vmul.f32 %v4528_v46, %v1550_v22  ;;  %7804 = vst [vmem:[#allocation40_spill] sm:$0xff] %v5681_v1  ;;  %v7807_v61 = vld [vmem:[#allocation30_spill] sm:$0xff] }
 0x22f   : > { %7800 = vst [vmem:[#allocation39_spill] sm:$0xff] %v5660_v50  ;;  %v1607_v57 = vmul.f32 %v4528_v46, %v1553_v28  ;;  %v2020_v41 = vmul.f32 %v7802_v18, %v1987_v2  ;;  %v1975_v16 = vsel %vm1974_vm6, %v4766_v36, %v7803_v17  ;;  %v1993_v3 = vsel %vm1974_vm6, %v7803_v17, %v7799_v42  ;;  %v7806_v28 = vld [vmem:[#allocation107_spill] sm:$0xff]  ;;  %v7808_v2 = vld [vmem:[#allocation8_spill] sm:$0xff] }
 0x230   : > { %v1434_v48 = vadd.f32 %v1410_v13, %v1238_v25  ;;  %v1435_v46 = vadd.f32 %v1411_v20, %v1239_v12  ;;  %v1779_v22 = vsel %vm1778_vm5, %v4768_v5, %v7805_v54  ;;  %v1707_v36 = vadd.f32 %v7806_v28, %v1629_v59  ;;  %v7809_v25 = vld [vmem:[#allocation10_spill] sm:$0xff]  ;;  %v7810_v13 = vld [vmem:[#allocation132_spill] sm:$0xff]  ;;  %v7811_v5 = vld [vmem:[#allocation41_spill] sm:$0xff] }
 0x231   : > { %v1791_v33 = vsel %vm1778_vm5, %v7807_v61, %v4853_v44  ;;  %v1879_v29 = vmul.f32 %v7808_v2, %v1825_v62  ;;  %v1797_v42 = vsel %vm1778_vm5, %v7805_v54, %v7807_v61  ;;  %1601 = vperm.xlu0 %3941, %v851_v37   ;;  %v2075_v12 = vmul.f32 %v7809_v25, %v2021_v34  ;;  %v7812_v17 = vld [vmem:[#allocation31_spill] sm:$0xff]  ;;  %v7813_v44 = vld [vmem:[#allocation133_spill] sm:$0xff]  ;;  %v7814_v62 = vld [vmem:[#allocation34_spill] sm:$0xff] }
 0x232   : > { %v2022_v20 = vmul.f32 %v7810_v13, %v1975_v16  ;;  %v2183_v59 = vsel %vm2170_vm7, %v7812_v17, %v7811_v5  ;;  %v1628_v28 = vadd.f32 %v1604_v31, %v1432_v58  ;;  %1870 = vperm.xlu1 %3946, %v862_v38   ;;  %v2023_v1 = vmul.f32 %v7813_v44, %v1993_v3  ;;  %v7815_v54 = vld [vmem:[#allocation42_spill] sm:$0xff]  ;;  %v5726_v3 = vpop.permute.xlu0 %1486  ;;  %v7817_v61 = vld [vmem:[#allocation136_spill] sm:$0xff]  ;;  %v7819_v44 = vld [vmem:[#allocation37_spill] sm:$0xff]  ;;  %v5733_v13 = vpop.permute.xlu1 %1734 }
 0x233   : > { %v2177_v56 = vsel %vm2170_vm7, %v7811_v5, %v7814_v62  ;;  %v2171_v34 = vsel %vm2170_vm7, %v7814_v62, %v7815_v54  ;;  %v1826_v37 = vmul.f32 %v5539_v11, %v1779_v22  ;;  %v2189_v58 = vsel %vm2170_vm7, %v7815_v54, %v7812_v17  ;;  %7816 = vst [vmem:[#allocation47_spill] sm:$0xff] %v5726_v3  ;;  %v7821_v17 = vld [vmem:[#allocation32_spill] sm:$0xff]  ;;  %v7824_v54 = vld [vmem:[#allocation38_spill] sm:$0xff] }
 0x234   : > { %v1824_v31 = vmul.f32 %v5509_v21, %v1791_v33  ;;  %v1631_v16 = vadd.f32 %v1607_v57, %v1435_v46  ;;  %v1827_v38 = vmul.f32 %v5542_v14, %v1797_v42  ;;  %v2216_v5 = vmul.f32 %v7817_v61, %v2183_v59  ;;  %7820 = vst [vmem:[#allocation107_spill] sm:$0xff] %v5733_v13  ;;  %v7822_v33 = vld [vmem:[#allocation137_spill] sm:$0xff]  ;;  %v7827_v13 = vld [vmem:[#allocation139_spill] sm:$0xff] }
 0x235   : > { %v1903_v32 = vadd.f32 %v1879_v29, %v1707_v36  ;;  %v2379_v22 = vsel %vm2366_vm8, %v7819_v44, %v7818_v15  ;;  %v1630_v62 = vadd.f32 %v1606_v39, %v1434_v48  ;;  %1932 = vrot.lane.b32.xlu0 %v7821_v17, %s4199_s14  ;;  %v2217_v57 = vmul.f32 %v7822_v33, %v2177_v56  ;;  %v7823_v46 = vld [vmem:[#allocation105_spill] sm:$0xff]  ;;  %v7825_v36 = vld [vmem:[#allocation48_spill] sm:$0xff]  ;;  %v7831_v17 = vld [vmem:[#allocation35_spill] sm:$0xff] }
 0x236   : > { %v1706_v42 = vadd.f32 %v7823_v46, %v1628_v28  ;;  %v2373_v29 = vsel %vm2366_vm8, %v7818_v15, %v7824_v54  ;;  %v2367_v59 = vsel %vm2366_vm8, %v7824_v54, %v7825_v36  ;;  %v7826_v39 = vld [vmem:[#allocation33_spill] sm:$0xff]  ;;  %v2218_v48 = vmul.f32 %v5503_v6, %v2171_v34  ;;  %v7830_v6 = vld [vmem:[#allocation108_spill] sm:$0xff] }
 0x237   : > { %1944 = vrot.lane.b32.xlu1 %v7826_v39, %s4199_s14  ;;  %v2219_v61 = vmul.f32 %v7827_v13, %v2189_v58  ;;  %v1880_v56 = vmul.f32 %v7808_v2, %v1826_v37  ;;  %v2385_v28 = vsel %vm2366_vm8, %v7825_v36, %v7819_v44  ;;  %v1878_v15 = vmul.f32 %v7808_v2, %v1824_v31  ;;  %v7828_v33 = vld [vmem:[#allocation109_spill] sm:$0xff]  ;;  %v5760_v39 = vpop.permute.xlu0 %1669  ;;  %v5781_v36 = vpop.permute.xlu1 %1758 }
 0x238   : > { %v2412_v46 = vmul.f32 %v5528_v24, %v2379_v22  ;;  %v1709_v54 = vadd.f32 %v7828_v33, %v1631_v16  ;;  %v1881_v3 = vmul.f32 %v7808_v2, %v1827_v38  ;;  %7829 = vst [vmem:[#allocation30_spill] sm:$0xff] %v5760_v39  ;;  %v2099_v34 = vadd.f32 %v2075_v12, %v1903_v32  ;;  %v7832_v44 = vld [vmem:[#allocation17_spill] sm:$0xff]  ;;  %v7834_v32 = vld [vmem:[#allocation36_spill] sm:$0xff] }
 0x239   : > { %v2413_v58 = vmul.f32 %v5536_v30, %v2373_v29  ;;  %v1708_v37 = vadd.f32 %v7830_v6, %v1630_v62  ;;  %v2414_v13 = vmul.f32 %v5566_v10, %v2367_v59  ;;  %1956 = vrot.lane.b32.xlu0 %v7831_v17, %s4199_s14  ;;  %v5769_v31 = vmul.f32 %v7832_v44, %v4754_v27  ;;  %v873_v6 = vld [vmem:[%s7399_s4 + $0x168] sm:$0xff] }
 0x23a   : > { %v2074_v16 = vmul.f32 %v7809_v25, %v2020_v41  ;;  %v1902_v22 = vadd.f32 %v1878_v15, %v1706_v42  ;;  %v2415_v2 = vmul.f32 %v5660_v50, %v2385_v28  ;;  %v2076_v12 = vmul.f32 %v7809_v25, %v2022_v20  ;;  %v7835_v62 = vld [vmem:[#allocation15_spill] sm:$0xff]  ;;  %7836 = vst [vmem:[#allocation10_spill] sm:$0xff] %v5781_v36  ;;  %v7855_v50 = vld [vmem:[#allocation126_spill] sm:$0xff] }
 0x23b   : > { %7833 = vst [vmem:[#allocation8_spill] sm:$0xff] %v5769_v31  ;;  %1968 = vrot.lane.b32.xlu1 %v7834_v32, %s4199_s14  ;;  %v2077_v38 = vmul.f32 %v7809_v25, %v2023_v1  ;;  %v2271_v33 = vmul.f32 %v7835_v62, %v2217_v57  ;;  %v1904_v29 = vadd.f32 %v1880_v56, %v1708_v37  ;;  %v5786_v15 = vpop.permute.xlu0 %1746  ;;  %v7838_v44 = vld [vmem:[#allocation19_spill] sm:$0xff]  ;;  %v7839_v37 = vld [vmem:[#allocation57_spill] sm:$0xff] }
 0x23c   : > { %v2270_v41 = vmul.f32 %v7835_v62, %v2216_v5  ;;  %v2272_v42 = vmul.f32 %v7835_v62, %v2218_v48  ;;  %v2273_v59 = vmul.f32 %v7835_v62, %v2219_v61  ;;  %v1905_v28 = vadd.f32 %v1881_v3, %v1709_v54  ;;  %7837 = vst [vmem:[#allocation41_spill] sm:$0xff] %v5786_v15  ;;  %v7840_v5 = vld [vmem:[#allocation58_spill] sm:$0xff]  ;;  %v7841_v3 = vld [vmem:[#allocation55_spill] sm:$0xff]  ;;  %v7854_v15 = vld [vmem:[#allocation28_spill] sm:$0xff] }
 0x23d   : > { %v2466_v39 = vmul.f32 %v7838_v44, %v2412_v46  ;;  %v2467_v20 = vmul.f32 %v7838_v44, %v2413_v58  ;;  %v2468_v1 = vmul.f32 %v7838_v44, %v2414_v13  ;;  %2257 = vperm.xlu0 %3941, %v873_v6   ;;  %v2295_v25 = vadd.f32 %v2271_v33, %v2099_v34  ;;  %v7842_v46 = vld [vmem:[#allocation25_spill] sm:$0xff]  ;;  %v7843_v13 = vld [vmem:[#allocation54_spill] sm:$0xff]  ;;  %v7844_v58 = vld [vmem:[#allocation51_spill] sm:$0xff] }
 0x23e   : > { %v2098_v57 = vadd.f32 %v2074_v16, %v1902_v22  ;;  %v2469_v56 = vmul.f32 %v7838_v44, %v2415_v2  ;;  %v1120_v48 = vsel %vm1112_vm1, %v7840_v5, %v7839_v37  ;;  %v1126_v61 = vsel %vm1112_vm1, %v7841_v3, %v7840_v5  ;;  %v7845_v16 = vld [vmem:[#allocation60_spill] sm:$0xff]  ;;  %v5814_v6 = vpop.permute.xlu1 %2056  ;;  %v7847_v33 = vld [vmem:[#allocation53_spill] sm:$0xff]  ;;  %v7849_v44 = vld [vmem:[#allocation62_spill] sm:$0xff] }
 0x23f   : > { %2322 = vrot.lane.b32.xlu1 %v7842_v46, %s4202_s17  ;;  %v2100_v54 = vadd.f32 %v2076_v12, %v1904_v29  ;;  %v954_v34 = vsel %vm940_vm2, %v7844_v58, %v7843_v13  ;;  %v1114_v22 = vsel %vm1112_vm1, %v7839_v37, %v7845_v16  ;;  %v1132_v2 = vsel %vm1112_vm1, %v7845_v16, %v7841_v3  ;;  %v7848_v29 = vld [vmem:[#allocation61_spill] sm:$0xff]  ;;  %v7850_v37 = vld [vmem:[#allocation59_spill] sm:$0xff]  ;;  %v5828_v36 = vpop.permute.xlu0 %1770  ;;  %v7852_v3 = vld [vmem:[#allocation56_spill] sm:$0xff] }
 0x240   : > { %7846 = vst [vmem:[#allocation31_spill] sm:$0xff] %v5814_v6  ;;  %v2101_v62 = vadd.f32 %v2077_v38, %v1905_v28  ;;  %v948_v12 = vsel %vm940_vm2, %v7843_v13, %v7847_v33  ;;  %v1316_v5 = vsel %vm1308_vm3, %v7849_v44, %v7848_v29  ;;  %v1322_v46 = vsel %vm1308_vm3, %v7850_v37, %v7849_v44  ;;  %v7853_v13 = vld [vmem:[#allocation128_spill] sm:$0xff] }
 0x241   : > { %7851 = vst [vmem:[#allocation34_spill] sm:$0xff] %v5828_v36  ;;  %v942_v38 = vsel %vm940_vm2, %v7847_v33, %v7852_v3  ;;  %v960_v28 = vsel %vm940_vm2, %v7852_v3, %v7844_v58  ;;  %v1163_v16 = vmul.f32 %v7853_v13, %v1126_v61  ;;  %v1164_v6 = vmul.f32 %v5475_v26, %v1120_v48  ;;  %v7856_v33 = vld [vmem:[#allocation27_spill] sm:$0xff]  ;;  %v7857_v58 = vld [vmem:[#allocation118_spill] sm:$0xff] }
 0x242   : > { %2334 = vrot.lane.b32.xlu0 %v7854_v15, %s4202_s17  ;;  %v2294_v44 = vadd.f32 %v2270_v41, %v2098_v57  ;;  %v991_v36 = vmul.f32 %v7855_v50, %v954_v34  ;;  %v1162_v10 = vmul.f32 %v5478_v9, %v1132_v2  ;;  %v1165_v30 = vmul.f32 %v5481_v63, %v1114_v22  ;;  %v5850_v48 = vpop.permute.xlu1 %2136  ;;  %v7859_v34 = vld [vmem:[#allocation64_spill] sm:$0xff] }
 0x243   : > { %2346 = vrot.lane.b32.xlu1 %v7856_v33, %s4202_s17  ;;  %v992_v24 = vmul.f32 %v5431_v23, %v948_v12  ;;  %v1359_v3 = vmul.f32 %v7857_v58, %v1322_v46  ;;  %v1360_v61 = vmul.f32 %v5383_v49, %v1316_v5  ;;  %7858 = vst [vmem:[#allocation42_spill] sm:$0xff] %v5850_v48  ;;  %v5858_v2 = vpop.permute.xlu0 %2124  ;;  %v7861_v12 = vld [vmem:[#allocation3_spill] sm:$0xff] }
 0x244   : > { %v2491_v31 = vadd.f32 %v2467_v20, %v2295_v25  ;;  %v2296_v15 = vadd.f32 %v2272_v42, %v2100_v54  ;;  %v990_v41 = vmul.f32 %v5440_v0, %v960_v28  ;;  %v993_v57 = vmul.f32 %v5443_v4, %v942_v38  ;;  %7860 = vst [vmem:[#allocation44_spill] sm:$0xff] %v5858_v2  ;;  %v7862_v54 = vld [vmem:[#allocation2_spill] sm:$0xff]  ;;  %v7863_v28 = vld [vmem:[#allocation4_spill] sm:$0xff] }
 0x245   : > { %v1328_v22 = vsel %vm1308_vm3, %v7859_v34, %v7850_v37  ;;  %v1217_v33 = vmul.f32 %v7861_v12, %v1163_v16  ;;  %v1218_v46 = vmul.f32 %v7861_v12, %v1164_v6  ;;  %v1310_v42 = vsel %vm1308_vm3, %v7848_v29, %v7859_v34 }
 0x246   : > { %2358 = vrot.lane.b32.xlu0 %v4754_v27, %s4202_s17  ;;  %v2297_v20 = vadd.f32 %v2273_v59, %v2101_v62  ;;  %v2490_v25 = vadd.f32 %v2466_v39, %v2294_v44  ;;  %v1045_v5 = vmul.f32 %v7862_v54, %v991_v36  ;;  %v1216_v37 = vmul.f32 %v7861_v12, %v1162_v10  ;;  %v5877_v27 = vpop.permute.xlu1 %2160 }
 0x247   : > { %v1219_v38 = vmul.f32 %v7861_v12, %v1165_v30  ;;  %1466 = vrot.lane.b32.xlu1 %v5109_v47, %s4197_s29  ;;  %v1046_v6 = vmul.f32 %v7862_v54, %v992_v24  ;;  %v1413_v16 = vmul.f32 %v7863_v28, %v1359_v3  ;;  %v1414_v29 = vmul.f32 %v7863_v28, %v1360_v61  ;;  %v5882_v59 = vpop.permute.xlu0 %2148  ;;  %v7866_v24 = vld [vmem:[#allocation71_spill] sm:$0xff]  ;;  %v7867_v12 = vld [vmem:[#allocation50_spill] sm:$0xff] }
 0x248   : > { %v1358_v34 = vmul.f32 %v5398_v52, %v1328_v22  ;;  %7864 = vst [vmem:[#allocation37_spill] sm:$0xff] %v5877_v27  ;;  %v2492_v39 = vadd.f32 %v2468_v1, %v2296_v15  ;;  %v1044_v36 = vmul.f32 %v7862_v54, %v990_v41  ;;  %v1047_v10 = vmul.f32 %v7862_v54, %v993_v57  ;;  %v7868_v41 = vld [vmem:[#allocation52_spill] sm:$0xff]  ;;  %v7869_v22 = vld [vmem:[#allocation73_spill] sm:$0xff] }
 0x249   : > { %v1361_v30 = vmul.f32 %v5415_v35, %v1310_v42  ;;  %7865 = vst [vmem:[#allocation105_spill] sm:$0xff] %v5882_v59  ;;  %v1241_v62 = vadd.f32 %v1217_v33, %v1045_v5  ;;  %v1242_v44 = vadd.f32 %v1218_v46, %v1046_v6  ;;  %v1518_v3 = vsel %vm1504_vm4, %v7867_v12, %v7866_v24  ;;  %v857_v5 = vld [vmem:[%s7399_s4 + $0xe8] sm:$0xff] }
 0x24a   : > { %1478 = vrot.lane.b32.xlu0 %v5132_v8, %s4197_s29  ;;  %v2493_v61 = vadd.f32 %v2469_v56, %v2297_v20  ;;  %v1240_v1 = vadd.f32 %v1216_v37, %v1044_v36  ;;  %v1243_v15 = vadd.f32 %v1219_v38, %v1047_v10  ;;  %v1512_v57 = vsel %vm1504_vm4, %v7866_v24, %v7868_v41  ;;  %v2516_v20 = vpop.permute.xlu1 %2515 }
 0x24b   : > { %v1524_v33 = vsel %vm1504_vm4, %v7869_v22, %v7867_v12  ;;  %1490 = vrot.lane.b32.xlu1 %v5129_v7, %s4197_s29  ;;  %v1437_v46 = vadd.f32 %v1413_v16, %v1241_v62  ;;  %v1438_v42 = vadd.f32 %v1414_v29, %v1242_v44  ;;  %v1412_v54 = vmul.f32 %v7863_v28, %v1358_v34  ;;  %v5914_v29 = vpop.permute.xlu0 %2443 }
 0x24c   : > { %v1506_v56 = vsel %vm1504_vm4, %v7868_v41, %v7869_v22  ;;  %v1415_v37 = vmul.f32 %v7863_v28, %v1361_v30  ;;  %v1555_v38 = vmul.f32 %v5401_v51, %v1518_v3  ;;  %v5910_v6 = vadd.f32 %v2516_v20, %v2490_v25  ;;  %7870 = vst [vmem:[#allocation38_spill] sm:$0xff] %v5914_v29  ;;  %v7872_v28 = vld [vmem:[#allocation65_spill] sm:$0xff]  ;;  %v7873_v30 = vld [vmem:[#allocation66_spill] sm:$0xff]  ;;  %v7874_v3 = vld [vmem:[#allocation63_spill] sm:$0xff] }
 0x24d   : > { %v5912_v16 = vadd.f32 %v2516_v20, %v2492_v39  ;;  %v1556_v34 = vmul.f32 %v5404_v53, %v1512_v57  ;;  %v1554_v36 = vmul.f32 %v5418_v40, %v1524_v33  ;;  %v5920_v10 = vadd.f32 %v2516_v20, %v2491_v31  ;;  %v7875_v22 = vld [vmem:[#allocation7_spill] sm:$0xff] }
 0x24e   : > { %1502 = vrot.lane.b32.xlu0 %v5152_v19, %s4197_s29  ;;  %v5922_v62 = vadd.f32 %v2516_v20, %v2493_v61  ;;  %v1786_v25 = vsel %vm1778_vm5, %v7873_v30, %v7872_v28  ;;  %v1557_v39 = vmul.f32 %v5421_v60, %v1506_v56  ;;  %v2562_v44 = vsub.f32 0.0, %v5910_v6 }
 0x24f   : > { %v2564_v24 = vsub.f32 0.0, %v5912_v16  ;;  %1679 = vperm.xlu1 %3946, %v857_v5   ;;  %v1436_v12 = vadd.f32 %v1412_v54, %v1240_v1  ;;  %v1792_v31 = vsel %vm1778_vm5, %v7874_v3, %v7873_v30  ;;  %v2563_v61 = vsub.f32 0.0, %v5920_v10  ;;  %v5938_v29 = vpop.permute.xlu0 %1037  ;;  %v5940_v59 = vpop.permute.xlu1 %1209  ;;  %v7878_v5 = vld [vmem:[#allocation43_spill] sm:$0xff] }
 0x250   : > { %7871 = vst [vmem:[#allocation48_spill] sm:$0xff] %v5922_v62  ;;  %v2565_v41 = vsub.f32 0.0, %v5922_v62  ;;  %v1439_v57 = vadd.f32 %v1415_v37, %v1243_v15  ;;  %v1609_v33 = vmul.f32 %v7875_v22, %v1555_v38  ;;  %v2586_v20 = vmul.f32 1.442695, %v2562_v44  ;;  %7876 = vst [vmem:[#allocation109_spill] sm:$0xff] %v5938_v29  ;;  %v7879_v38 = vld [vmem:[#allocation45_spill] sm:$0xff] }
 0x251   : > { %v2590_v56 = vmul.f32 1.442695, %v2564_v24  ;;  %7877 = vst [vmem:[#allocation108_spill] sm:$0xff] %v5940_v59  ;;  %v1610_v1 = vmul.f32 %v7875_v22, %v1556_v34  ;;  %v1608_v54 = vmul.f32 %v7875_v22, %v1554_v36  ;;  %v2588_v30 = vmul.f32 1.442695, %v2563_v61  ;;  %v7880_v44 = vld [vmem:[#allocation68_spill] sm:$0xff] }
 0x252   : > { %1738 = vrot.lane.b32.xlu0 %v7878_v5, %s4200_s15  ;;  %v2592_v27 = vmul.f32 1.442695, %v2565_v41  ;;  %v1828_v2 = vmul.f32 %v5509_v21, %v1792_v31  ;;  %v1829_v15 = vmul.f32 %v5512_v43, %v1786_v25  ;;  %v1611_v37 = vmul.f32 %v7875_v22, %v1557_v39  ;;  %v7881_v24 = vld [vmem:[#allocation69_spill] sm:$0xff]  ;;  %v7882_v31 = vld [vmem:[#allocation70_spill] sm:$0xff]  ;;  %v7883_v39 = vld [vmem:[#allocation67_spill] sm:$0xff] }
 0x253   : > { %4050 = vpow2.f32 %v2586_v20  ;;  %1750 = vrot.lane.b32.xlu1 %v7879_v38, %s4200_s15  ;;  %v1780_v34 = vsel %vm1778_vm5, %v7872_v28, %v7880_v44  ;;  %v1798_v36 = vsel %vm1778_vm5, %v7880_v44, %v7874_v3  ;;  %v1982_v25 = vsel %vm1974_vm6, %v7882_v31, %v7881_v24  ;;  %v7884_v41 = vld [vmem:[#allocation72_spill] sm:$0xff]  ;;  %v5975_v22 = vpop.permute.xlu0 %1268  ;;  %v5977_v20 = vpop.permute.xlu1 %1280  ;;  %v7888_v21 = vld [vmem:[#allocation14_spill] sm:$0xff] }
 0x254   : > { %4052 = vpow2.f32 %v2590_v56  ;;  %v1988_v61 = vsel %vm1974_vm6, %v7883_v39, %v7882_v31  ;;  %v1976_v28 = vsel %vm1974_vm6, %v7881_v24, %v7884_v41  ;;  %v1994_v3 = vsel %vm1974_vm6, %v7884_v41, %v7883_v39  ;;  %7885 = vst [vmem:[#allocation17_spill] sm:$0xff] %v5975_v22  ;;  %7886 = vst [vmem:[#allocation15_spill] sm:$0xff] %v5977_v20  ;;  %v7887_v31 = vld [vmem:[#allocation46_spill] sm:$0xff]  ;;  %v7889_v39 = vld [vmem:[#allocation49_spill] sm:$0xff] }
 0x255   : > { %4054 = vpow2.f32 %v2588_v30  ;;  %v1633_v56 = vadd.f32 %v1609_v33, %v1437_v46  ;;  %v1634_v44 = vadd.f32 %v1610_v1, %v1438_v42  ;;  %v1632_v43 = vadd.f32 %v1608_v54, %v1436_v12  ;;  %v868_v46 = vld [vmem:[%s7399_s4 + $0x140] sm:$0xff]  ;;  %v7892_v54 = vld [vmem:[#allocation132_spill] sm:$0xff]  ;;  %v7893_v30 = vld [vmem:[#allocation133_spill] sm:$0xff] }
 0x256   : > { %1762 = vrot.lane.b32.xlu0 %v7887_v31, %s4200_s15  ;;  %4056 = vpow2.f32 %v2592_v27  ;;  %v1882_v48 = vmul.f32 %v7888_v21, %v1828_v2  ;;  %v1830_v24 = vmul.f32 %v5539_v11, %v1780_v34  ;;  %v1831_v59 = vmul.f32 %v5542_v14, %v1798_v36  ;;  %v7890_v33 = vld [vmem:[#allocation82_spill] sm:$0xff]  ;;  %v7891_v2 = vld [vmem:[#allocation75_spill] sm:$0xff]  ;;  %v7894_v34 = vld [vmem:[#allocation77_spill] sm:$0xff] }
 0x257   : > { %v1635_v29 = vadd.f32 %v1611_v37, %v1439_v57  ;;  %1774 = vrot.lane.b32.xlu1 %v7889_v39, %s4200_s15  ;;  %v1883_v42 = vmul.f32 %v7888_v21, %v1829_v15  ;;  %v2024_v12 = vmul.f32 %v7802_v18, %v1988_v61  ;;  %v2025_v27 = vmul.f32 %v5458_v55, %v1982_v25  ;;  %v7895_v41 = vld [vmem:[#allocation87_spill] sm:$0xff]  ;;  %v6006_v25 = vpop.permute.xlu0 %1292  ;;  %v6008_v55 = vpop.permute.xlu1 %1304  ;;  %v7899_v14 = vld [vmem:[#allocation112_spill] sm:$0xff]  ;;  %v7900_v11 = vld [vmem:[#allocation113_spill] sm:$0xff] }
 0x258   : > { %v955_v1 = vsel %vm940_vm2, %v7891_v2, %v7890_v33  ;;  %v2026_v57 = vmul.f32 %v7892_v54, %v1976_v28  ;;  %v2027_v37 = vmul.f32 %v7893_v30, %v1994_v3  ;;  %v949_v36 = vsel %vm940_vm2, %v7890_v33, %v7894_v34  ;;  %v7896_v15 = vld [vmem:[#allocation79_spill] sm:$0xff]  ;;  %7897 = vst [vmem:[#allocation19_spill] sm:$0xff] %v6006_v25  ;;  %v7902_v30 = vld [vmem:[#allocation81_spill] sm:$0xff]  ;;  %v7903_v22 = vld [vmem:[#allocation114_spill] sm:$0xff] }
 0x259   : > { %v1127_v61 = vsel %vm1112_vm1, %v7896_v15, %v7895_v41  ;;  %7898 = vst [vmem:[#allocation57_spill] sm:$0xff] %v6008_v55  ;;  %v1711_v18 = vadd.f32 %v7899_v14, %v1633_v56  ;;  %v1712_v28 = vadd.f32 %v7900_v11, %v1634_v44  ;;  %v7901_v54 = vld [vmem:[#allocation111_spill] sm:$0xff]  ;;  %v1121_v33 = vsel %vm1112_vm1, %v7895_v41, %v7902_v30  ;;  %v7904_v14 = vld [vmem:[#allocation32_spill] sm:$0xff] }
 0x25a   : > { %v1710_v3 = vadd.f32 %v7901_v54, %v1632_v43  ;;  %2066 = vperm.xlu0 %3941, %v868_v46   ;;  %v1884_v19 = vmul.f32 %v7888_v21, %v1830_v24  ;;  %v1885_v8 = vmul.f32 %v7888_v21, %v1831_v59  ;;  %v1713_v25 = vadd.f32 %v7903_v22, %v1635_v29  ;;  %v7905_v43 = vld [vmem:[#allocation76_spill] sm:$0xff]  ;;  %v7906_v56 = vld [vmem:[#allocation83_spill] sm:$0xff]  ;;  %v7907_v46 = vld [vmem:[#allocation74_spill] sm:$0xff] }
 0x25b   : > { %v995_v55 = vmul.f32 %v7855_v50, %v955_v1  ;;  %2128 = vrot.lane.b32.xlu1 %v7904_v14, %s4201_s16  ;;  %v996_v11 = vmul.f32 %v5431_v23, %v949_v36  ;;  %v1317_v44 = vsel %vm1308_vm3, %v7906_v56, %v7905_v43  ;;  %v1323_v24 = vsel %vm1308_vm3, %v7907_v46, %v7906_v56  ;;  %v7908_v59 = vld [vmem:[#allocation18_spill] sm:$0xff]  ;;  %v6043_v36 = vpop.permute.xlu0 %1596  ;;  %v6045_v41 = vpop.permute.xlu1 %1865  ;;  %v7921_v62 = vld [vmem:[#allocation80_spill] sm:$0xff] }
 0x25c   : > { %v1167_v21 = vmul.f32 %v7853_v13, %v1127_v61  ;;  %v6034_v29 = vmul.f32 %v7908_v59, %v2024_v12  ;;  %v6037_v22 = vmul.f32 %v7908_v59, %v2025_v27  ;;  %v6040_v1 = vmul.f32 %v7908_v59, %v2026_v57  ;;  %7909 = vst [vmem:[#allocation58_spill] sm:$0xff] %v6043_v36  ;;  %v7911_v27 = vld [vmem:[#allocation33_spill] sm:$0xff] }
 0x25d   : > { %v1168_v54 = vmul.f32 %v5475_v26, %v1121_v33  ;;  %7910 = vst [vmem:[#allocation55_spill] sm:$0xff] %v6045_v41  ;;  %v6047_v20 = vadd.f32 %v1884_v19, %v1712_v28  ;;  %v6050_v56 = vmul.f32 %v7908_v59, %v2027_v37  ;;  %v6052_v61 = vadd.f32 %v1882_v48, %v1710_v3  ;;  %v7912_v57 = vld [vmem:[#allocation5_spill] sm:$0xff]  ;;  %v7913_v37 = vld [vmem:[#allocation6_spill] sm:$0xff]  ;;  %v7915_v3 = vld [vmem:[#allocation84_spill] sm:$0xff] }
 0x25e   : > { %v6054_v12 = vadd.f32 %v1883_v42, %v1711_v18  ;;  %2140 = vrot.lane.b32.xlu0 %v7911_v27, %s4201_s16  ;;  %v1049_v7 = vmul.f32 %v7912_v57, %v995_v55  ;;  %v1363_v33 = vmul.f32 %v7857_v58, %v1323_v24  ;;  %v1364_v36 = vmul.f32 %v5383_v49, %v1317_v44  ;;  %v7914_v42 = vld [vmem:[#allocation91_spill] sm:$0xff]  ;;  %v7919_v49 = vld [vmem:[#allocation88_spill] sm:$0xff] }
 0x25f   : > { %v6061_v47 = vadd.f32 %v1885_v8, %v1713_v25  ;;  %2152 = vrot.lane.b32.xlu1 %v7831_v17, %s4201_s16  ;;  %v1050_v48 = vmul.f32 %v7912_v57, %v996_v11  ;;  %v1221_v18 = vmul.f32 %v7913_v37, %v1167_v21  ;;  %v1115_v28 = vsel %vm1112_vm1, %v7902_v30, %v7914_v42  ;;  %v879_v8 = vld [vmem:[%s7399_s4 + $0x198] sm:$0xff]  ;;  %v6087_v21 = vpop.permute.xlu0 %1930 }
 0x260   : > { %v4051_v19 = vpop.eup %4050  ;;  %v1133_v55 = vsel %vm1112_vm1, %v7914_v42, %v7896_v15  ;;  %v943_v11 = vsel %vm940_vm2, %v7894_v34, %v7915_v3  ;;  %v961_v30 = vsel %vm940_vm2, %v7915_v3, %v7891_v2  ;;  %v1222_v44 = vmul.f32 %v7913_v37, %v1168_v54  ;;  %7916 = vst [vmem:[#allocation25_spill] sm:$0xff] %v6087_v21  ;;  %v6089_v15 = vpop.permute.xlu1 %1942  ;;  %v7918_v42 = vld [vmem:[#allocation85_spill] sm:$0xff]  ;;  %v7920_v2 = vld [vmem:[#allocation78_spill] sm:$0xff] }
 0x261   : > { %v4053_v25 = vpop.eup %4052  ;;  %v2634_v24 = vadd.f32 1.0, %v4051_v19  ;;  %7917 = vst [vmem:[#allocation54_spill] sm:$0xff] %v6089_v15  ;;  %v1311_v41 = vsel %vm1308_vm3, %v7905_v43, %v7918_v42  ;;  %v1329_v34 = vsel %vm1308_vm3, %v7918_v42, %v7907_v46  ;;  %v1519_v54 = vsel %vm1504_vm4, %v7920_v2, %v7919_v49 }
 0x262   : > { %v4055_v59 = vpop.eup %4054  ;;  %v2636_v19 = vadd.f32 1.0, %v4053_v25  ;;  %2164 = vrot.lane.b32.xlu0 %v7834_v32, %s4201_s16  ;;  %v1166_v21 = vmul.f32 %v5478_v9, %v1133_v55  ;;  %v1169_v15 = vmul.f32 %v5481_v63, %v1115_v28  ;;  %v1245_v27 = vadd.f32 %v1221_v18, %v1049_v7  ;;  %v863_v25 = vld [vmem:[%s7399_s4 + $0x118] sm:$0xff] }
 0x263   : > { %v4057_v3 = vpop.eup %4056  ;;  %4058 = vrcp.f32 %v2634_v24  ;;  %2453 = vperm.xlu1 %3946, %v879_v8   ;;  %v2635_v43 = vadd.f32 1.0, %v4055_v59  ;;  %v1513_v46 = vsel %vm1504_vm4, %v7919_v49, %v7921_v62  ;;  %v994_v32 = vmul.f32 %v5440_v0, %v961_v30  ;;  %v6116_v24 = vpop.permute.xlu0 %1954  ;;  %v7924_v7 = vld [vmem:[#allocation9_spill] sm:$0xff]  ;;  %v7925_v59 = vld [vmem:[#allocation92_spill] sm:$0xff] }
 0x264   : > { %4060 = vrcp.f32 %v2636_v19  ;;  %v2637_v42 = vadd.f32 1.0, %v4057_v3  ;;  %v997_v55 = vmul.f32 %v5443_v4, %v943_v11  ;;  %v1246_v28 = vadd.f32 %v1222_v44, %v1050_v48  ;;  %7922 = vst [vmem:[#allocation51_spill] sm:$0xff] %v6116_v24  ;;  %v6118_v8 = vpop.permute.xlu1 %1966 }
 0x265   : > { %7923 = vst [vmem:[#allocation60_spill] sm:$0xff] %v6118_v8  ;;  %4062 = vrcp.f32 %v2635_v43  ;;  %v1417_v18 = vmul.f32 %v7924_v7, %v1363_v33  ;;  %v1559_v49 = vmul.f32 %v5401_v51, %v1519_v54  ;;  %v1525_v19 = vsel %vm1504_vm4, %v7925_v59, %v7920_v2 }
 0x266   : > { %1946 = vrot.lane.b32.xlu0 %v7879_v38, %s4199_s14  ;;  %4064 = vrcp.f32 %v2637_v42  ;;  %v1418_v48 = vmul.f32 %v7924_v7, %v1364_v36  ;;  %v1560_v11 = vmul.f32 %v5404_v53, %v1513_v46  ;;  %v1220_v30 = vmul.f32 %v7913_v37, %v1166_v21 }
 0x267   : > { %v1223_v44 = vmul.f32 %v7913_v37, %v1169_v15  ;;  %1875 = vperm.xlu1 %3946, %v863_v25   ;;  %v1362_v33 = vmul.f32 %v5398_v52, %v1329_v34  ;;  %v1365_v54 = vmul.f32 %v5415_v35, %v1311_v41  ;;  %v1441_v3 = vadd.f32 %v1417_v18, %v1245_v27  ;;  %v6141_v42 = vpop.permute.xlu0 %2252  ;;  %v7928_v27 = vld [vmem:[#allocation13_spill] sm:$0xff]  ;;  %v7929_v34 = vld [vmem:[#allocation94_spill] sm:$0xff]  ;;  %v7930_v25 = vld [vmem:[#allocation95_spill] sm:$0xff] }
 0x268   : > { %v1507_v2 = vsel %vm1504_vm4, %v7921_v62, %v7925_v59  ;;  %v1048_v43 = vmul.f32 %v7912_v57, %v994_v32  ;;  %v1051_v36 = vmul.f32 %v7912_v57, %v997_v55  ;;  %v1442_v46 = vadd.f32 %v1418_v48, %v1246_v28  ;;  %7926 = vst [vmem:[#allocation53_spill] sm:$0xff] %v6141_v42  ;;  %v6143_v37 = vpop.permute.xlu1 %2320  ;;  %v7946_v42 = vld [vmem:[#allocation116_spill] sm:$0xff] }
 0x269   : > { %v1558_v21 = vmul.f32 %v5418_v40, %v1525_v19  ;;  %v6147_v41 = vadd.f32 %v6040_v1, %v6047_v20  ;;  %v1613_v15 = vmul.f32 %v7928_v27, %v1559_v49  ;;  %v956_v32 = vsel %vm940_vm2, %v7930_v25, %v7929_v34 }
 0x26a   : > { %v6156_v62 = vadd.f32 %v6037_v22, %v6054_v12  ;;  %1970 = vrot.lane.b32.xlu0 %v7889_v39, %s4199_s14  ;;  %v1614_v57 = vmul.f32 %v7928_v27, %v1560_v11  ;;  %v1244_v55 = vadd.f32 %v1220_v30, %v1048_v43  ;;  %v1247_v28 = vadd.f32 %v1223_v44, %v1051_v36  ;;  %v7934_v44 = vld [vmem:[#allocation96_spill] sm:$0xff] }
 0x26b   : > { %7927 = vst [vmem:[#allocation61_spill] sm:$0xff] %v6147_v41  ;;  %v1561_v20 = vmul.f32 %v5421_v60, %v1507_v2  ;;  %1934 = vrot.lane.b32.xlu1 %v7878_v5, %s4199_s14  ;;  %v1416_v1 = vmul.f32 %v7924_v7, %v1362_v33  ;;  %v1637_v18 = vadd.f32 %v1613_v15, %v1441_v3  ;;  %v6176_v11 = vpop.permute.xlu0 %2332  ;;  %v7980_v41 = vld [vmem:[#allocation20_spill] sm:$0xff] }
 0x26c   : > { %7931 = vst [vmem:[#allocation62_spill] sm:$0xff] %v6156_v62  ;;  %v6167_v49 = vadd.f32 %v6034_v29, %v6052_v61  ;;  %v6171_v22 = vadd.f32 %v6050_v56, %v6061_v47  ;;  %v1419_v12 = vmul.f32 %v7924_v7, %v1365_v54  ;;  %v1638_v59 = vadd.f32 %v1614_v57, %v1442_v46  ;;  %v6178_v30 = vpop.permute.xlu1 %2344  ;;  %v7935_v61 = vld [vmem:[#allocation97_spill] sm:$0xff]  ;;  %v7936_v56 = vld [vmem:[#allocation98_spill] sm:$0xff]  ;;  %v7937_v7 = vld [vmem:[#allocation99_spill] sm:$0xff] }
 0x26d   : > { %v1612_v19 = vmul.f32 %v7928_v27, %v1558_v21  ;;  %v999_v48 = vmul.f32 %v7855_v50, %v956_v32  ;;  %v962_v29 = vsel %vm940_vm2, %v7934_v44, %v7930_v25  ;;  %v950_v47 = vsel %vm940_vm2, %v7929_v34, %v7935_v61  ;;  %v7938_v54 = vld [vmem:[#allocation100_spill] sm:$0xff]  ;;  %v7939_v46 = vld [vmem:[#allocation101_spill] sm:$0xff] }
 0x26e   : > { %7932 = vst [vmem:[#allocation59_spill] sm:$0xff] %v6167_v49  ;;  %7933 = vst [vmem:[#allocation56_spill] sm:$0xff] %v6171_v22  ;;  %v1128_v33 = vsel %vm1112_vm1, %v7937_v7, %v7936_v56  ;;  %v1134_v3 = vsel %vm1112_vm1, %v7938_v54, %v7937_v7  ;;  %2324 = vrot.lane.b32.xlu0 %v7904_v14, %s4202_s17  ;;  %v1440_v2 = vadd.f32 %v1416_v1, %v1244_v55  ;;  %v7941_v32 = vld [vmem:[#allocation104_spill] sm:$0xff]  ;;  %v7942_v55 = vld [vmem:[#allocation117_spill] sm:$0xff] }
 0x26f   : > { %v1443_v43 = vadd.f32 %v1419_v12, %v1247_v28  ;;  %v1615_v36 = vmul.f32 %v7928_v27, %v1561_v20  ;;  %v1122_v21 = vsel %vm1112_vm1, %v7936_v56, %v7939_v46  ;;  %1958 = vrot.lane.b32.xlu1 %v7887_v31, %s4199_s14  ;;  %v944_v34 = vsel %vm940_vm2, %v7935_v61, %v7934_v44  ;;  %v7940_v27 = vld [vmem:[#allocation103_spill] sm:$0xff]  ;;  %v874_v20 = vld [vmem:[%s7399_s4 + $0x170] sm:$0xff]  ;;  %v6227_v7 = vpop.permute.xlu0 %2356 }
 0x270   : > { %v4059_v15 = vpop.eup %4058  ;;  %v1116_v25 = vsel %vm1112_vm1, %v7939_v46, %v7938_v54  ;;  %v1324_v57 = vsel %vm1308_vm3, %v7941_v32, %v7940_v27  ;;  %v6218_v28 = vadd.f32 %v7942_v55, %v1637_v18  ;;  %v998_v12 = vmul.f32 %v5440_v0, %v962_v29  ;;  %v6229_v54 = vpop.permute.xlu1 %900  ;;  %v7945_v18 = vld [vmem:[#allocation11_spill] sm:$0xff] }
 0x271   : > { %v4061_v1 = vpop.eup %4060  ;;  %v1000_v44 = vmul.f32 %v5431_v23, %v950_v47  ;;  %v1171_v61 = vmul.f32 %v7853_v13, %v1128_v33  ;;  %v1170_v56 = vmul.f32 %v5478_v9, %v1134_v3  ;;  %7944 = vst [vmem:[#allocation27_spill] sm:$0xff] %v6229_v54  ;;  %v1053_v55 = vmul.f32 %v7945_v18, %v999_v48 }
 0x272   : > { %7943 = vst [vmem:[#allocation28_spill] sm:$0xff] %v6218_v28  ;;  %v4063_v46 = vpop.eup %4062  ;;  %v1172_v28 = vmul.f32 %v5475_v26, %v1122_v21  ;;  %v6234_v8 = vadd.f32 %v7946_v42, %v1638_v59  ;;  %v6237_v29 = vmul.f32 %v4059_v15, %v5910_v6  ;;  %2348 = vrot.lane.b32.xlu0 %v7831_v17, %s4202_s17  ;;  %v7951_v21 = vld [vmem:[#allocation48_spill] sm:$0xff] }
 0x273   : > { %v4065_v47 = vpop.eup %4064  ;;  %v1173_v33 = vmul.f32 %v5481_v63, %v1116_v25  ;;  %v1367_v3 = vmul.f32 %v7857_v58, %v1324_v57  ;;  %v6244_v24 = vmul.f32 %v4061_v1, %v5912_v16  ;;  %2262 = vperm.xlu1 %3946, %v874_v20   ;;  %v6247_v48 = vmul.f32 %v4063_v46, %v5920_v10  ;;  %v7953_v17 = vld [vmem:[#allocation12_spill] sm:$0xff]  ;;  %v6258_v20 = vpop.permute.xlu0 %912 }
 0x274   : > { %7947 = vst [vmem:[#allocation64_spill] sm:$0xff] %v6234_v8  ;;  %7948 = vst [vmem:[#allocation3_spill] sm:$0xff] %v6237_v29  ;;  %v1636_v42 = vadd.f32 %v1612_v19, %v1440_v2  ;;  %v1639_v59 = vadd.f32 %v1615_v36, %v1443_v43  ;;  %v1001_v6 = vmul.f32 %v5443_v4, %v944_v34  ;;  %v6260_v10 = vpop.permute.xlu1 %924  ;;  %v7956_v2 = vld [vmem:[#allocation106_spill] sm:$0xff] }
 0x275   : > { %7949 = vst [vmem:[#allocation2_spill] sm:$0xff] %v6244_v24  ;;  %7950 = vst [vmem:[#allocation4_spill] sm:$0xff] %v6247_v48  ;;  %v6251_v15 = vmul.f32 %v4065_v47, %v7951_v21  ;;  %v1052_v8 = vmul.f32 %v7945_v18, %v998_v12  ;;  %v1054_v25 = vmul.f32 %v7945_v18, %v1000_v44  ;;  %2834 = vmatprep.mubr.f32.mxu0 %v6247_v48  ;;  %v7957_v36 = vld [vmem:[#allocation110_spill] sm:$0xff]  ;;  %v7958_v12 = vld [vmem:[#allocation16_spill] sm:$0xff] }
 0x276   : > { %v1225_v57 = vmul.f32 %v7953_v17, %v1171_v61  ;;  %v1224_v16 = vmul.f32 %v7953_v17, %v1170_v56  ;;  %7954 = vst [vmem:[#allocation50_spill] sm:$0xff] %v6258_v20  ;;  %7955 = vst [vmem:[#allocation52_spill] sm:$0xff] %v6260_v10  ;;  %v1226_v19 = vmul.f32 %v7953_v17, %v1172_v28  ;;  %2835 = vmatmul.mubr.f32.vlgmr.msra.gmra.mxu0 %v6237_v29  ;;  %v7959_v61 = vld [vmem:[#allocation135_spill] sm:$0xff]  ;;  %v7960_v28 = vld [vmem:[#allocation129_spill] sm:$0xff] }
 0x277   : > { %7952 = vst [vmem:[#allocation71_spill] sm:$0xff] %v6251_v15  ;;  %v1330_v43 = vsel %vm1308_vm3, %v7956_v2, %v7941_v32  ;;  %v1318_v34 = vsel %vm1308_vm3, %v7940_v27, %v7957_v36  ;;  %2929 = vmatprep.mubr.f32.mxu1 %v6251_v15  ;;  %v1227_v1 = vmul.f32 %v7953_v17, %v1173_v33  ;;  %v7961_v32 = vld [vmem:[#allocation86_spill] sm:$0xff]  ;;  %v7962_v17 = vld [vmem:[#allocation115_spill] sm:$0xff]  ;;  %v7964_v33 = vld [vmem:[#allocation8_spill] sm:$0xff] }
 0x278   : > { %v1421_v44 = vmul.f32 %v7958_v12, %v1367_v3  ;;  %v957_v56 = vsel %vm940_vm2, %v7960_v28, %v7959_v61  ;;  %2930 = vmatmul.mubr.f32.vlgmr.msra.gmra.mxu1 %v6244_v24  ;;  %1740 = vrot.lane.b32.xlu0 %v7961_v32, %s4200_s15  ;;  %v1055_v27 = vmul.f32 %v7945_v18, %v1001_v6  ;;  %v7966_v21 = vld [vmem:[#allocation33_spill] sm:$0xff]  ;;  %v7967_v15 = vld [vmem:[#allocation119_spill] sm:$0xff]  ;;  %v7968_v18 = vld [vmem:[#allocation142_spill] sm:$0xff] }
 0x279   : > { %v1312_v46 = vsel %vm1308_vm3, %v7957_v36, %v7956_v2  ;;  %v6288_v47 = vadd.f32 %v7962_v17, %v1636_v42  ;;  %v6291_v3 = vadd.f32 %v7964_v33, %v1639_v59  ;;  %2336 = vrot.lane.b32.xlu1 %v7966_v21, %s4202_s17  ;;  %v1249_v24 = vadd.f32 %v1225_v57, %v1053_v55  ;;  %v937_v2 = vpop.permute.xlu0 %936  ;;  %v6301_v36 = vpop.permute.xlu1 %1074  ;;  %v7970_v33 = vld [vmem:[#allocation120_spill] sm:$0xff]  ;;  %v7971_v55 = vld [vmem:[#allocation122_spill] sm:$0xff]  ;;  %v7973_v20 = vld [vmem:[#allocation149_spill] sm:$0xff] }
 0x27a   : > { %v1366_v29 = vmul.f32 %v5398_v52, %v1330_v43  ;;  %v1368_v48 = vmul.f32 %v7967_v15, %v1318_v34  ;;  %v951_v6 = vsel %vm940_vm2, %v7959_v61, %v7968_v18  ;;  %v7969_v42 = vmov 1  }
 0x27b   : > { %7963 = vst [vmem:[#allocation73_spill] sm:$0xff] %v6288_v47  ;;  %7965 = vst [vmem:[#allocation65_spill] sm:$0xff] %v6291_v3  ;;  %3947 = vset.pattern.permute.xlu1 %v7969_v42  ;;  %v6304_v59 = vadd.f32 %v1224_v16, %v1052_v8  ;;  %v6306_v17 = vadd.f32 %v1226_v19, %v1054_v25  ;;  %v1520_v57 = vsel %vm1504_vm4, %v7971_v55, %v7970_v33  ;;  %v7972_v47 = vld [vmem:[#allocation150_spill] sm:$0xff]  ;;  %v7974_v25 = vld [vmem:[#allocation89_spill] sm:$0xff] }
 0x27c   : > { %v1003_v43 = vmul.f32 %v7855_v50, %v957_v56  ;;  %v6313_v34 = vadd.f32 %v1227_v1, %v1055_v27  ;;  %v6315_v3 = vadd.f32 %v1421_v44, %v1249_v24  ;;  %v6318_v61 = vmul.f32 %v5415_v35, %v1312_v46  ;;  %1764 = vrot.lane.b32.xlu0 %v7974_v25, %s4200_s15  ;;  %v7975_v19 = vld [vmem:[#allocation148_spill] sm:$0xff]  ;;  %v7976_v24 = vld [vmem:[#allocation151_spill] sm:$0xff]  ;;  %v7977_v56 = vld [vmem:[#allocation29_spill] sm:$0xff] }
 0x27d   : > { %v1129_v8 = vsel %vm1112_vm1, %v7973_v20, %v7972_v47  ;;  %v1004_v16 = vmul.f32 %v5431_v23, %v951_v6  ;;  %v963_v1 = vsel %vm940_vm2, %v7975_v19, %v7960_v28  ;;  %v1123_v44 = vsel %vm1112_vm1, %v7972_v47, %v7976_v24  ;;  %v7978_v46 = vld [vmem:[#allocation36_spill] sm:$0xff]  ;;  %v869_v6 = vld [vmem:[%s7399_s4 + $0x148] sm:$0xff]  ;;  %v6357_v50 = vpop.permute.xlu0 %1086 }
 0x27e   : > { %v1135_v27 = vsel %vm1112_vm1, %v7977_v56, %v7973_v20  ;;  %2360 = vrot.lane.b32.xlu1 %v7978_v46, %s4202_s17  ;;  %v6345_v23 = vmul.f32 %v7958_v12, %v1366_v29  ;;  %v6348_v28 = vmul.f32 %v7958_v12, %v1368_v48  ;;  %v6351_v47 = vmul.f32 %v5401_v51, %v1520_v57  ;;  %v6359_v46 = vpop.permute.xlu1 %1098 }
 0x27f   : > { %v945_v20 = vsel %vm940_vm2, %v7968_v18, %v7975_v19  ;;  %7979 = vst [vmem:[#allocation66_spill] sm:$0xff] %v6357_v50  ;;  %v1057_v62 = vmul.f32 %v7980_v41, %v1003_v43  ;;  %v1175_v29 = vmul.f32 %v7853_v13, %v1129_v8  ;;  %v946_v48 = vsel %vm940_vm2, %v6260_v10, %v937_v2  ;;  %v7981_v10 = vld [vmem:[#allocation15_spill] sm:$0xff]  ;;  %v7982_v50 = vld [vmem:[#allocation17_spill] sm:$0xff] }
 0x280   : > { %v964_v57 = vsel %vm940_vm2, %v937_v2, %v6229_v54  ;;  %v1002_v22 = vmul.f32 %v5440_v0, %v963_v1  ;;  %v1176_v18 = vmul.f32 %v5475_v26, %v1123_v44  ;;  %v1117_v19 = vsel %vm1112_vm1, %v7976_v24, %v7977_v56  ;;  %2071 = vperm.xlu0 %3941, %v869_v6   ;;  %v7983_v1 = vld [vmem:[#allocation19_spill] sm:$0xff]  ;;  %v7984_v26 = vld [vmem:[#allocation90_spill] sm:$0xff]  ;;  %v7985_v24 = vld [vmem:[#allocation57_spill] sm:$0xff] }
 0x281   : > { %v1174_v43 = vmul.f32 %v5478_v9, %v1135_v27  ;;  %v1058_v8 = vmul.f32 %v7980_v41, %v1004_v16  ;;  %v1005_v13 = vmul.f32 %v5443_v4, %v945_v20  ;;  %v1325_v2 = vsel %vm1308_vm3, %v7982_v50, %v7981_v10  ;;  %v1111_v20 = vpop.permute.xlu0 %1110 }
 0x282   : > { %v1319_v44 = vsel %vm1308_vm3, %v7981_v10, %v7983_v1  ;;  %1752 = vrot.lane.b32.xlu1 %v7984_v26, %s4200_s15  ;;  %v1313_v16 = vsel %vm1308_vm3, %v7983_v1, %v7985_v24  ;;  %v1331_v56 = vsel %vm1308_vm3, %v7985_v24, %v7982_v50  ;;  %v1006_v27 = vmul.f32 %v5440_v0, %v964_v57  ;;  %v6398_v54 = vpop.permute.xlu1 %1405  ;;  %v7987_v10 = vld [vmem:[#allocation21_spill] sm:$0xff] }
 0x283   : > { %v1009_v6 = vmul.f32 %v5443_v4, %v946_v48  ;;  %7986 = vst [vmem:[#allocation63_spill] sm:$0xff] %v6398_v54  ;;  %v1229_v49 = vmul.f32 %v7987_v10, %v1175_v29  ;;  %v1177_v21 = vmul.f32 %v5481_v63, %v1117_v19  ;;  %v1118_v1 = vsel %vm1112_vm1, %v6359_v46, %v1111_v20 }
 0x284   : > { %v1136_v14 = vsel %vm1112_vm1, %v1111_v20, %v6301_v36  ;;  %v1230_v50 = vmul.f32 %v7987_v10, %v1176_v18  ;;  %v1228_v0 = vmul.f32 %v7987_v10, %v1174_v43  ;;  %v1181_v48 = vmul.f32 %v5481_v63, %v1118_v1  ;;  %2154 = vrot.lane.b32.xlu0 %v7887_v31, %s4201_s16  ;;  %v7988_v20 = vld [vmem:[#allocation93_spill] sm:$0xff]  ;;  %v7990_v43 = vld [vmem:[#allocation108_spill] sm:$0xff] }
 0x285   : > { %v1178_v4 = vmul.f32 %v5478_v9, %v1136_v14  ;;  %v1371_v29 = vmul.f32 %v7857_v58, %v1325_v2  ;;  %v1372_v57 = vmul.f32 %v7967_v15, %v1319_v44  ;;  %v1370_v19 = vmul.f32 %v5398_v52, %v1331_v56  ;;  %v880_v9 = vld [vmem:[%s7399_s4 + $0x1a0] sm:$0xff]  ;;  %v7989_v14 = vld [vmem:[#allocation109_spill] sm:$0xff]  ;;  %v1465_v44 = vpop.permute.xlu0 %1464 }
 0x286   : > { %v1373_v24 = vmul.f32 %v5415_v35, %v1313_v16  ;;  %1776 = vrot.lane.b32.xlu1 %v7988_v20, %s4200_s15  ;;  %v1060_v63 = vmul.f32 %v7989_v14, %v1006_v27  ;;  %v1063_v18 = vmul.f32 %v7989_v14, %v1009_v6  ;;  %v1235_v2 = vmul.f32 %v7990_v43, %v1181_v48  ;;  %v1477_v15 = vpop.permute.xlu1 %1476  ;;  %v7991_v35 = vld [vmem:[#allocation40_spill] sm:$0xff]  ;;  %v7992_v58 = vld [vmem:[#allocation26_spill] sm:$0xff] }
 0x287   : > { %v1232_v1 = vmul.f32 %v7990_v43, %v1178_v4  ;;  %v1056_v56 = vmul.f32 %v7980_v41, %v1002_v22  ;;  %v1059_v16 = vmul.f32 %v7980_v41, %v1005_v13  ;;  %v1526_v52 = vsel %vm1504_vm4, %v7991_v35, %v7971_v55 }
 0x288   : > { %v1521_v27 = vsel %vm1504_vm4, %v1465_v44, %v1477_v15  ;;  %v1231_v6 = vmul.f32 %v7987_v10, %v1177_v21  ;;  %v6438_v4 = vadd.f32 %v1235_v2, %v1063_v18  ;;  %2458 = vperm.xlu0 %3941, %v880_v9   ;;  %v1253_v22 = vadd.f32 %v1229_v49, %v1057_v62  ;;  %v7993_v9 = vld [vmem:[#allocation58_spill] sm:$0xff] }
 0x289   : > { %v6436_v54 = vadd.f32 %v1232_v1, %v1060_v63  ;;  %v1567_v48 = vmul.f32 %v5401_v51, %v1521_v27  ;;  %v1425_v13 = vmul.f32 %v7992_v58, %v1371_v29  ;;  %v1426_v41 = vmul.f32 %v7992_v58, %v1372_v57  ;;  %v1489_v63 = vpop.permute.xlu0 %1488 }
 0x28a   : > { %v1424_v14 = vmul.f32 %v7992_v58, %v1370_v19  ;;  %2130 = vrot.lane.b32.xlu1 %v7878_v5, %s4201_s16  ;;  %v1254_v55 = vadd.f32 %v1230_v50, %v1058_v8  ;;  %v1252_v43 = vadd.f32 %v1228_v0, %v1056_v56  ;;  %v6447_v21 = vmul.f32 %v5418_v40, %v1526_v52  ;;  %v1501_v18 = vpop.permute.xlu1 %1500  ;;  %v7994_v0 = vld [vmem:[#allocation47_spill] sm:$0xff] }
 0x28b   : > { %v1427_v10 = vmul.f32 %v7992_v58, %v1373_v24  ;;  %v1621_v62 = vmul.f32 %v7993_v9, %v1567_v48  ;;  %v1515_v49 = vsel %vm1504_vm4, %v1477_v15, %v1489_v63  ;;  %v1509_v29 = vsel %vm1504_vm4, %v1489_v63, %v1501_v18 }
 0x28c   : > { %v1527_v57 = vsel %vm1504_vm4, %v1501_v18, %v1465_v44  ;;  %v1255_v8 = vadd.f32 %v1231_v6, %v1059_v16  ;;  %v1568_v50 = vmul.f32 %v5404_v53, %v1515_v49  ;;  %v1569_v58 = vmul.f32 %v5421_v60, %v1509_v29  ;;  %1936 = vrot.lane.b32.xlu0 %v7961_v32, %s4199_s14  ;;  %v7995_v18 = vld [vmem:[#allocation42_spill] sm:$0xff]  ;;  %v875_v29 = vld [vmem:[%s7399_s4 + $0x178] sm:$0xff] }
 0x28d   : > { %v1566_v52 = vmul.f32 %v5418_v40, %v1527_v57  ;;  %v1514_v15 = vsel %vm1504_vm4, %v7970_v33, %v7994_v0  ;;  %v1449_v19 = vadd.f32 %v1425_v13, %v1253_v22  ;;  %v1450_v24 = vadd.f32 %v1426_v41, %v1254_v55  ;;  %v1675_v27 = vpop.permute.xlu0 %1674  ;;  %v7998_v57 = vld [vmem:[#allocation37_spill] sm:$0xff] }
 0x28e   : > { %v1448_v1 = vadd.f32 %v1424_v14, %v1252_v43  ;;  %2142 = vrot.lane.b32.xlu1 %v7879_v38, %s4201_s16  ;;  %v1451_v2 = vadd.f32 %v1427_v10, %v1255_v8  ;;  %v1622_v44 = vmul.f32 %v7993_v9, %v1568_v50  ;;  %v1623_v16 = vmul.f32 %v7993_v9, %v1569_v58  ;;  %v1737_v6 = vpop.permute.xlu1 %1736 }
 0x28f   : > { %v1620_v56 = vmul.f32 %v7993_v9, %v1566_v52  ;;  %v1645_v48 = vadd.f32 %v1621_v62, %v1449_v19  ;;  %v1698_v63 = vmul.f32 %v1675_v27, %v7878_v5  ;;  %v1699_v33 = vmul.f32 %v1675_v27, %v7879_v38  ;;  %v7996_v9 = vld [vmem:[#allocation44_spill] sm:$0xff] }
 0x290   : > { %v1700_v22 = vmul.f32 %v1675_v27, %v7887_v31  ;;  %v1646_v14 = vadd.f32 %v1622_v44, %v1450_v24  ;;  %v1647_v13 = vadd.f32 %v1623_v16, %v1451_v2  ;;  %v1701_v41 = vmul.f32 %v1675_v27, %v7889_v39  ;;  %1960 = vrot.lane.b32.xlu0 %v7974_v25, %s4199_s14  ;;  %v8003_v16 = vld [vmem:[#allocation22_spill] sm:$0xff] }
 0x291   : > { %v1644_v43 = vadd.f32 %v1620_v56, %v1448_v1  ;;  %v1508_v55 = vsel %vm1504_vm4, %v7994_v0, %v7991_v35  ;;  %v1564_v10 = vmul.f32 %v5404_v53, %v1514_v15  ;;  %v2184_v62 = vsel %vm2170_vm7, %v7996_v9, %v7995_v18  ;;  %v1749_v58 = vpop.permute.xlu0 %1748  ;;  %v8002_v15 = vld [vmem:[#allocation105_spill] sm:$0xff] }
 0x292   : > { %v6486_v49 = vadd.f32 %v1699_v33, %v1645_v48  ;;  %2166 = vrot.lane.b32.xlu1 %v7889_v39, %s4201_s16  ;;  %v2190_v35 = vsel %vm2170_vm7, %v7998_v57, %v7996_v9  ;;  %v6499_v50 = vadd.f32 %v1700_v22, %v1646_v14  ;;  %v6501_v52 = vadd.f32 %v1701_v41, %v1647_v13  ;;  %v1761_v0 = vpop.permute.xlu1 %1760  ;;  %v8005_v22 = vld [vmem:[#allocation139_spill] sm:$0xff] }
 0x293   : > { %v6497_v8 = vadd.f32 %v1698_v63, %v1644_v43  ;;  %v2172_v19 = vsel %vm2170_vm7, %v8002_v15, %v7998_v57  ;;  %v2178_v24 = vsel %vm2170_vm7, %v7995_v18, %v8002_v15  ;;  %v6513_v1 = vsel %vm1778_vm5, %v1737_v6, %v1749_v58  ;;  %v8004_v63 = vld [vmem:[#allocation136_spill] sm:$0xff] }
 0x294   : > { %7997 = vst [vmem:[#allocation7_spill] sm:$0xff] %v6486_v49  ;;  %8000 = vst [vmem:[#allocation45_spill] sm:$0xff] %v6499_v50  ;;  %v6517_v2 = vsel %vm1778_vm5, %v1749_v58, %v1761_v0  ;;  %v1444_v44 = vadd.f32 %v6345_v23, %v6304_v59  ;;  %v1423_v56 = vmul.f32 %v7958_v12, %v6318_v61  ;;  %2267 = vperm.xlu0 %3941, %v875_v29   ;;  %v4176_v12 = vld [vmem:[%s7401_s6 + $0x18] sm:$0xff]  ;;  %v8009_v58 = vld [vmem:[#allocation144_spill] sm:$0xff] }
 0x295   : > { %7999 = vst [vmem:[#allocation43_spill] sm:$0xff] %v6497_v8  ;;  %8001 = vst [vmem:[#allocation68_spill] sm:$0xff] %v6501_v52  ;;  %v1617_v27 = vmul.f32 %v8003_v16, %v6351_v47  ;;  %v1565_v48 = vmul.f32 %v5421_v60, %v1508_v55  ;;  %v2220_v33 = vmul.f32 %v8004_v63, %v2184_v62  ;;  %v8006_v59 = vld [vmem:[#allocation137_spill] sm:$0xff]  ;;  %v8007_v47 = vld [vmem:[#allocation138_spill] sm:$0xff] }
 0x296   : > { %v2223_v14 = vmul.f32 %v8005_v22, %v2190_v35  ;;  %v2380_v43 = vsel %vm2366_vm8, %v6143_v37, %v6176_v11  ;;  %v2374_v23 = vsel %vm2366_vm8, %v6176_v11, %v6178_v30  ;;  %2527 = vperm.xlu1 %3947, %v4176_v12   ;;  %v2221_v61 = vmul.f32 %v8006_v59, %v2178_v24  ;;  %v1773_v11 = vpop.permute.xlu0 %1772  ;;  %v6549_v18 = vpop.permute.xlu1 %2061  ;;  %v8022_v49 = vld [vmem:[#allocation66_spill] sm:$0xff]  ;;  %v8040_v60 = vld [vmem:[#allocation140_spill] sm:$0xff] }
 0x297   : > { %v2222_v13 = vmul.f32 %v8007_v47, %v2172_v19  ;;  %v2368_v41 = vsel %vm2366_vm8, %v6178_v30, %v6227_v7  ;;  %v2386_v55 = vsel %vm2366_vm8, %v6227_v7, %v6143_v37  ;;  %v1616_v9 = vmul.f32 %v8003_v16, %v6447_v21  ;;  %v8008_v7 = vld [vmem:[#allocation143_spill] sm:$0xff] }
 0x298   : > { %v1618_v62 = vmul.f32 %v8003_v16, %v1564_v10  ;;  %v6556_v29 = vsel %vm1778_vm5, %v1761_v0, %v1773_v11  ;;  %v6560_v30 = vsel %vm1778_vm5, %v1773_v11, %v1737_v6  ;;  %v1446_v57 = vadd.f32 %v6348_v28, %v6306_v17  ;;  %3948 = vset.pattern.permute.xlu0 %v7969_v42  ;;  %v8010_v10 = vld [vmem:[#allocation147_spill] sm:$0xff]  ;;  %v4177_v17 = vld [vmem:[%s7401_s6 + $0x10] sm:$0xff] }
 0x299   : > { %v1619_v37 = vmul.f32 %v8003_v16, %v1565_v48  ;;  %v2416_v35 = vmul.f32 %v8008_v7, %v2380_v43  ;;  %v2417_v15 = vmul.f32 %v8009_v58, %v2374_v23  ;;  %v1447_v21 = vadd.f32 %v1423_v56, %v6313_v34  ;;  %v8011_v19 = vld [vmem:[#allocation39_spill] sm:$0xff]  ;;  %2523 = vperm.xlu0 %3948, %v4177_v17   ;;  %v8012_v28 = vld [vmem:[#allocation24_spill] sm:$0xff] }
 0x29a   : > { %v2418_v0 = vmul.f32 %v8010_v10, %v2368_v41  ;;  %v2419_v24 = vmul.f32 %v8011_v19, %v2386_v55  ;;  %1948 = vrot.lane.b32.xlu1 %v7984_v26, %s4199_s14  ;;  %v2274_v6 = vmul.f32 %v8012_v28, %v2220_v33  ;;  %v2277_v16 = vmul.f32 %v8012_v28, %v2223_v14  ;;  %v2127_v56 = vpop.permute.xlu0 %2126  ;;  %v2139_v48 = vpop.permute.xlu1 %2138  ;;  %v8014_v33 = vld [vmem:[#allocation32_spill] sm:$0xff]  ;;  %v8015_v14 = vld [vmem:[#allocation30_spill] sm:$0xff] }
 0x29b   : > { %v2275_v42 = vmul.f32 %v8012_v28, %v2221_v61  ;;  %v2276_v34 = vmul.f32 %v8012_v28, %v2222_v13  ;;  %v8013_v43 = vmov 0   ;;  %v1641_v23 = vadd.f32 %v1617_v27, %v6315_v3  ;;  %v8016_v61 = vld [vmem:[#allocation38_spill] sm:$0xff]  ;;  %v8017_v28 = vld [vmem:[#allocation33_spill] sm:$0xff]  ;;  %v8018_v27 = vld [vmem:[#allocation59_spill] sm:$0xff] }
 0x29c   : > { %3949 = vset.pattern.permute.xlu1 %v8013_v43  ;;  %v1640_v12 = vadd.f32 %v1616_v9, %v1444_v44  ;;  %v1642_v41 = vadd.f32 %v1618_v62, %v1446_v57  ;;  %v6584_v55 = vsel %vm2170_vm7, %v2127_v56, %v2139_v48  ;;  %v6586_v11 = vadd.f32 %v1619_v37, %v1447_v21  ;;  %v8019_v62 = vld [vmem:[#allocation56_spill] sm:$0xff]  ;;  %v8020_v37 = vld [vmem:[#allocation62_spill] sm:$0xff] }
 0x29d   : > { %v1694_v17 = vmul.f32 %v8015_v14, %v8014_v33  ;;  %v2470_v52 = vmul.f32 %v8016_v61, %v2416_v35  ;;  %v2471_v13 = vmul.f32 %v8016_v61, %v2417_v15  ;;  %v1695_v50 = vmul.f32 %v8015_v14, %v8017_v28  ;;  %2338 = vrot.lane.b32.xlu0 %v7879_v38, %s4202_s17  ;;  %v8021_v15 = vld [vmem:[#allocation61_spill] sm:$0xff] }
 0x29e   : > { %v2472_v3 = vmul.f32 %v8016_v61, %v2418_v0  ;;  %v2473_v44 = vmul.f32 %v8016_v61, %v2419_v24  ;;  %1972 = vrot.lane.b32.xlu1 %v7988_v20, %s4199_s14  ;;  %v2298_v9 = vadd.f32 %v2274_v6, %v8018_v27  ;;  %v2301_v57 = vadd.f32 %v2277_v16, %v8019_v62  ;;  %v2151_v33 = vpop.permute.xlu0 %2150  ;;  %v2163_v28 = vpop.permute.xlu1 %2162  ;;  %v8023_v16 = vld [vmem:[#allocation35_spill] sm:$0xff] }
 0x29f   : > { %v2299_v35 = vadd.f32 %v2275_v42, %v8020_v37  ;;  %v2300_v21 = vadd.f32 %v2276_v34, %v8021_v15  ;;  %v1130_v0 = vsel %vm1112_vm1, %v6301_v36, %v8022_v49  ;;  %v6610_v24 = vsel %vm2170_vm7, %v2139_v48, %v2151_v33  ;;  %v8024_v34 = vld [vmem:[#allocation50_spill] sm:$0xff]  ;;  %v8025_v61 = vld [vmem:[#allocation27_spill] sm:$0xff]  ;;  %v8026_v15 = vld [vmem:[#allocation36_spill] sm:$0xff] }
 0x2a0   : > { %v6614_v38 = vsel %vm2170_vm7, %v2151_v33, %v2163_v28  ;;  %v6618_v6 = vsel %vm2170_vm7, %v2163_v28, %v2127_v56  ;;  %v1696_v42 = vmul.f32 %v8015_v14, %v8023_v16  ;;  %v958_v36 = vsel %vm940_vm2, %v8025_v61, %v8024_v34  ;;  %v8027_v28 = vld [vmem:[#allocation52_spill] sm:$0xff]  ;;  %v8035_v16 = vld [vmem:[#allocation126_spill] sm:$0xff] }
 0x2a1   : > { %v2494_v27 = vadd.f32 %v2470_v52, %v2298_v9  ;;  %v2495_v62 = vadd.f32 %v2471_v13, %v2299_v35  ;;  %v1124_v48 = vsel %vm1112_vm1, %v8022_v49, %v6359_v46  ;;  %2362 = vrot.lane.b32.xlu0 %v7889_v39, %s4202_s17  ;;  %v2496_v56 = vadd.f32 %v2472_v3, %v2300_v21  ;;  %v8028_v13 = vld [vmem:[#allocation128_spill] sm:$0xff] }
 0x2a2   : > { %2326 = vrot.lane.b32.xlu1 %v7878_v5, %s4202_s17  ;;  %v2497_v37 = vadd.f32 %v2473_v44, %v2301_v57  ;;  %v6636_v33 = vmul.f32 %v8015_v14, %v8026_v15  ;;  %v952_v52 = vsel %vm940_vm2, %v8024_v34, %v8027_v28  ;;  %v1179_v9 = vmul.f32 %v8028_v13, %v1130_v0  ;;  %v6645_v49 = vpop.permute.xlu0 %2448  ;;  %v2520_v5 = vpop.permute.xlu1 %2519  ;;  %v8033_v44 = vld [vmem:[#allocation41_spill] sm:$0xff]  ;;  %v8034_v57 = vld [vmem:[#allocation107_spill] sm:$0xff] }
 0x2a3   : > { %v6643_v46 = vadd.f32 %v1694_v17, %v1640_v12  ;;  %v6647_v35 = vadd.f32 %v2520_v5, %v2494_v27  ;;  %v6649_v39 = vadd.f32 %v2520_v5, %v2495_v62  ;;  %v6651_v3 = vadd.f32 %v2520_v5, %v2496_v56  ;;  %v8036_v12 = vld [vmem:[#allocation134_spill] sm:$0xff] }
 0x2a4   : > { %v6653_v14 = vadd.f32 %v2520_v5, %v2497_v37  ;;  %v1793_v21 = vsel %vm1778_vm5, %v8034_v57, %v8033_v44  ;;  %v1007_v0 = vmul.f32 %v8035_v16, %v958_v36  ;;  %v1180_v17 = vmul.f32 %v8036_v12, %v1124_v48  ;;  %v8037_v37 = vld [vmem:[#allocation10_spill] sm:$0xff]  ;;  %v8039_v48 = vld [vmem:[#allocation108_spill] sm:$0xff] }
 0x2a5   : > { %8029 = vst [vmem:[#allocation69_spill] sm:$0xff] %v6647_v35  ;;  %8030 = vst [vmem:[#allocation70_spill] sm:$0xff] %v6649_v39  ;;  %v6661_v34 = vadd.f32 %v1695_v50, %v1641_v23  ;;  %v2566_v61 = vsub.f32 0.0, %v6647_v35  ;;  %v2567_v27 = vsub.f32 0.0, %v6649_v39  ;;  %v2568_v62 = vsub.f32 0.0, %v6651_v3  ;;  %2144 = vrot.lane.b32.xlu0 %v7984_v26, %s4201_s16  ;;  %v8038_v23 = vld [vmem:[#allocation127_spill] sm:$0xff] }
 0x2a6   : > { %8031 = vst [vmem:[#allocation67_spill] sm:$0xff] %v6651_v3  ;;  %8032 = vst [vmem:[#allocation72_spill] sm:$0xff] %v6653_v14  ;;  %v2569_v56 = vsub.f32 0.0, %v6653_v14  ;;  %2350 = vrot.lane.b32.xlu1 %v7887_v31, %s4202_s17  ;;  %v1787_v50 = vsel %vm1778_vm5, %v8033_v44, %v8037_v37  ;;  %v1008_v36 = vmul.f32 %v8038_v23, %v952_v52  ;;  %v1271_v13 = vpop.permute.xlu0 %1270  ;;  %v1283_v5 = vpop.permute.xlu1 %1282  ;;  %v8041_v3 = vld [vmem:[#allocation109_spill] sm:$0xff]  ;;  %v8042_v44 = vld [vmem:[#allocation118_spill] sm:$0xff] }
 0x2a7   : > { %v1233_v15 = vmul.f32 %v8039_v48, %v1179_v9  ;;  %v6677_v28 = vadd.f32 %v1696_v42, %v1642_v41  ;;  %v2594_v16 = vmul.f32 1.442695, %v2566_v61  ;;  %v2596_v12 = vmul.f32 1.442695, %v2567_v27  ;;  %v8043_v52 = vld [vmem:[#allocation141_spill] sm:$0xff]  ;;  %v8044_v9 = vld [vmem:[#allocation34_spill] sm:$0xff] }
 0x2a8   : > { %v2598_v8 = vmul.f32 1.442695, %v2568_v62  ;;  %v1326_v31 = vsel %vm1308_vm3, %v1271_v13, %v1283_v5  ;;  %v1832_v40 = vmul.f32 %v8040_v60, %v1793_v21  ;;  %v1061_v14 = vmul.f32 %v8041_v3, %v1007_v0  ;;  %v8045_v61 = vld [vmem:[#allocation63_spill] sm:$0xff] }
 0x2a9   : > { %v2600_v35 = vmul.f32 1.442695, %v2569_v56  ;;  %v1375_v39 = vmul.f32 %v8042_v44, %v1326_v31  ;;  %v1833_v23 = vmul.f32 %v8043_v52, %v1787_v50  ;;  %v1781_v41 = vsel %vm1778_vm5, %v8037_v37, %v8044_v9  ;;  %2168 = vrot.lane.b32.xlu0 %v7988_v20, %s4201_s16 }
 0x2aa   : > { %v1234_v42 = vmul.f32 %v8039_v48, %v1180_v17  ;;  %4066 = vpow2.f32 %v2594_v16  ;;  %2132 = vrot.lane.b32.xlu1 %v7961_v32, %s4201_s16  ;;  %v1062_v21 = vmul.f32 %v8041_v3, %v1008_v36  ;;  %v1257_v0 = vadd.f32 %v1233_v15, %v1061_v14  ;;  %v1295_v62 = vpop.permute.xlu0 %1294  ;;  %v1307_v56 = vpop.permute.xlu1 %1306  ;;  %v8046_v3 = vld [vmem:[#allocation119_spill] sm:$0xff]  ;;  %v8047_v36 = vld [vmem:[#allocation121_spill] sm:$0xff] }
 0x2ab   : > { %4068 = vpow2.f32 %v2596_v12  ;;  %v1429_v27 = vmul.f32 %v8045_v61, %v1375_v39  ;;  %v1320_v37 = vsel %vm1308_vm3, %v1283_v5, %v1295_v62  ;;  %v1314_v17 = vsel %vm1308_vm3, %v1295_v62, %v1307_v56  ;;  %v8048_v39 = vld [vmem:[#allocation54_spill] sm:$0xff]  ;;  %v8049_v16 = vld [vmem:[#allocation25_spill] sm:$0xff]  ;;  %v8050_v5 = vld [vmem:[#allocation123_spill] sm:$0xff] }
 0x2ac   : > { %4070 = vpow2.f32 %v2598_v8  ;;  %v1332_v50 = vsel %vm1308_vm3, %v1307_v56, %v1271_v13  ;;  %v1376_v14 = vmul.f32 %v8046_v3, %v1320_v37  ;;  %v1989_v8 = vsel %vm1974_vm6, %v8049_v16, %v8048_v39  ;;  %v8051_v62 = vld [vmem:[#allocation23_spill] sm:$0xff]  ;;  %v8052_v37 = vld [vmem:[#allocation145_spill] sm:$0xff]  ;;  %v8054_v3 = vld [vmem:[#allocation130_spill] sm:$0xff] }
 0x2ad   : > { %4072 = vpow2.f32 %v2600_v35  ;;  %v6702_v48 = vadd.f32 %v1429_v27, %v1257_v0  ;;  %v1374_v15 = vmul.f32 %v8047_v36, %v1332_v50  ;;  %v1258_v12 = vadd.f32 %v1234_v42, %v1062_v21  ;;  %v4178_v35 = vld [vmem:[%s7401_s6 + $0x20] sm:$0xff]  ;;  %v881_v27 = vld [vmem:[%s7399_s4 + $0x1a8] sm:$0xff] }
 0x2ae   : > { %v1377_v31 = vmul.f32 %v8050_v5, %v1314_v17  ;;  %2156 = vrot.lane.b32.xlu1 %v7974_v25, %s4201_s16  ;;  %2531 = vperm.xlu0 %3948, %v4178_v35   ;;  %v1836_v13 = vmul.f32 %v8040_v60, %v6513_v1  ;;  %v1837_v44 = vmul.f32 %v8043_v52, %v6517_v2  ;;  %v6722_v21 = vpop.permute.xlu0 %1601  ;;  %v6734_v50 = vpop.permute.xlu1 %1870  ;;  %v8055_v36 = vld [vmem:[#allocation51_spill] sm:$0xff]  ;;  %v8056_v35 = vld [vmem:[#allocation60_spill] sm:$0xff] }
 0x2af   : > { %v1430_v0 = vmul.f32 %v8045_v61, %v1376_v14  ;;  %v1428_v42 = vmul.f32 %v8045_v61, %v1374_v15  ;;  %v1886_v56 = vmul.f32 %v8051_v62, %v1832_v40  ;;  %v1799_v1 = vsel %vm1778_vm5, %v8044_v9, %v8034_v57  ;;  %8053 = vst [vmem:[#allocation46_spill] sm:$0xff] %v6734_v50 }
 0x2b0   : > { %v1834_v17 = vmul.f32 %v8052_v37, %v1781_v41  ;;  %v1431_v2 = vmul.f32 %v8045_v61, %v1377_v31  ;;  %v2028_v14 = vmul.f32 %v8054_v3, %v1989_v8  ;;  %v1983_v15 = vsel %vm1974_vm6, %v8048_v39, %v8055_v36  ;;  %v8058_v61 = vld [vmem:[#allocation55_spill] sm:$0xff] }
 0x2b1   : > { %v6741_v5 = vadd.f32 %v1430_v0, %v1258_v12  ;;  %v6744_v40 = vadd.f32 %v1428_v42, %v6436_v54  ;;  %v1977_v57 = vsel %vm1974_vm6, %v8055_v36, %v8056_v35  ;;  %v1995_v9 = vsel %vm1974_vm6, %v8056_v35, %v8049_v16  ;;  %v8059_v12 = vld [vmem:[#allocation146_spill] sm:$0xff]  ;;  %v8061_v36 = vld [vmem:[#allocation31_spill] sm:$0xff] }
 0x2b2   : > { %v6755_v41 = vadd.f32 %v1431_v2, %v6438_v4  ;;  %2463 = vperm.xlu1 %3949, %v881_v27   ;;  %2352 = vrot.lane.b32.xlu0 %v7974_v25, %s4202_s17  ;;  %v1890_v54 = vmul.f32 %v8058_v61, %v1836_v13  ;;  %v1891_v39 = vmul.f32 %v8058_v61, %v1837_v44  ;;  %v1933_v0 = vpop.permute.xlu0 %1932  ;;  %v8060_v4 = vld [vmem:[#allocation73_spill] sm:$0xff]  ;;  %v1945_v2 = vpop.permute.xlu1 %1944  ;;  %v8062_v35 = vld [vmem:[#allocation131_spill] sm:$0xff] }
 0x2b3   : > { %v1838_v8 = vmul.f32 %v8052_v37, %v6556_v29  ;;  %v1839_v31 = vmul.f32 %v8059_v12, %v6560_v30  ;;  %v6766_v16 = vmul.f32 %v8051_v62, %v1833_v23  ;;  %v6769_v42 = vadd.f32 %v1886_v56, %v8060_v4  ;;  %v8063_v37 = vld [vmem:[#allocation132_spill] sm:$0xff]  ;;  %v8064_v56 = vld [vmem:[#allocation133_spill] sm:$0xff] }
 0x2b4   : > { %8057 = vst [vmem:[#allocation14_spill] sm:$0xff] %v6755_v41  ;;  %v1835_v27 = vmul.f32 %v8059_v12, %v1799_v1  ;;  %v1721_v13 = vadd.f32 %v6636_v33, %v6586_v11  ;;  %v1888_v44 = vmul.f32 %v8051_v62, %v1834_v17  ;;  %v6776_v29 = vmul.f32 %v8061_v36, %v2028_v14  ;;  %v4179_v11 = vld [vmem:[%s7401_s6 + $0x28] sm:$0xff] }
 0x2b5   : > { %v2029_v30 = vmul.f32 %v8062_v35, %v1983_v15  ;;  %v1990_v23 = vsel %vm1974_vm6, %v1933_v0, %v1945_v2  ;;  %v2030_v52 = vmul.f32 %v8063_v37, %v1977_v57  ;;  %v2031_v4 = vmul.f32 %v8064_v56, %v1995_v9 }
 0x2b6   : > { %v2032_v1 = vmul.f32 %v8054_v3, %v1990_v23  ;;  %2328 = vrot.lane.b32.xlu1 %v7961_v32, %s4202_s17  ;;  %2535 = vperm.xlu0 %3948, %v4179_v11   ;;  %v1914_v17 = vadd.f32 %v1890_v54, %v6643_v46  ;;  %v1915_v14 = vadd.f32 %v1891_v39, %v6661_v34  ;;  %v1957_v9 = vpop.permute.xlu0 %1956  ;;  %v1969_v60 = vpop.permute.xlu1 %1968 }
 0x2b7   : > { %v4067_v33 = vpop.eup %4066  ;;  %v1892_v15 = vmul.f32 %v8058_v61, %v1838_v8  ;;  %v1893_v57 = vmul.f32 %v8058_v61, %v1839_v31  ;;  %v2224_v23 = vmul.f32 %v8004_v63, %v6584_v55  ;;  %v1984_v11 = vsel %vm1974_vm6, %v1945_v2, %v1957_v9 }
 0x2b8   : > { %v4069_v12 = vpop.eup %4068  ;;  %v2638_v3 = vadd.f32 1.0, %v4067_v33  ;;  %v2086_v50 = vmul.f32 %v6549_v18, %v2032_v1  ;;  %v2033_v34 = vmul.f32 %v8062_v35, %v1984_v11  ;;  %v1978_v54 = vsel %vm1974_vm6, %v1957_v9, %v1969_v60 }
 0x2b9   : > { %v4071_v41 = vpop.eup %4070  ;;  %v2639_v46 = vadd.f32 1.0, %v4069_v12  ;;  %v1996_v61 = vsel %vm1974_vm6, %v1969_v60, %v1933_v0  ;;  %v2034_v31 = vmul.f32 %v8063_v37, %v1978_v54  ;;  %v1916_v60 = vadd.f32 %v1892_v15, %v6677_v28 }
 0x2ba   : > { %v4073_v39 = vpop.eup %4072  ;;  %v2640_v8 = vadd.f32 1.0, %v4071_v41  ;;  %4074 = vrcp.f32 %v2638_v3  ;;  %v6803_v55 = vadd.f32 %v2086_v50, %v1914_v17  ;;  %2340 = vrot.lane.b32.xlu1 %v7984_v26, %s4202_s17  ;;  %3950 = vset.pattern.permute.xlu0 %v8013_v43  ;;  %v2087_v2 = vmul.f32 %v6549_v18, %v2033_v34  ;;  %v6811_v33 = vpop.permute.xlu0 %2257 }
 0x2bb   : > { %v2641_v12 = vadd.f32 1.0, %v4073_v39  ;;  %4076 = vrcp.f32 %v2639_v46  ;;  %v2035_v1 = vmul.f32 %v8064_v56, %v1996_v61  ;;  %v2225_v50 = vmul.f32 %v8006_v59, %v6610_v24  ;;  %v2323_v41 = vpop.permute.xlu1 %2322  ;;  %v8065_v24 = vld [vmem:[#allocation53_spill] sm:$0xff] }
 0x2bc   : > { %4078 = vrcp.f32 %v2640_v8  ;;  %v2088_v3 = vmul.f32 %v6549_v18, %v2034_v31  ;;  %v1917_v0 = vadd.f32 %v1893_v57, %v1721_v13  ;;  %v6817_v43 = vadd.f32 %v2087_v2, %v1915_v14  ;;  %v8067_v57 = vld [vmem:[#allocation64_spill] sm:$0xff]  ;;  %v8068_v31 = vld [vmem:[#allocation65_spill] sm:$0xff] }
 0x2bd   : > { %4080 = vrcp.f32 %v2641_v12  ;;  %v2089_v17 = vmul.f32 %v6549_v18, %v2035_v1  ;;  %v1889_v9 = vmul.f32 %v8051_v62, %v1835_v27  ;;  %v2083_v11 = vmul.f32 %v8061_v36, %v2029_v30  ;;  %v8066_v27 = vld [vmem:[#allocation28_spill] sm:$0xff] }
 0x2be   : > { %v2084_v46 = vmul.f32 %v8061_v36, %v2030_v52  ;;  %v6823_v28 = vadd.f32 %v2088_v3, %v1916_v60  ;;  %2364 = vrot.lane.b32.xlu1 %v7988_v20, %s4202_s17  ;;  %v2278_v15 = vmul.f32 %v8065_v24, %v2224_v23  ;;  %v2226_v13 = vmul.f32 %v8007_v47, %v6614_v38  ;;  %v2335_v62 = vpop.permute.xlu0 %2334  ;;  %v2967_v52 = vld [vmem:[%s7403_s8] sm:$0x3] }
 0x2bf   : > { %v2227_v14 = vmul.f32 %v8005_v22, %v6618_v6  ;;  %v6832_v18 = vadd.f32 %v2089_v17, %v1917_v0  ;;  %v1911_v30 = vadd.f32 %v6766_v16, %v8066_v27  ;;  %v1912_v34 = vadd.f32 %v1888_v44, %v8067_v57  ;;  %v2347_v54 = vpop.permute.xlu1 %2346 }
 0x2c0   : > { %v2279_v23 = vmul.f32 %v8065_v24, %v2225_v50  ;;  %v2381_v38 = vsel %vm2366_vm8, %v2323_v41, %v2335_v62  ;;  %v2106_v6 = vadd.f32 %v6776_v29, %v6769_v42  ;;  %v2085_v61 = vmul.f32 %v8061_v36, %v2031_v4  ;;  %v3060_v29 = vld [vmem:[%s7405_s10 + $0x8] sm:$0xff] }
 0x2c1   : > { %v2420_v39 = vmul.f32 %v8008_v7, %v2381_v38  ;;  %v2375_v8 = vsel %vm2366_vm8, %v2335_v62, %v2347_v54  ;;  %v1913_v16 = vadd.f32 %v1889_v9, %v8068_v31  ;;  %v2107_v12 = vadd.f32 %v2083_v11, %v1911_v30 }
 0x2c2   : > { %v2108_v44 = vadd.f32 %v2084_v46, %v1912_v34  ;;  %v2421_v2 = vmul.f32 %v8009_v58, %v2375_v8  ;;  %2970 = vperm.xlu1 %3949, %v2967_v52   ;;  %v2302_v1 = vadd.f32 %v2278_v15, %v2106_v6  ;;  %v2280_v60 = vmul.f32 %v8065_v24, %v2226_v13  ;;  %v2359_v36 = vpop.permute.xlu0 %2358 }
 0x2c3   : > { %v2281_v50 = vmul.f32 %v8065_v24, %v2227_v14  ;;  %v2474_v42 = vmul.f32 %v6645_v49, %v2420_v39  ;;  %v2303_v4 = vadd.f32 %v2279_v23, %v2107_v12  ;;  %v2369_v0 = vsel %vm2366_vm8, %v2347_v54, %v2359_v36  ;;  %v1467_v9 = vpop.permute.xlu1 %1466 }
 0x2c4   : > { %v2475_v3 = vmul.f32 %v6645_v49, %v2421_v2  ;;  %v2387_v17 = vsel %vm2366_vm8, %v2359_v36, %v2323_v41  ;;  %v2109_v11 = vadd.f32 %v2085_v61, %v1913_v16  ;;  %v2422_v24 = vmul.f32 %v8010_v10, %v2369_v0  ;;  %v3061_v41 = vld [vmem:[%s7405_s10 + $0x10] sm:$0xff]  ;;  %v8069_v16 = vld [vmem:[#allocation70_spill] sm:$0xff] }
 0x2c5   : > { %v6862_v46 = vadd.f32 %v2474_v42, %v2302_v1  ;;  %v2423_v15 = vmul.f32 %v8011_v19, %v2387_v17  ;;  %v2304_v62 = vadd.f32 %v2280_v60, %v2108_v44  ;;  %v8070_v44 = vld [vmem:[#allocation69_spill] sm:$0xff]  ;;  %v8072_v60 = vld [vmem:[#allocation72_spill] sm:$0xff]  ;;  %v3063_v0 = vld [vmem:[%s7405_s10 + $0x20] sm:$0xff] }
 0x2c6   : > { %v6866_v13 = vadd.f32 %v2475_v3, %v2303_v4  ;;  %3072 = vperm.xlu1 %3949, %v3060_v29   ;;  %v2305_v52 = vadd.f32 %v2281_v50, %v2109_v11  ;;  %v2476_v27 = vmul.f32 %v6645_v49, %v2422_v24  ;;  %v1479_v57 = vpop.permute.xlu0 %1478  ;;  %v8076_v11 = vld [vmem:[#allocation124_spill] sm:$0xff] }
 0x2c7   : > { %v4075_v14 = vpop.eup %4074  ;;  %v2477_v30 = vmul.f32 %v6645_v49, %v2423_v15  ;;  %v1522_v23 = vsel %vm1504_vm4, %v1467_v9, %v1479_v57  ;;  %v1491_v38 = vpop.permute.xlu1 %1490  ;;  %v8077_v15 = vld [vmem:[#allocation125_spill] sm:$0xff] }
 0x2c8   : > { %v4077_v34 = vpop.eup %4076  ;;  %v6875_v6 = vadd.f32 %v2476_v27, %v2304_v62  ;;  %v1571_v39 = vmul.f32 %v5401_v51, %v1522_v23  ;;  %v1516_v49 = vsel %vm1504_vm4, %v1479_v57, %v1491_v38  ;;  %v6887_v2 = vmul.f32 %v4075_v14, %v8070_v44  ;;  %v8074_v51 = vld [vmem:[#allocation67_spill] sm:$0xff] }
 0x2c9   : > { %v4079_v54 = vpop.eup %4078  ;;  %v6877_v61 = vadd.f32 %v2477_v30, %v2305_v52  ;;  %v1572_v31 = vmul.f32 %v5404_v53, %v1516_v49  ;;  %v6884_v12 = vmul.f32 %v4077_v34, %v8069_v16 }
 0x2ca   : > { %v4081_v8 = vpop.eup %4080  ;;  %3077 = vperm.xlu1 %3949, %v3061_v41   ;;  %8071 = vst [vmem:[#allocation49_spill] sm:$0xff] %v6887_v2  ;;  %v1625_v1 = vmul.f32 %v6722_v21, %v1571_v39  ;;  %v1503_v42 = vpop.permute.xlu0 %1502  ;;  %v6894_v36 = vmul.f32 %v4079_v54, %v8074_v51  ;;  %v8079_v54 = vld [vmem:[#allocation140_spill] sm:$0xff]  ;;  %v8082_v51 = vld [vmem:[#allocation43_spill] sm:$0xff] }
 0x2cb   : > { %v6891_v50 = vmul.f32 %v4081_v8, %v8072_v60  ;;  %v1626_v29 = vmul.f32 %v6722_v21, %v1572_v31  ;;  %v1510_v53 = vsel %vm1504_vm4, %v1491_v38, %v1503_v42  ;;  %v1528_v4 = vsel %vm1504_vm4, %v1503_v42, %v1467_v9  ;;  %2839 = vmatprep.mubr.f32.mxu0 %v6884_v12  ;;  %v1680_v3 = vpop.permute.xlu1 %1679  ;;  %v8080_v31 = vld [vmem:[#allocation46_spill] sm:$0xff] }
 0x2cc   : > { %8075 = vst [vmem:[#allocation75_spill] sm:$0xff] %v6894_v36  ;;  %v1649_v17 = vadd.f32 %v1625_v1, %v6702_v48  ;;  %v1570_v24 = vmul.f32 %v8076_v11, %v1528_v4  ;;  %v1573_v14 = vmul.f32 %v8077_v15, %v1510_v53  ;;  %v1703_v52 = vmul.f32 %v1680_v3, %v7984_v26  ;;  %v8081_v1 = vld [vmem:[#allocation141_spill] sm:$0xff] }
 0x2cd   : > { %8073 = vst [vmem:[#allocation82_spill] sm:$0xff] %v6891_v50  ;;  %2934 = vmatprep.mubr.f32.mxu1 %v6891_v50  ;;  %v1650_v62 = vadd.f32 %v1626_v29, %v6741_v5  ;;  %v1704_v9 = vmul.f32 %v1680_v3, %v7974_v25  ;;  %2840 = vmatmul.mubr.f32.gmra.mxu0 %v6887_v2  ;;  %v8078_v25 = vld [vmem:[#allocation14_spill] sm:$0xff]  ;;  %v8083_v53 = vld [vmem:[#allocation145_spill] sm:$0xff] }
 0x2ce   : > { %v1624_v27 = vmul.f32 %v6722_v21, %v1570_v24  ;;  %v1627_v30 = vmul.f32 %v6722_v21, %v1573_v14  ;;  %2935 = vmatmul.mubr.f32.gmra.mxu1 %v6894_v36  ;;  %3087 = vperm.xlu1 %3949, %v3063_v0   ;;  %v1739_v48 = vpop.permute.xlu0 %1738  ;;  %v1702_v57 = vmul.f32 %v1680_v3, %v7961_v32 }
 0x2cf   : > { %v6917_v41 = vadd.f32 %v1703_v52, %v1649_v17  ;;  %v6919_v34 = vadd.f32 %v1704_v9, %v1650_v62  ;;  %v1751_v5 = vpop.permute.xlu1 %1750  ;;  %v1705_v38 = vmul.f32 %v1680_v3, %v7988_v20  ;;  %v8084_v3 = vld [vmem:[#allocation146_spill] sm:$0xff]  ;;  %v8085_v62 = vld [vmem:[#allocation7_spill] sm:$0xff]  ;;  %v8086_v9 = vld [vmem:[#allocation45_spill] sm:$0xff] }
 0x2d0   : > { %v1648_v26 = vadd.f32 %v1624_v27, %v6744_v40  ;;  %v1651_v23 = vadd.f32 %v1627_v30, %v8078_v25  ;;  %v1795_v21 = vsel %vm1778_vm5, %v1739_v48, %v1751_v5  ;;  %v8087_v30 = vld [vmem:[#allocation68_spill] sm:$0xff] }
 0x2d1   : > { %v1840_v39 = vmul.f32 %v8079_v54, %v1795_v21 }
 0x2d2   : > { %v6927_v49 = vadd.f32 %v1702_v57, %v1648_v26  ;;  %v6929_v8 = vadd.f32 %v1705_v38, %v1651_v23  ;;  %v1763_v32 = vpop.permute.xlu0 %1762 }
 0x2d3   : > { %v1894_v16 = vmul.f32 %v8080_v31, %v1840_v39  ;;  %v1789_v44 = vsel %vm1778_vm5, %v1751_v5, %v1763_v32  ;;  %v1775_v40 = vpop.permute.xlu1 %1774 }
 0x2d4   : > { %v1841_v60 = vmul.f32 %v8081_v1, %v1789_v44  ;;  %v1783_v20 = vsel %vm1778_vm5, %v1763_v32, %v1775_v40  ;;  %v1801_v42 = vsel %vm1778_vm5, %v1775_v40, %v1739_v48 }
 0x2d5   : > { %v1918_v29 = vadd.f32 %v1894_v16, %v8082_v51  ;;  %v1842_v4 = vmul.f32 %v8083_v53, %v1783_v20  ;;  %v1843_v0 = vmul.f32 %v8084_v3, %v1801_v42 }
 0x2d6   : > { %v1895_v17 = vmul.f32 %v8080_v31, %v1841_v60  ;;  %v2067_v11 = vpop.permute.xlu0 %2066 }
 0x2d7   : > { %v1896_v24 = vmul.f32 %v8080_v31, %v1842_v4  ;;  %v1897_v15 = vmul.f32 %v8080_v31, %v1843_v0  ;;  %v2129_v14 = vpop.permute.xlu1 %2128 }
 0x2d8   : > { %v1919_v52 = vadd.f32 %v1895_v17, %v8085_v62 }
 0x2d9   : > { %v1920_v27 = vadd.f32 %v1896_v24, %v8086_v9  ;;  %v1921_v48 = vadd.f32 %v1897_v15, %v8087_v30  ;;  %v8088_v9 = vld [vmem:[#allocation130_spill] sm:$0xff] }
 0x2da   : > { %v2141_v57 = vpop.permute.xlu0 %2140 }
 0x2db   : > { %v2186_v5 = vsel %vm2170_vm7, %v2129_v14, %v2141_v57  ;;  %v2153_v26 = vpop.permute.xlu1 %2152 }
 0x2dc   : > { %v2228_v25 = vmul.f32 %v8004_v63, %v2186_v5  ;;  %v2180_v23 = vsel %vm2170_vm7, %v2141_v57, %v2153_v26 }
 0x2dd   : > { %v2229_v38 = vmul.f32 %v8006_v59, %v2180_v23 }
 0x2de   : > { %v2282_v21 = vmul.f32 %v6811_v33, %v2228_v25  ;;  %v2165_v39 = vpop.permute.xlu0 %2164 }
 0x2df   : > { %v2283_v32 = vmul.f32 %v6811_v33, %v2229_v38  ;;  %v2174_v31 = vsel %vm2170_vm7, %v2153_v26, %v2165_v39  ;;  %v2192_v16 = vsel %vm2170_vm7, %v2165_v39, %v2129_v14  ;;  %v6960_v44 = vpop.permute.xlu1 %2453 }
 0x2e0   : > { %v6963_v40 = vadd.f32 %v2282_v21, %v6803_v55  ;;  %v2230_v60 = vmul.f32 %v8007_v47, %v2174_v31  ;;  %v2231_v20 = vmul.f32 %v8005_v22, %v2192_v16 }
 0x2e1   : > { %v6968_v42 = vadd.f32 %v2283_v32, %v6817_v43 }
 0x2e2   : > { %v2284_v51 = vmul.f32 %v6811_v33, %v2230_v60  ;;  %v2285_v4 = vmul.f32 %v6811_v33, %v2231_v20  ;;  %v1947_v0 = vpop.permute.xlu0 %1946 }
 0x2e3   : > { %v1876_v17 = vpop.permute.xlu1 %1875 }
 0x2e4   : > { %v6973_v24 = vadd.f32 %v2284_v51, %v6823_v28  ;;  %v6976_v15 = vadd.f32 %v2285_v4, %v6832_v18 }
 0x2e6   : > { %v1971_v55 = vpop.permute.xlu0 %1970 }
 0x2e7   : > { %v1935_v14 = vpop.permute.xlu1 %1934 }
 0x2e8   : > { %v1991_v62 = vsel %vm1974_vm6, %v1935_v14, %v1947_v0  ;;  %v1997_v43 = vsel %vm1974_vm6, %v1971_v55, %v1935_v14 }
 0x2e9   : > { %v2036_v30 = vmul.f32 %v8088_v9, %v1991_v62  ;;  %v2039_v33 = vmul.f32 %v8064_v56, %v1997_v43 }
 0x2ea   : > { %v2325_v57 = vpop.permute.xlu0 %2324 }
 0x2eb   : > { %v2090_v5 = vmul.f32 %v2067_v11, %v2036_v30  ;;  %v2093_v26 = vmul.f32 %v2067_v11, %v2039_v33  ;;  %v1959_v28 = vpop.permute.xlu1 %1958 }
 0x2ec   : > { %v1979_v18 = vsel %vm1974_vm6, %v1959_v28, %v1971_v55  ;;  %v1985_v25 = vsel %vm1974_vm6, %v1947_v0, %v1959_v28 }
 0x2ed   : > { %v6988_v23 = vadd.f32 %v2090_v5, %v1918_v29  ;;  %v6990_v38 = vadd.f32 %v2093_v26, %v1921_v48  ;;  %v2037_v21 = vmul.f32 %v8062_v35, %v1985_v25  ;;  %v2038_v39 = vmul.f32 %v8063_v37, %v1979_v18 }
 0x2ee   : > { %v2349_v32 = vpop.permute.xlu0 %2348 }
 0x2ef   : > { %v2091_v31 = vmul.f32 %v2067_v11, %v2037_v21  ;;  %v2092_v16 = vmul.f32 %v2067_v11, %v2038_v39  ;;  %v6994_v60 = vpop.permute.xlu1 %2262 }
 0x2f1   : > { %v6996_v20 = vadd.f32 %v2091_v31, %v1919_v52  ;;  %v6998_v51 = vadd.f32 %v2092_v16, %v1920_v27 }
 0x2f2   : > { %v1741_v4 = vpop.permute.xlu0 %1740 }
 0x2f3   : > { %v2337_v55 = vpop.permute.xlu1 %2336 }
 0x2f6   : > { %v1765_v0 = vpop.permute.xlu0 %1764 }
 0x2f7   : > { %v2361_v29 = vpop.permute.xlu1 %2360 }
 0x2fb   : > { %v7000_v14 = vpop.permute.xlu0 %2071  ;;  %v1753_v48 = vpop.permute.xlu1 %1752 }
 0x2fc   : > { %v1790_v62 = vsel %vm1778_vm5, %v1753_v48, %v1765_v0  ;;  %v1796_v43 = vsel %vm1778_vm5, %v1741_v4, %v1753_v48 }
 0x2fd   : > { %v1844_v11 = vmul.f32 %v8079_v54, %v1796_v43  ;;  %v1845_v52 = vmul.f32 %v8081_v1, %v1790_v62 }
 0x2ff   : > { %v1898_v30 = vmul.f32 %v1876_v17, %v1844_v11  ;;  %v1899_v27 = vmul.f32 %v1876_v17, %v1845_v52  ;;  %v7008_v33 = vpop.permute.xlu0 %2154  ;;  %v1777_v5 = vpop.permute.xlu1 %1776 }
 0x300   : > { %v1784_v26 = vsel %vm1778_vm5, %v1765_v0, %v1777_v5  ;;  %v1802_v28 = vsel %vm1778_vm5, %v1777_v5, %v1741_v4  ;;  %v2376_v0 = vsel %vm2366_vm8, %v2337_v55, %v2349_v32 }
 0x301   : > { %v7015_v18 = vadd.f32 %v1898_v30, %v6927_v49  ;;  %v7018_v25 = vadd.f32 %v1899_v27, %v6917_v41  ;;  %v1846_v54 = vmul.f32 %v8083_v53, %v1784_v26  ;;  %v1847_v1 = vmul.f32 %v8084_v3, %v1802_v28 }
 0x302   : > { %v2382_v49 = vsel %vm2366_vm8, %v2325_v57, %v2337_v55  ;;  %v2370_v41 = vsel %vm2366_vm8, %v2349_v32, %v2361_v29  ;;  %v2388_v53 = vsel %vm2366_vm8, %v2361_v29, %v2325_v57  ;;  %v2425_v48 = vmul.f32 %v8009_v58, %v2376_v0 }
 0x303   : > { %v1900_v21 = vmul.f32 %v1876_v17, %v1846_v54  ;;  %v1901_v39 = vmul.f32 %v1876_v17, %v1847_v1  ;;  %v7022_v31 = vpop.permute.xlu0 %2458  ;;  %v7024_v16 = vpop.permute.xlu1 %2130  ;;  %v2424_v4 = vmul.f32 %v8008_v7, %v2382_v49  ;;  %v2426_v55 = vmul.f32 %v8010_v10, %v2370_v41 }
 0x304   : > { %v2427_v32 = vmul.f32 %v8011_v19, %v2388_v53  ;;  %v2479_v57 = vmul.f32 %v6960_v44, %v2425_v48 }
 0x305   : > { %v7035_v3 = vadd.f32 %v1900_v21, %v6919_v34  ;;  %v7038_v17 = vadd.f32 %v1901_v39, %v6929_v8  ;;  %v2478_v11 = vmul.f32 %v6960_v44, %v2424_v4  ;;  %v2480_v8 = vmul.f32 %v6960_v44, %v2426_v55 }
 0x306   : > { %v2481_v52 = vmul.f32 %v6960_v44, %v2427_v32  ;;  %v2503_v27 = vadd.f32 %v2479_v57, %v6968_v42 }
 0x307   : > { %v7042_v62 = vpop.permute.xlu0 %1936  ;;  %v2143_v43 = vpop.permute.xlu1 %2142  ;;  %v2502_v30 = vadd.f32 %v2478_v11, %v6963_v40  ;;  %v2504_v26 = vadd.f32 %v2480_v8, %v6973_v24 }
 0x308   : > { %v2505_v28 = vadd.f32 %v2481_v52, %v6976_v15  ;;  %v2181_v57 = vsel %vm2170_vm7, %v2143_v43, %v7008_v33 }
 0x30b   : > { %v7048_v34 = vpop.permute.xlu0 %1960  ;;  %v2167_v29 = vpop.permute.xlu1 %2166 }
 0x30f   : > { %v7054_v5 = vpop.permute.xlu0 %2267 }
 0x311   : > { %v2528_v54 = vpop.permute.xlu1 %2527 }
 0x312   : > { %v7058_v1 = vadd.f32 %v2528_v54, %v2502_v30  ;;  %v7060_v21 = vadd.f32 %v2528_v54, %v2503_v27  ;;  %v7062_v39 = vadd.f32 %v2528_v54, %v2504_v26  ;;  %v7064_v0 = vadd.f32 %v2528_v54, %v2505_v28 }
 0x314   : > { %v2574_v44 = vsub.f32 0.0, %v7058_v1  ;;  %v2575_v40 = vsub.f32 0.0, %v7060_v21  ;;  %v2576_v42 = vsub.f32 0.0, %v7062_v39  ;;  %v2577_v49 = vsub.f32 0.0, %v7064_v0  ;;  %v2524_v41 = vpop.permute.xlu0 %2523 }
 0x315   : > { %v1949_v24 = vpop.permute.xlu1 %1948  ;;  %v7071_v55 = vadd.f32 %v2524_v41, %v6862_v46  ;;  %v7074_v32 = vadd.f32 %v2524_v41, %v6866_v13  ;;  %v7077_v11 = vadd.f32 %v2524_v41, %v6875_v6  ;;  %v7083_v8 = vadd.f32 %v2524_v41, %v6877_v61 }
 0x316   : > { %v2610_v15 = vmul.f32 1.442695, %v2574_v44  ;;  %v2612_v53 = vmul.f32 1.442695, %v2575_v40  ;;  %v2614_v4 = vmul.f32 1.442695, %v2576_v42  ;;  %v2175_v6 = vsel %vm2170_vm7, %v7008_v33, %v2167_v29 }
 0x317   : > { %v2616_v48 = vmul.f32 1.442695, %v2577_v49  ;;  %v2570_v46 = vsub.f32 0.0, %v7071_v55  ;;  %v2571_v27 = vsub.f32 0.0, %v7074_v32  ;;  %v2572_v13 = vsub.f32 0.0, %v7077_v11 }
 0x318   : > { %4082 = vpow2.f32 %v2610_v15  ;;  %v2339_v30 = vpop.permute.xlu0 %2338  ;;  %v2573_v26 = vsub.f32 0.0, %v7083_v8  ;;  %v2187_v44 = vsel %vm2170_vm7, %v7024_v16, %v2143_v43  ;;  %v2233_v40 = vmul.f32 %v8006_v59, %v2181_v57 }
 0x319   : > { %4084 = vpow2.f32 %v2612_v53  ;;  %v1973_v52 = vpop.permute.xlu1 %1972  ;;  %v2602_v28 = vmul.f32 1.442695, %v2570_v46  ;;  %v2604_v54 = vmul.f32 1.442695, %v2571_v27  ;;  %v2606_v61 = vmul.f32 1.442695, %v2572_v13 }
 0x31a   : > { %4086 = vpow2.f32 %v2614_v4  ;;  %v2608_v42 = vmul.f32 1.442695, %v2573_v26  ;;  %v2193_v15 = vsel %vm2170_vm7, %v2167_v29, %v7024_v16  ;;  %v2234_v33 = vmul.f32 %v8007_v47, %v2175_v6 }
 0x31b   : > { %4088 = vpow2.f32 %v2616_v48  ;;  %v2232_v4 = vmul.f32 %v8004_v63, %v2187_v44  ;;  %v2287_v48 = vmul.f32 %v6994_v60, %v2233_v40  ;;  %v2235_v57 = vmul.f32 %v8005_v22, %v2193_v15 }
 0x31c   : > { %v2363_v41 = vpop.permute.xlu0 %2362  ;;  %4090 = vpow2.f32 %v2602_v28  ;;  %v2288_v29 = vmul.f32 %v6994_v60, %v2234_v33 }
 0x31d   : > { %v2327_v49 = vpop.permute.xlu1 %2326  ;;  %4092 = vpow2.f32 %v2604_v54  ;;  %v2311_v40 = vadd.f32 %v2287_v48, %v6996_v20 }
 0x31e   : > { %v2383_v53 = vsel %vm2366_vm8, %v2327_v49, %v2339_v30  ;;  %4094 = vpow2.f32 %v2606_v61  ;;  %v2389_v43 = vsel %vm2366_vm8, %v2363_v41, %v2327_v49  ;;  %v2286_v61 = vmul.f32 %v6994_v60, %v2232_v4 }
 0x31f   : > { %4096 = vpow2.f32 %v2608_v42  ;;  %v2428_v27 = vmul.f32 %v8008_v7, %v2383_v53  ;;  %v2431_v26 = vmul.f32 %v8011_v19, %v2389_v43  ;;  %v2289_v42 = vmul.f32 %v6994_v60, %v2235_v57 }
 0x320   : > { %v2145_v16 = vpop.permute.xlu0 %2144  ;;  %v2312_v53 = vadd.f32 %v2288_v29, %v6998_v51  ;;  %v1986_v43 = vsel %vm1974_vm6, %v1949_v24, %v7048_v34  ;;  %v1992_v4 = vsel %vm1974_vm6, %v7042_v62, %v1949_v24  ;;  %v1980_v57 = vsel %vm1974_vm6, %v7048_v34, %v1973_v52 }
 0x321   : > { %v2351_v46 = vpop.permute.xlu1 %2350  ;;  %v2482_v20 = vmul.f32 %v7022_v31, %v2428_v27  ;;  %v1998_v51 = vsel %vm1974_vm6, %v1973_v52, %v7042_v62  ;;  %v2313_v24 = vadd.f32 %v2289_v42, %v6990_v38  ;;  %v2041_v34 = vmul.f32 %v8062_v35, %v1986_v43 }
 0x322   : > { %v2371_v13 = vsel %vm2366_vm8, %v2351_v46, %v2363_v41  ;;  %v2377_v6 = vsel %vm2366_vm8, %v2339_v30, %v2351_v46  ;;  %v2485_v46 = vmul.f32 %v7022_v31, %v2431_v26  ;;  %v2042_v50 = vmul.f32 %v8063_v37, %v1980_v57 }
 0x323   : > { %v2429_v28 = vmul.f32 %v8009_v58, %v2377_v6  ;;  %v2430_v54 = vmul.f32 %v8010_v10, %v2371_v13  ;;  %v2310_v13 = vadd.f32 %v2286_v61, %v6988_v23  ;;  %v2043_v62 = vmul.f32 %v8064_v56, %v1998_v51 }
 0x324   : > { %v2169_v33 = vpop.permute.xlu0 %2168  ;;  %v2509_v23 = vadd.f32 %v2485_v46, %v2313_v24  ;;  %v2095_v24 = vmul.f32 %v7000_v14, %v2041_v34 }
 0x325   : > { %v4083_v44 = vpop.eup %4082  ;;  %v2483_v49 = vmul.f32 %v7022_v31, %v2429_v28  ;;  %v2484_v41 = vmul.f32 %v7022_v31, %v2430_v54  ;;  %v2133_v15 = vpop.permute.xlu1 %2132  ;;  %v2040_v54 = vmul.f32 %v8088_v9, %v1992_v4  ;;  %v2506_v31 = vadd.f32 %v2482_v20, %v2310_v13 }
 0x326   : > { %v4085_v30 = vpop.eup %4084  ;;  %v2646_v48 = vadd.f32 1.0, %v4083_v44  ;;  %v2188_v38 = vsel %vm2170_vm7, %v2133_v15, %v2145_v16 }
 0x327   : > { %v4087_v60 = vpop.eup %4086  ;;  %v2647_v6 = vadd.f32 1.0, %v4085_v30  ;;  %v2507_v28 = vadd.f32 %v2483_v49, %v2311_v40  ;;  %v2508_v44 = vadd.f32 %v2484_v41, %v2312_v53 }
 0x328   : > { %v4089_v29 = vpop.eup %4088  ;;  %v2648_v26 = vadd.f32 1.0, %v4087_v60  ;;  %4098 = vrcp.f32 %v2646_v48  ;;  %v2236_v60 = vmul.f32 %v8004_v63, %v2188_v38  ;;  %v2194_v48 = vsel %vm2170_vm7, %v2169_v33, %v2133_v15 }
 0x329   : > { %v2649_v27 = vadd.f32 1.0, %v4089_v29  ;;  %v2157_v36 = vpop.permute.xlu1 %2156  ;;  %v2532_v2 = vpop.permute.xlu0 %2531  ;;  %4100 = vrcp.f32 %v2647_v6  ;;  %v2094_v15 = vmul.f32 %v7000_v14, %v2040_v54 }
 0x32a   : > { %v4091_v52 = vpop.eup %4090  ;;  %v7144_v40 = vadd.f32 %v2532_v2, %v2506_v31  ;;  %v7146_v42 = vadd.f32 %v2532_v2, %v2507_v28  ;;  %v2182_v56 = vsel %vm2170_vm7, %v2145_v16, %v2157_v36  ;;  %v7150_v49 = vadd.f32 %v2532_v2, %v2508_v44 }
 0x32b   : > { %v4093_v61 = vpop.eup %4092  ;;  %v2642_v9 = vadd.f32 1.0, %v4091_v52  ;;  %4102 = vrcp.f32 %v2649_v27  ;;  %v7154_v43 = vadd.f32 %v2532_v2, %v2509_v23  ;;  %v2176_v2 = vsel %vm2170_vm7, %v2157_v36, %v2169_v33 }
 0x32c   : > { %v4095_v35 = vpop.eup %4094  ;;  %v2643_v37 = vadd.f32 1.0, %v4093_v61  ;;  %v2578_v4 = vsub.f32 0.0, %v7144_v40  ;;  %v2579_v16 = vsub.f32 0.0, %v7146_v42  ;;  %v2580_v57 = vsub.f32 0.0, %v7150_v49 }
 0x32d   : > { %v7152_v41 = vpop.permute.xlu1 %2463  ;;  %v4097_v30 = vpop.eup %4096  ;;  %v2644_v53 = vadd.f32 1.0, %v4095_v35  ;;  %4104 = vrcp.f32 %v2642_v9  ;;  %v2581_v51 = vsub.f32 0.0, %v7154_v43  ;;  %v2237_v46 = vmul.f32 %v8006_v59, %v2182_v56 }
 0x32e   : > { %v2645_v20 = vadd.f32 1.0, %v4097_v30  ;;  %4106 = vrcp.f32 %v2643_v37  ;;  %v2618_v29 = vmul.f32 1.442695, %v2578_v4  ;;  %v2620_v63 = vmul.f32 1.442695, %v2579_v16  ;;  %v2353_v31 = vpop.permute.xlu0 %2352 }
 0x32f   : > { %4108 = vrcp.f32 %v2644_v53  ;;  %v2622_v6 = vmul.f32 1.442695, %v2580_v57  ;;  %v2624_v28 = vmul.f32 1.442695, %v2581_v51  ;;  %v2239_v27 = vmul.f32 %v8005_v22, %v2194_v48 }
 0x330   : > { %4110 = vrcp.f32 %v2645_v20  ;;  %v2238_v44 = vmul.f32 %v8007_v47, %v2176_v2  ;;  %v2096_v36 = vmul.f32 %v7000_v14, %v2042_v50  ;;  %v2290_v59 = vmul.f32 %v7054_v5, %v2236_v60 }
 0x331   : > { %v2329_v13 = vpop.permute.xlu1 %2328  ;;  %4112 = vrcp.f32 %v2648_v26  ;;  %v2291_v33 = vmul.f32 %v7054_v5, %v2237_v46  ;;  %v2097_v26 = vmul.f32 %v7000_v14, %v2043_v62  ;;  %v2118_v47 = vadd.f32 %v2094_v15, %v7015_v18 }
 0x332   : > { %4114 = vpow2.f32 %v2618_v29  ;;  %v2119_v50 = vadd.f32 %v2095_v24, %v7018_v25  ;;  %v2293_v61 = vmul.f32 %v7054_v5, %v2239_v27  ;;  %v2292_v14 = vmul.f32 %v7054_v5, %v2238_v44  ;;  %v2536_v2 = vpop.permute.xlu0 %2535 }
 0x333   : > { %4116 = vpow2.f32 %v2620_v63  ;;  %v2314_v9 = vadd.f32 %v2290_v59, %v2118_v47  ;;  %v2120_v25 = vadd.f32 %v2096_v36, %v7035_v3 }
 0x334   : > { %4118 = vpow2.f32 %v2622_v6  ;;  %v2315_v35 = vadd.f32 %v2291_v33, %v2119_v50 }
 0x335   : > { %v2341_v52 = vpop.permute.xlu1 %2340  ;;  %4120 = vpow2.f32 %v2624_v28  ;;  %v4099_v38 = vpop.eup %4098  ;;  %v2316_v51 = vadd.f32 %v2292_v14, %v2120_v25 }
 0x336   : > { %v2378_v54 = vsel %vm2366_vm8, %v2341_v52, %v2353_v31  ;;  %v2384_v22 = vsel %vm2366_vm8, %v2329_v13, %v2341_v52  ;;  %v4101_v62 = vpop.eup %4100 }
 0x337   : > { %v2432_v34 = vmul.f32 %v8008_v7, %v2384_v22  ;;  %v2433_v23 = vmul.f32 %v8009_v58, %v2378_v54  ;;  %v2121_v7 = vadd.f32 %v2097_v26, %v7038_v17  ;;  %v7208_v63 = vmul.f32 %v4101_v62, %v7060_v21 }
 0x338   : > { %v4103_v18 = vpop.eup %4102 }
 0x339   : > { %v2486_v37 = vmul.f32 %v7152_v41, %v2432_v34  ;;  %v2487_v56 = vmul.f32 %v7152_v41, %v2433_v23  ;;  %v2365_v30 = vpop.permute.xlu1 %2364  ;;  %v2317_v57 = vadd.f32 %v2293_v61, %v2121_v7  ;;  %v7222_v44 = vmul.f32 %v4103_v18, %v7064_v0 }
 0x33a   : > { %v2372_v58 = vsel %vm2366_vm8, %v2353_v31, %v2365_v30  ;;  %v2390_v53 = vsel %vm2366_vm8, %v2365_v30, %v2329_v13  ;;  %v4105_v5 = vpop.eup %4104  ;;  %v7226_v31 = vmul.f32 %v4099_v38, %v7058_v1 }
 0x33b   : > { %v2510_v4 = vadd.f32 %v2486_v37, %v2314_v9  ;;  %v2511_v20 = vadd.f32 %v2487_v56, %v2315_v35  ;;  %v2434_v60 = vmul.f32 %v8010_v10, %v2372_v58  ;;  %v2435_v48 = vmul.f32 %v8011_v19, %v2390_v53  ;;  %v4107_v16 = vpop.eup %4106 }
 0x33c   : > { %v7195_v3 = vmul.f32 %v4105_v5, %v7071_v55  ;;  %v4109_v17 = vpop.eup %4108  ;;  %v7200_v29 = vmul.f32 %v4107_v16, %v7074_v32  ;;  %v8089_v16 = vmov 0.0  }
 0x33d   : > { %v2488_v46 = vmul.f32 %v7152_v41, %v2434_v60  ;;  %v2489_v45 = vmul.f32 %v7152_v41, %v2435_v48  ;;  %v7202_v13 = vadd.f32 %v2536_v2, %v2511_v20  ;;  %v4111_v10 = vpop.eup %4110  ;;  %v7205_v19 = vmul.f32 %v4109_v17, %v7077_v11 }
 0x33e   : > { %v7210_v6 = vadd.f32 %v2536_v2, %v2510_v4  ;;  %v4113_v55 = vpop.eup %4112  ;;  %2844 = vmatprep.mubr.f32.mxu0 %v7200_v29  ;;  %v7214_v41 = vmul.f32 %v4111_v10, %v7083_v8 }
 0x33f   : > { %v2512_v28 = vadd.f32 %v2488_v46, %v2316_v51  ;;  %v2513_v15 = vadd.f32 %v2489_v45, %v2317_v57  ;;  %v2583_v32 = vsub.f32 0.0, %v7202_v13  ;;  %v4115_v24 = vpop.eup %4114  ;;  %2845 = vmatmul.mubr.f32.gmra.mxu0 %v7195_v3  ;;  %v7231_v0 = vmul.f32 %v4113_v55, %v7062_v39  ;;  %v3809_v57 = vpop.f32.mrf.mxu0 }
 0x340   : > { %v2582_v11 = vsub.f32 0.0, %v7210_v6  ;;  %v4117_v27 = vpop.eup %4116  ;;  %v2650_v21 = vadd.f32 1.0, %v4115_v24  ;;  %2939 = vmatprep.mubr.f32.mxu1 %v7214_v41  ;;  %2849 = vmatprep.mubr.f32.mxu0 %v7208_v63  ;;  %v3859_v51 = vpop.f32.mrf.mxu1 }
 0x341   : > { %v2561_v36 = vadd.f32 %v2536_v2, %v2513_v15  ;;  %v2560_v59 = vadd.f32 %v2536_v2, %v2512_v28  ;;  %v4119_v8 = vpop.eup %4118  ;;  %v2651_v33 = vadd.f32 1.0, %v4117_v27  ;;  %2940 = vmatmul.mubr.f32.gmra.mxu1 %v7205_v19  ;;  %v2628_v52 = vmul.f32 1.442695, %v2583_v32  ;;  %v3810_v2 = vpop.f32.mrf.mxu0 }
 0x342   : > { %v4121_v26 = vpop.eup %4120  ;;  %v2652_v54 = vadd.f32 1.0, %v4119_v8  ;;  %4122 = vrcp.f32 %v2650_v21  ;;  %2944 = vmatprep.mubr.f32.mxu1 %v7222_v44  ;;  %v2626_v34 = vmul.f32 1.442695, %v2582_v11  ;;  %v3860_v17 = vpop.f32.mrf.mxu1 }
 0x343   : > { %v2585_v22 = vsub.f32 0.0, %v2561_v36  ;;  %v2584_v47 = vsub.f32 0.0, %v2560_v59  ;;  %v2653_v50 = vadd.f32 1.0, %v4121_v26  ;;  %4124 = vrcp.f32 %v2651_v33  ;;  %2850 = vmatmul.mubr.f32.gmra.mxu0 %v7226_v31 }
 0x344   : > { %4126 = vrcp.f32 %v2652_v54 }
 0x345   : > { %v2632_v23 = vmul.f32 1.442695, %v2585_v22  ;;  %4128 = vrcp.f32 %v2653_v50  ;;  %2945 = vmatmul.mubr.f32.gmra.mxu1 %v7231_v0  ;;  %v2630_v1 = vmul.f32 1.442695, %v2584_v47 }
 0x346   : > { %4130 = vpow2.f32 %v2628_v52 }
 0x347   : > { %4132 = vpow2.f32 %v2626_v34 }
 0x348   : > { %4134 = vpow2.f32 %v2632_v23 }
 0x349   : > { %4136 = vpow2.f32 %v2630_v1 }
 0x34f   : > { %v4123_v38 = vpop.eup %4122 }
 0x350   : > { %v4125_v61 = vpop.eup %4124  ;;  %v7235_v14 = vmul.f32 %v4123_v38, %v7144_v40 }
 0x351   : > { %v4127_v62 = vpop.eup %4126  ;;  %v7238_v39 = vmul.f32 %v4125_v61, %v7146_v42 }
 0x352   : > { %v4129_v9 = vpop.eup %4128  ;;  %v7241_v35 = vmul.f32 %v4127_v62, %v7150_v49 }
 0x353   : > { %v4131_v37 = vpop.eup %4130  ;;  %2854 = vmatprep.mubr.f32.mxu0 %v7238_v39  ;;  %v7245_v56 = vmul.f32 %v4129_v9, %v7154_v43 }
 0x354   : > { %v4133_v30 = vpop.eup %4132  ;;  %2855 = vmatmul.mubr.f32.gmra.mxu0 %v7235_v14  ;;  %v2655_v18 = vadd.f32 1.0, %v4131_v37 }
 0x355   : > { %v4135_v40 = vpop.eup %4134  ;;  %2949 = vmatprep.mubr.f32.mxu1 %v7245_v56  ;;  %v2654_v25 = vadd.f32 1.0, %v4133_v30 }
 0x356   : > { %v4137_v42 = vpop.eup %4136  ;;  %2950 = vmatmul.mubr.f32.gmra.mxu1 %v7241_v35  ;;  %4138 = vrcp.f32 %v2655_v18  ;;  %v2657_v49 = vadd.f32 1.0, %v4135_v40 }
 0x357   : > { %4140 = vrcp.f32 %v2654_v25  ;;  %v2656_v7 = vadd.f32 1.0, %v4137_v42  ;;  %v3811_v25 = vadd.f32 %v3810_v2, %v3809_v57  ;;  %v3861_v42 = vadd.f32 %v3860_v17, %v3859_v51  ;;  %v2966_v51 = vld [vmem:[%s7402_s7] sm:$0x3]  ;;  %v3055_v17 = vld [vmem:[%s7404_s9 + $0x10] sm:$0xff] }
 0x358   : > { %4142 = vrcp.f32 %v2657_v49  ;;  %v3053_v2 = vld [vmem:[%s7404_s9] sm:$0xff] }
 0x359   : > { %4144 = vrcp.f32 %v2656_v7 }
 0x363   : > { %v4139_v58 = vpop.eup %4138 }
 0x364   : > { %v4141_v43 = vpop.eup %4140  ;;  %v7251_v53 = vmul.f32 %v4139_v58, %v7202_v13 }
 0x365   : > { %v4143_v5 = vpop.eup %4142  ;;  %v7254_v4 = vmul.f32 %v4141_v43, %v7210_v6 }
 0x366   : > { %v4145_v20 = vpop.eup %4144  ;;  %2859 = vmatprep.mubr.f32.mxu0 %v7251_v53  ;;  %v7257_v60 = vmul.f32 %v4143_v5, %v2561_v36  ;;  %v2932_v5 = vadd.f32 %v3861_v42, %v3811_v25 }
 0x367   : > { %2860 = vmatmul.mubr.f32.gmra.mxu0 %v7254_v4  ;;  %v7260_v48 = vmul.f32 %v4145_v20, %v2560_v59 }
 0x368   : > { %2954 = vmatprep.mubr.f32.mxu1 %v7257_v60  ;;  %3903 = vmatprep.mubr.msk.f32.mxu0 %vm4204_vm9, %v8089_v16  ;;  %v2960_v57 = vmul.f32 0.00390625, %v2932_v5 }
 0x369   : > { %2955 = vmatmul.mubr.f32.gmra.mxu1 %v7260_v48 }
 0x36a   : > { %3911 = vmatprep.mubr.msk.f32.mxu1 %vm3095_vm11, %v3055_v17 }
 0x38d   : > { %v3812_v46 = vpop.f32.mrf.mxu0 }
 0x38e   : > { %v3862_v45 = vpop.f32.mrf.mxu1 }
 0x38f   : > { %v3813_v13 = vpop.f32.mrf.mxu0 }
 0x390   : > { %v3863_v10 = vpop.f32.mrf.mxu1  ;;  %v3814_v37 = vadd.f32 %v3813_v13, %v3812_v46  ;;  %v3062_v13 = vld [vmem:[%s7405_s10 + $0x18] sm:$0xff] }
 0x391   : > { %v3864_v30 = vadd.f32 %v3863_v10, %v3862_v45  ;;  %v3059_v45 = vld [vmem:[%s7405_s10] sm:$0xff]  ;;  %v3064_v10 = vld [vmem:[%s7405_s10 + $0x28] sm:$0xff] }
 0x392   : > { %3067 = vperm.xlu0 %3950, %v3059_v45  }
 0x393   : > { %v2937_v58 = vadd.f32 %v3864_v30, %v3814_v37 }
 0x395   : > { %v2961_v46 = vmul.f32 0.00390625, %v2937_v58 }
 0x396   : > { %3082 = vperm.xlu0 %3950, %v3062_v13  }
 0x39a   : > { %3092 = vperm.xlu0 %3950, %v3064_v10  }
 0x3ff   : > { %v3815_v6 = vpop.f32.mrf.mxu0 }
 0x401   : > { %v3865_v55 = vpop.f32.mrf.mxu1  ;;  %v3816_v28 = vpop.f32.mrf.mxu0 }
 0x402   : > { %v3817_v38 = vadd.f32 %v3816_v28, %v3815_v6  ;;  %v2971_v6 = vpop.permute.xlu1 %2970 }
 0x403   : > { %v3866_v15 = vpop.f32.mrf.mxu1  ;;  %v3818_v32 = vpop.f32.mrf.mxu0 }
 0x404   : > { %v3867_v61 = vadd.f32 %v3866_v15, %v3865_v55 }
 0x405   : > { %v3868_v24 = vpop.f32.mrf.mxu1  ;;  %v3819_v11 = vpop.f32.mrf.mxu0 }
 0x406   : > { %v3820_v50 = vadd.f32 %v3819_v11, %v3818_v32  ;;  %v2942_v49 = vadd.f32 %v3867_v61, %v3817_v38 }
 0x407   : > { %v3869_v27 = vpop.f32.mrf.mxu1 }
 0x408   : > { %v3870_v34 = vadd.f32 %v3869_v27, %v3868_v24  ;;  %v2962_v20 = vmul.f32 0.00390625, %v2942_v49 }
 0x40a   : > { %v2947_v18 = vadd.f32 %v3870_v34, %v3820_v50  ;;  %v8090_v34 = vld [vmem:[#allocation102_spill] sm:$0xff] }
 0x40c   : > { %v2963_v43 = vmul.f32 0.00390625, %v2947_v18 }
 0x40d   : > { %v3068_v37 = vpop.permute.xlu0 %3067 }
 0x411   : > { %v3083_v5 = vpop.permute.xlu0 %3082 }
 0x414   : > { %v3821_v21 = vpop.f32.mrf.mxu0 }
 0x416   : > { %v3871_v36 = vpop.f32.mrf.mxu1  ;;  %v3822_v59 = vpop.f32.mrf.mxu0 }
 0x417   : > { %v3823_v54 = vadd.f32 %v3822_v59, %v3821_v21  ;;  %v3054_v59 = vld [vmem:[%s7404_s9 + $0x8] sm:$0xff] }
 0x418   : > { %v3872_v8 = vpop.f32.mrf.mxu1 }
 0x419   : > { %v3873_v22 = vadd.f32 %v3872_v8, %v3871_v36  ;;  %v3056_v8 = vld [vmem:[%s7404_s9 + $0x18] sm:$0xff] }
 0x41b   : > { %v2952_v62 = vadd.f32 %v3873_v22, %v3823_v54  ;;  %v4205_v54 = vmov 1983009808  }
 0x41c   : > { %v3247_v22 = vunpack.c.l.s4 %v4205_v54 }
 0x41d   : > { %v2964_v7 = vmul.f32 0.00390625, %v2952_v62 }
 0x427   : > { %v3824_v33 = vpop.f32.mrf.mxu0 }
 0x429   : > { %v3825_v52 = vpop.f32.mrf.mxu0  ;;  %v3874_v26 = vpop.f32.mrf.mxu1 }
 0x42a   : > { %v3826_v23 = vadd.f32 %v3825_v52, %v3824_v33  ;;  %v3057_v33 = vld [vmem:[%s7404_s9 + $0x20] sm:$0xff]  ;;  %v3058_v52 = vld [vmem:[%s7404_s9 + $0x28] sm:$0xff] }
 0x42b   : > { %v3875_v47 = vpop.f32.mrf.mxu1 }
 0x42c   : > { %v3876_v1 = vadd.f32 %v3875_v47, %v3874_v26  ;;  %v3243_v26 = vld [vmem:[%s7396_s1] sm:$0xff]  ;;  %v3248_v47 = vunpack.c.0.s8 %v3247_v22 }
 0x42d   : > { %v3245_v50 = vcombine.high %v3243_v26, %v3243_v26 }
 0x42e   : > { %v2957_v9 = vadd.f32 %v3876_v1, %v3826_v23  ;;  %v3251_v23 = vsub.s32 %v3248_v47, %v8090_v34 }
 0x430   : > { %v2965_v40 = vmul.f32 0.00390625, %v2957_v9  ;;  %v3252_v1 = vrot.slane %v3243_v26, %v3251_v23  ;;  %v3259_v38 = vrot.slane %v3245_v50, %v3251_v23  ;;  %v3073_v9 = vpop.permute.xlu1 %3072 }
 0x432   : > { %3892 = vmatpush3.msra.mxu0 %v2965_v40  ;;  %v3260_v61 = vcombine.high %v3252_v1, %v3252_v1  ;;  %v3261_v62 = vcombine.high %v3259_v38, %v3259_v38 }
 0x433   : > { %3893 = vmatprep.subr.mxu0 %v8089_v16 }
 0x434   : > { %3894 = vmatpush3.msra.mxu0 %v2964_v7  ;;  %v3078_v40 = vpop.permute.xlu1 %3077 }
 0x435   : > { %3895 = vmatprep.subr.mxu0 %v8089_v16 }
 0x436   : > { %3896 = vmatpush3.msra.mxu0 %v2963_v43 }
 0x437   : > { %3897 = vmatprep.subr.mxu0 %v8089_v16 }
 0x438   : > { %3898 = vmatpush3.msra.mxu0 %v2962_v20  ;;  %v3088_v13 = vpop.permute.xlu1 %3087 }
 0x439   : > { %3899 = vmatprep.subr.mxu0 %v8089_v16 }
 0x43a   : > { %3900 = vmatpush3.msra.mxu0 %v2961_v46 }
 0x43b   : > { %3901 = vmatprep.subr.mxu0 %v8089_v16 }
 0x43c   : > { %3902 = vmatpush3.msra.mxu0 %v2960_v57 }
 0x43d   : > { %3904 = vmatmul.mubr.msk.f32.vlgmr.msra.gmra.mxu0 %vm2973_vm10, %v2966_v51 }
 0x43e   : > { %3908 = vmatprep.mubr.msk.f32.mxu0 %vm3095_vm11, %v3053_v2 }
 0x4fd   : > { %v3043_v55 = vpop.f32.mrf.mxu0 }
 0x4fe   : > { %v3044_v28 = vadd.f32 %v3043_v55, %v2971_v6 }
 0x4ff   : > { %v3905_v15 = vpop.f32.mrf.mxu0 }
 0x500   : > { %v3047_v32 = vsub.f32 0.0, %v3044_v28 }
 0x502   : > { %v3048_v24 = vmul.f32 1.442695, %v3047_v32 }
 0x504   : > { %4146 = vpow2.f32 %v3048_v24 }
 0x511   : > { %v4147_v11 = vpop.eup %4146 }
 0x512   : > { %v3050_v27 = vadd.f32 1.0, %v4147_v11 }
 0x514   : > { %4148 = vrcp.f32 %v3050_v27 }
 0x521   : > { %v4149_v21 = vpop.eup %4148 }
 0x522   : > { %v3052_v36 = vmul.f32 %v4149_v21, %v3044_v28  ;;  %v3093_v28 = vpop.permute.xlu0 %3092 }
 0x524   : > { %3906 = vmatprep.subr.msk.mxu0 %vm3114_vm12, %v3052_v36  ;;  %3917 = vmatprep.subr.msk.mxu1 %vm3114_vm12, %v3052_v36 }
 0x525   : > { %3907 = vmatpush3.msk.msra.mxu0 %vm3114_vm12, %v3052_v36  ;;  %3918 = vmatpush3.msk.msra.mxu1 %vm3114_vm12, %v3052_v36 }
 0x526   : > { %3909 = vmatmul.mubr.msk.f32.vlgmr.msra.gmra.mxu0 %vm3095_vm11, %v3054_v59  ;;  %3912 = vmatmul.mubr.msk.f32.vlgmr.msra.gmra.mxu1 %vm3095_vm11, %v3056_v8 }
 0x527   : > { %3914 = vmatprep.mubr.msk.f32.mxu1 %vm3095_vm11, %v3057_v33  ;;  %3352 = vmatprep.mubr.f32.mxu0 %v8089_v16 }
 0x528   : > { %3757 = vmatprep.subr.msk.mxu0 %vm3114_vm12, %v3260_v61  ;;  %3765 = vmatprep.subr.msk.mxu1 %vm3114_vm12, %v3261_v62 }
 0x529   : > { %3758 = vmatpush1.msk.msra.mxu0 %vm3114_vm12, %v3252_v1  ;;  %3766 = vmatpush1.msk.msra.mxu1 %vm3114_vm12, %v3259_v38 }
 0x52a   : > { %3915 = vmatmul.mubr.msk.f32.gmra.mxu1 %vm3095_vm11, %v3058_v52 }
 0x52b   : > { %3453 = vmatprep.mubr.f32.mxu1 %v8089_v16 }
 0x5e6   : > { %v3910_v30 = vpop.f32.mrf.mxu0  ;;  %v3913_v18 = vpop.f32.mrf.mxu1 }
 0x5e7   : > { %v3190_v25 = vadd.f32 %v3910_v30, %v3073_v9  ;;  %v3200_v57 = vadd.f32 %v3913_v18, %v3083_v5  ;;  %v4206_v30 = vmov 2   ;;  %v4180_v18 = vld [vmem:[%s7401_s6] sm:$0xff] }
 0x5e8   : > { %v3184_v42 = vpop.f32.mrf.mxu0  ;;  %v3194_v49 = vpop.f32.mrf.mxu1  ;;  %3951 = vset.pattern.permute.xlu1 %v4206_v30  ;;  %3952 = vset.pattern.permute.xlu0 %v4206_v30 }
 0x5e9   : > { %v3214_v7 = vsub.f32 0.0, %v3190_v25  ;;  %v3185_v58 = vadd.f32 %v3184_v42, %v3068_v37  ;;  %v3195_v43 = vadd.f32 %v3194_v49, %v3078_v40  ;;  %v3216_v10 = vsub.f32 0.0, %v3200_v57  ;;  %3516 = vperm.xlu1 %3951, %v4180_v18   ;;  %v4181_v18 = vld [vmem:[%s4298_s13] sm:$0xff] }
 0x5ea   : > { %v3916_v20 = vpop.f32.mrf.mxu1 }
 0x5eb   : > { %v3221_v46 = vmul.f32 1.442695, %v3214_v7  ;;  %v3213_v51 = vsub.f32 0.0, %v3185_v58  ;;  %v3215_v2 = vsub.f32 0.0, %v3195_v43  ;;  %v3210_v15 = vadd.f32 %v3916_v20, %v3093_v28 }
 0x5ec   : > { %v3204_v17 = vpop.f32.mrf.mxu1  ;;  %v3225_v32 = vmul.f32 1.442695, %v3216_v10 }
 0x5ed   : > { %v3219_v45 = vmul.f32 1.442695, %v3213_v51  ;;  %4150 = vpow2.f32 %v3221_v46  ;;  %v3223_v6 = vmul.f32 1.442695, %v3215_v2  ;;  %v3205_v55 = vadd.f32 %v3204_v17, %v3088_v13 }
 0x5ee   : > { %v3218_v11 = vsub.f32 0.0, %v3210_v15 }
 0x5ef   : > { %4152 = vpow2.f32 %v3219_v45  ;;  %v3217_v24 = vsub.f32 0.0, %v3205_v55 }
 0x5f0   : > { %4154 = vpow2.f32 %v3223_v6  ;;  %v3229_v21 = vmul.f32 1.442695, %v3218_v11 }
 0x5f1   : > { %4156 = vpow2.f32 %v3225_v32  ;;  %v3227_v27 = vmul.f32 1.442695, %v3217_v24 }
 0x5f3   : > { %4158 = vpow2.f32 %v3227_v27 }
 0x5f4   : > { %4160 = vpow2.f32 %v3229_v21 }
 0x5fa   : > { %v4151_v36 = vpop.eup %4150 }
 0x5fb   : > { %v3232_v33 = vadd.f32 1.0, %v4151_v36 }
 0x5fc   : > { %v4153_v59 = vpop.eup %4152 }
 0x5fd   : > { %v3231_v8 = vadd.f32 1.0, %v4153_v59  ;;  %v4155_v52 = vpop.eup %4154 }
 0x5fe   : > { %v3233_v26 = vadd.f32 1.0, %v4155_v52  ;;  %v4157_v54 = vpop.eup %4156 }
 0x5ff   : > { %4162 = vrcp.f32 %v3231_v8  ;;  %v3234_v22 = vadd.f32 1.0, %v4157_v54  ;;  %v8093_v54 = vld [vmem:[#allocation75_spill] sm:$0xff] }
 0x600   : > { %4164 = vrcp.f32 %v3232_v33  ;;  %v4159_v47 = vpop.eup %4158 }
 0x601   : > { %4166 = vrcp.f32 %v3233_v26  ;;  %v4161_v50 = vpop.eup %4160  ;;  %v3235_v34 = vadd.f32 1.0, %v4159_v47  ;;  %v8095_v47 = vld [vmem:[#allocation71_spill] sm:$0xff] }
 0x602   : > { %4168 = vrcp.f32 %v3234_v22  ;;  %v3236_v1 = vadd.f32 1.0, %v4161_v50  ;;  %v8097_v50 = vld [vmem:[#allocation2_spill] sm:$0xff] }
 0x603   : > { %4170 = vrcp.f32 %v3235_v34 }
 0x604   : > { %4172 = vrcp.f32 %v3236_v1 }
 0x60c   : > { %v4163_v23 = vpop.eup %4162 }
 0x60d   : > { %3759 = vmatmul.mubr.msk.f32.vlgmr.msra.gmra.mxu0 %vm3095_vm11, %v4163_v23  ;;  %3767 = vmatmul.mubr.msk.f32.vlgmr.msra.gmra.mxu1 %vm3095_vm11, %v4163_v23  ;;  %v4165_v38 = vpop.eup %4164  ;;  %v3514_v23 = vld [vmem:[%s7406_s11] sm:$0xff] }
 0x60e   : > { %3358 = vmatprep.mubr.f32.mxu0 %v8089_v16  ;;  %3459 = vmatprep.mubr.f32.mxu1 %v8089_v16  ;;  %v4167_v61 = vpop.eup %4166 }
 0x60f   : > { %v4169_v62 = vpop.eup %4168 }
 0x610   : > { %v4171_v9 = vpop.eup %4170 }
 0x611   : > { %3760 = vmatmul.mubr.msk.f32.gmra.mxu0 %vm3095_vm11, %v4165_v38  ;;  %3768 = vmatmul.mubr.msk.f32.gmra.mxu1 %vm3095_vm11, %v4165_v38  ;;  %v4173_v37 = vpop.eup %4172 }
 0x612   : > { %3364 = vmatprep.mubr.f32.mxu0 %v8089_v16  ;;  %3465 = vmatprep.mubr.f32.mxu1 %v8089_v16 }
 0x615   : > { %3761 = vmatmul.mubr.msk.f32.gmra.mxu0 %vm3095_vm11, %v4167_v61  ;;  %3769 = vmatmul.mubr.msk.f32.gmra.mxu1 %vm3095_vm11, %v4167_v61 }
 0x616   : > { %3370 = vmatprep.mubr.f32.mxu0 %v8089_v16  ;;  %3471 = vmatprep.mubr.f32.mxu1 %v8089_v16 }
 0x619   : > { %3762 = vmatmul.mubr.msk.f32.gmra.mxu0 %vm3095_vm11, %v4169_v62  ;;  %3770 = vmatmul.mubr.msk.f32.gmra.mxu1 %vm3095_vm11, %v4169_v62 }
 0x61a   : > { %3376 = vmatprep.mubr.f32.mxu0 %v8089_v16  ;;  %3477 = vmatprep.mubr.f32.mxu1 %v8089_v16 }
 0x61d   : > { %3763 = vmatmul.mubr.msk.f32.gmra.mxu0 %vm3095_vm11, %v4171_v9  ;;  %3771 = vmatmul.mubr.msk.f32.gmra.mxu1 %vm3095_vm11, %v4171_v9 }
 0x61e   : > { %3382 = vmatprep.mubr.f32.mxu0 %v8089_v16  ;;  %3483 = vmatprep.mubr.f32.mxu1 %v8089_v16 }
 0x621   : > { %3764 = vmatmul.mubr.msk.f32.gmra.mxu0 %vm3095_vm11, %v4173_v37  ;;  %3772 = vmatmul.mubr.msk.f32.gmra.mxu1 %vm3095_vm11, %v4173_v37 }
 0x622   : > { %3586 = vmatprep.mubr.f32.mxu0 %v8089_v16  ;;  %3657 = vmatprep.mubr.f32.mxu1 %v8089_v16 }
 0x664   : > { %v3517_v1 = vpop.permute.xlu1 %3516 }
 0x6cd   : > { %v7348_v40 = vpop.f32.mrf.mxu0  ;;  %v7350_v25 = vpop.f32.mrf.mxu1 }
 0x6ce   : > { %v3492_v34 = vmul.f32 %v7350_v25, %v8097_v50 }
 0x6cf   : > { %v3356_v42 = vpop.f32.mrf.mxu0  ;;  %v3457_v49 = vpop.f32.mrf.mxu1 }
 0x6d1   : > { %v3360_v7 = vpop.f32.mrf.mxu0  ;;  %v3461_v58 = vpop.f32.mrf.mxu1 }
 0x6d3   : > { %v3362_v43 = vpop.f32.mrf.mxu0  ;;  %v3463_v5 = vpop.f32.mrf.mxu1 }
 0x6d5   : > { %v3366_v20 = vpop.f32.mrf.mxu0  ;;  %v3467_v16 = vpop.f32.mrf.mxu1 }
 0x6d7   : > { %v3368_v46 = vpop.f32.mrf.mxu0  ;;  %v3469_v57 = vpop.f32.mrf.mxu1 }
 0x6d9   : > { %v3372_v51 = vpop.f32.mrf.mxu0  ;;  %v3473_v2 = vpop.f32.mrf.mxu1 }
 0x6db   : > { %v3374_v17 = vpop.f32.mrf.mxu0  ;;  %v3475_v45 = vpop.f32.mrf.mxu1 }
 0x6dd   : > { %v3378_v13 = vpop.f32.mrf.mxu0  ;;  %v3479_v10 = vpop.f32.mrf.mxu1 }
 0x6de   : > { %v3506_v33 = vmul.f32 %v3378_v13, %v7235_v14  ;;  %v3508_v52 = vmul.f32 %v3479_v10, %v7241_v35  ;;  %v3501_v14 = vmul.f32 %v3469_v57, %v7214_v41  ;;  %v3498_v35 = vmul.f32 %v3366_v20, %v7195_v3  ;;  %v8094_v41 = vld [vmem:[#allocation4_spill] sm:$0xff] }
 0x6df   : > { %v3380_v6 = vpop.f32.mrf.mxu0  ;;  %v3481_v55 = vpop.f32.mrf.mxu1  ;;  %v3491_v22 = vmul.f32 %v3356_v42, %v8094_v41  ;;  %v3493_v3 = vmul.f32 %v3457_v49, %v8095_v47  ;;  %v4182_v49 = vld [vmem:[%s4298_s13 + $0x8] sm:$0xff] }
 0x6e0   : > { %v3507_v59 = vmul.f32 %v3380_v6, %v7238_v39  ;;  %v3509_v8 = vmul.f32 %v3481_v55, %v7245_v56  ;;  %v3504_v39 = vmul.f32 %v3473_v2, %v7231_v0  ;;  %v3499_v56 = vmul.f32 %v3368_v46, %v7200_v29  ;;  %v8092_v0 = vld [vmem:[#allocation49_spill] sm:$0xff] }
 0x6e1   : > { %v3384_v28 = vpop.f32.mrf.mxu0  ;;  %v3485_v15 = vpop.f32.mrf.mxu1  ;;  %v3494_v26 = vmul.f32 %v3360_v7, %v8092_v0  ;;  %v3496_v29 = vmul.f32 %v3461_v58, %v8093_v54  ;;  %v4183_v58 = vld [vmem:[%s4298_s13 + $0x10] sm:$0xff] }
 0x6e2   : > { %v3510_v21 = vmul.f32 %v3384_v28, %v7254_v4  ;;  %v3512_v36 = vmul.f32 %v3485_v15, %v7260_v48  ;;  %v3502_v4 = vmul.f32 %v3372_v51, %v7226_v31  ;;  %v8091_v48 = vld [vmem:[#allocation82_spill] sm:$0xff] }
 0x6e3   : > { %v3386_v32 = vpop.f32.mrf.mxu0  ;;  %v3487_v24 = vpop.f32.mrf.mxu1  ;;  %v3497_v31 = vmul.f32 %v3463_v5, %v8091_v48  ;;  %v4184_v5 = vld [vmem:[%s4298_s13 + $0x18] sm:$0xff] }
 0x6e4   : > { %v3511_v11 = vmul.f32 %v3386_v32, %v7251_v53  ;;  %v3513_v27 = vmul.f32 %v3487_v24, %v7257_v60  ;;  %v3503_v53 = vmul.f32 %v3374_v17, %v7208_v63  ;;  %v3505_v60 = vmul.f32 %v3475_v45, %v7222_v44 }
 0x6e5   : > { %v3500_v63 = vmul.f32 %v3467_v16, %v7205_v19  ;;  %v3495_v44 = vmul.f32 %v3362_v43, %v6884_v12  ;;  %v8096_v19 = vld [vmem:[#allocation3_spill] sm:$0xff] }
 0x6e6   : > { %3542 = vmatprep.subr.mxu0 %v3511_v11  ;;  %3613 = vmatprep.subr.mxu1 %v3513_v27  ;;  %v3490_v12 = vmul.f32 %v7348_v40, %v8096_v19 }
 0x6e7   : > { %3543 = vmatpush1.msra.mxu0 %v3510_v21  ;;  %3614 = vmatpush1.msra.mxu1 %v3512_v36 }
 0x6e8   : > { %3544 = vmatprep.subr.mxu0 %v3507_v59  ;;  %3615 = vmatprep.subr.mxu1 %v3509_v8 }
 0x6e9   : > { %3545 = vmatpush1.msra.mxu0 %v3506_v33  ;;  %3616 = vmatpush1.msra.mxu1 %v3508_v52 }
 0x6ea   : > { %3546 = vmatprep.subr.mxu0 %v3503_v53  ;;  %3617 = vmatprep.subr.mxu1 %v3505_v60 }
 0x6eb   : > { %3547 = vmatpush1.msra.mxu0 %v3502_v4  ;;  %3618 = vmatpush1.msra.mxu1 %v3504_v39 }
 0x6ec   : > { %3548 = vmatprep.subr.mxu0 %v3499_v56  ;;  %3619 = vmatprep.subr.mxu1 %v3501_v14 }
 0x6ed   : > { %3549 = vmatpush1.msra.mxu0 %v3498_v35  ;;  %3620 = vmatpush1.msra.mxu1 %v3500_v63 }
 0x6ee   : > { %3550 = vmatprep.subr.mxu0 %v3495_v44  ;;  %3621 = vmatprep.subr.mxu1 %v3497_v31 }
 0x6ef   : > { %3551 = vmatpush1.msra.mxu0 %v3494_v26  ;;  %3622 = vmatpush1.msra.mxu1 %v3496_v29 }
 0x6f0   : > { %3552 = vmatprep.subr.mxu0 %v3491_v22  ;;  %3623 = vmatprep.subr.mxu1 %v3493_v3 }
 0x6f1   : > { %3553 = vmatpush1.msra.mxu0 %v3490_v12  ;;  %3624 = vmatpush1.msra.mxu1 %v3492_v34 }
 0x6f2   : > { %3773 = vmatmul.mubr.msk.f32.vlgmr.msra.gmra.mxu0 %vm2973_vm10, %v3514_v23  ;;  %3774 = vmatmul.mubr.msk.f32.vlgmr.msra.gmra.mxu1 %vm2973_vm10, %v3514_v23 }
 0x7b2   : > { %v3588_v38 = vpop.f32.mrf.mxu0  ;;  %v3659_v61 = vpop.f32.mrf.mxu1 }
 0x7b3   : > { %v3589_v62 = vadd.f32 %v3588_v38, %v3517_v1  ;;  %v3660_v37 = vadd.f32 %v3659_v61, %v3517_v1 }
 0x7b4   : > { %v3590_v9 = vpop.f32.mrf.mxu0  ;;  %v3661_v30 = vpop.f32.mrf.mxu1 }
 0x7b5   : > { %v3664_v40 = vadd.f32 %v4181_v18, %v3589_v62  ;;  %v3591_v25 = vadd.f32 %v3590_v9, %v3517_v1  ;;  %v3662_v42 = vadd.f32 %v3661_v30, %v3517_v1  ;;  %v3666_v43 = vadd.f32 %v4183_v58, %v3660_v37 }
 0x7b7   : > { %3668 = vst [vmem:[%s415_s28] sm:$0xff] %v3664_v40  ;;  %v3665_v7 = vadd.f32 %v4182_v49, %v3591_v25  ;;  %v3667_v20 = vadd.f32 %v4184_v5, %v3662_v42  ;;  %3670 = vst [vmem:[%s415_s28 + $0x10] sm:$0xff] %v3666_v43 }
 0x7b9   : > { %3669 = vst [vmem:[%s415_s28 + $0x8] sm:$0xff] %v3665_v7  ;;  %3671 = vst [vmem:[%s415_s28 + $0x18] sm:$0xff] %v3667_v20 }
 0x7ba PF: > { %s22_s21 = sadd.s32 1, %s4191_s21  }
 0x7bb   : > { %p19_p4 = scmp.ge.s32.totalorder %s22_s21, 4  }
 0x7bd   :  { %21 = sbr.rel (!%p19_p4) target bundleno = 1 (0x1), region = 98 }

</bundles_post_ra>
